<compile_context>
chip_gen: v5e
topology: v5e:2x2
jax: 0.10.0
libtpu: 0.0.40
codegen_flags: <defaults>
</compile_context>

<pallas_src>
import functools

import jax
import jax.numpy as jnp
import numpy as np
from jax.experimental import pallas as pl
from jax.experimental.pallas import tpu as pltpu


def _sigmoid(v):
    # 1 / (1 + exp(-v)); clamp keeps exp finite, approx reciprocal rides the EUP slot.
    v = jnp.maximum(v, -80.0)
    return pl.reciprocal(1.0 + jnp.exp(-v), approx=True)


def _select_stack(pieces, axis, shape):
    """Place `pieces` (each size-1 along `axis`) side by side into an array of `shape`
    using iota + select (avoids relying on tiny-tile concatenate lowering)."""
    if len(pieces) == 1:
        return pieces[0]
    idx = jax.lax.broadcasted_iota(jnp.int32, shape, axis)
    out = pieces[-1]
    for k in range(len(pieces) - 2, -1, -1):
        out = jnp.where(idx == k, pieces[k], out)
    return out


# -------------------- fused CBAM kernel --------------------
def _cbam_kernel(x_ref, w1_ref, w2_ref, idx_ref, conv_ref, o_ref, *, H, W, K):
    """Fused channel + spatial attention for a block of the batch.

    x_ref  : [BB, C, HW]  activations (lane dim = HW, lane-dense)
    w1_ref : [HP, C]      fc1 weight, hidden zero-padded to HP (multiple of 8)
    w2_ref : [C, HP]      fc2 weight, zero-padded
    idx_ref: [2, HW] i32  row 0 = spatial-row index, row 1 = spatial-col index per pixel
    conv_ref: [2, K*K]    7x7 conv taps in SMEM (row 0 -> channel-max map, row 1 -> mean map)
    o_ref  : [BB, C, HW]
    """
    BB, C, HW = x_ref.shape

    # ---------------- channel attention (one shared-MLP pass for all 2*BB vectors) ----
    xs, cols = [], []
    for b in range(BB):
        xb = x_ref[b].astype(jnp.float32)                     # [C, HW]
        xs.append(xb)
        cols.append(jnp.max(xb, axis=1, keepdims=True))       # [C, 1]  AdaptiveMaxPool2d(1)
        cols.append(jnp.mean(xb, axis=1, keepdims=True))      # [C, 1]  AdaptiveAvgPool2d(1)
    pooled = _select_stack(cols, axis=1, shape=(C, 2 * BB))   # [C, 2BB] (max_b | avg_b | ...)
    h = jnp.maximum(
        jnp.dot(w1_ref[...], pooled, preferred_element_type=jnp.float32), 0.0)  # [HP, 2BB]
    z = jnp.dot(w2_ref[...], h, preferred_element_type=jnp.float32)             # [C, 2BB]

    xcs, smax_rows, savg_rows = [], [], []
    for b in range(BB):
        ca = _sigmoid(z[:, 2 * b:2 * b + 1] + z[:, 2 * b + 1:2 * b + 2])  # [C, 1]
        xc = xs[b] * ca                                                    # [C, HW]
        xcs.append(xc)
        smax_rows.append(jnp.max(xc, axis=0, keepdims=True))              # [1, HW]
        savg_rows.append(jnp.mean(xc, axis=0, keepdims=True))             # [1, HW]

    # ---------------- spatial attention: 7x7 "same" conv as 49 shifted masked FMAs ----
    smax = _select_stack(smax_rows, axis=0, shape=(BB, HW))   # [BB, HW]
    savg = _select_stack(savg_rows, axis=0, shape=(BB, HW))   # [BB, HW]
    row = idx_ref[0:1, :]                                     # [1, HW] int32
    col = idx_ref[1:2, :]                                     # [1, HW] int32
    P = K // 2
    row_ok = {dh: (row + dh >= 0) & (row + dh < H) for dh in range(-P, P + 1)}
    col_ok = {dw: (col + dw >= 0) & (col + dw < W) for dw in range(-P, P + 1)}

    acc = jnp.zeros((BB, HW), jnp.float32)
    t = 0
    for dh in range(-P, P + 1):
        for dw in range(-P, P + 1):
            shift = (-(dh * W + dw)) % HW                     # out[k] needs in[k + dh*W + dw]
            tap = (pltpu.roll(smax, shift, 1) * conv_ref[0, t] +
                   pltpu.roll(savg, shift, 1) * conv_ref[1, t])
            acc = acc + jnp.where(row_ok[dh] & col_ok[dw], tap, 0.0)      # zero padding
            t += 1
    sa = _sigmoid(acc)                                        # [BB, HW]

    for b in range(BB):
        o_ref[b] = (xcs[b] * sa[b:b + 1, :]).astype(o_ref.dtype)


# -------------------- wrapper --------------------
def prepare_cbam_params(fc1_w, fc2_w, conv_w, H, W):
    """One-time parameter packing — keep this out of the per-forward path."""
    hidden, C = fc1_w.shape
    HP = max(8, ((hidden + 7) // 8) * 8)                      # tiny sublane-aligned pad
    w1 = jnp.zeros((HP, C), jnp.float32).at[:hidden, :].set(fc1_w.astype(jnp.float32))
    w2 = jnp.zeros((C, HP), jnp.float32).at[:, :hidden].set(fc2_w.astype(jnp.float32))
    conv = conv_w.reshape(2, -1).astype(jnp.float32)          # [2, K*K], row-major taps
    k = np.arange(H * W, dtype=np.int32)
    idx = jnp.asarray(np.stack([k // W, k % W], axis=0))      # [2, HW] row/col per pixel
    return w1, w2, idx, conv


@functools.partial(jax.jit, static_argnames=("kernel_size", "batch_block"))
def cbam_pallas(x, w1, w2, idx, conv, *, kernel_size=7, batch_block=None):
    """CBAM forward. x: [B,C,H,W]; (w1,w2,idx,conv) from prepare_cbam_params."""
    B, C, H, W = x.shape
    HW = H * W
    bb = B if batch_block is None else batch_block            # v7x: use batch_block=B//2
    assert B % bb == 0

    x_flat = x.reshape(B, C, HW)                               # contiguous; free reshape

    out_flat = pl.pallas_call(
        functools.partial(_cbam_kernel, H=H, W=W, K=kernel_size),
        out_shape=jax.ShapeDtypeStruct((B, C, HW), x.dtype),
        grid=(B // bb,),
        in_specs=[
            pl.BlockSpec((bb, C, HW), lambda g: (g, 0, 0)),
            pl.BlockSpec(w1.shape, lambda g: (0, 0)),
            pl.BlockSpec(w2.shape, lambda g: (0, 0)),
            pl.BlockSpec(idx.shape, lambda g: (0, 0)),
            pl.BlockSpec(memory_space=pltpu.MemorySpace.SMEM),   # conv taps: scalar reads
        ],
        out_specs=pl.BlockSpec((bb, C, HW), lambda g: (g, 0, 0)),
        compiler_params=pltpu.CompilerParams(dimension_semantics=("parallel",)),
    )(x_flat, w1, w2, idx, conv)

    return out_flat.reshape(B, C, H, W)


# -------------------- pure-JAX reference (intended PyTorch semantics) --------------------
def cbam_reference(x, fc1_w, fc2_w, conv_w):
    def fc(v):
        return jnp.maximum(v @ fc1_w.T, 0.0) @ fc2_w.T
    mx = jnp.max(x, axis=(2, 3))
    av = jnp.mean(x, axis=(2, 3))
    ca = jax.nn.sigmoid(fc(mx) + fc(av))[:, :, None, None]
    xc = x * ca
    sm = jnp.max(xc, axis=1, keepdims=True)
    sa = jnp.mean(xc, axis=1, keepdims=True)
    pooled = jnp.concatenate([sm, sa], axis=1)
    conv = jax.lax.conv_general_dilated(
        pooled, conv_w[None], window_strides=(1, 1), padding=((3, 3), (3, 3)),
        dimension_numbers=("NCHW", "OIHW", "NCHW"))
    return xc * jax.nn.sigmoid(conv)


if __name__ == "__main__":
    B, C, H, W = 2, 32, 16, 16
    ratio, ksize = 16, 7
    hidden = C // ratio

    key = jax.random.PRNGKey(0)
    kx, k1, k2, k3 = jax.random.split(key, 4)
    x = jax.random.normal(kx, (B, C, H, W), jnp.float32)
    fc1_w = 0.2 * jax.random.normal(k1, (hidden, C), jnp.float32)          # Linear(C, C//r).weight
    fc2_w = 0.2 * jax.random.normal(k2, (C, hidden), jnp.float32)          # Linear(C//r, C).weight
    conv_w = 0.2 * jax.random.normal(k3, (2, ksize, ksize), jnp.float32)   # Conv2d(2,1,7).weight[0]

    # One-time param packing, hoisted off the per-forward critical path.
    w1, w2, idx, conv = prepare_cbam_params(fc1_w, fc2_w, conv_w, H, W)

    out = jax.block_until_ready(cbam_pallas(x, w1, w2, idx, conv, kernel_size=ksize))

    ref = cbam_reference(x, fc1_w, fc2_w, conv_w)
    err = float(jnp.max(jnp.abs(out - ref)))
    if not np.allclose(np.asarray(out), np.asarray(ref), atol=2e-2, rtol=2e-2):
        raise SystemExit(f"mismatch vs reference, max abs err = {err}")
    print("KERNEL_OK")
</pallas_src>

<mosaic_0001>
module attributes {stable_mosaic.version = 11 : i64} {
  func.func @_cbam_kernel(%arg0: i32, %arg1: memref<2x32x256xf32, #tpu.memory_space<vmem>>, %arg2: memref<8x32xf32, #tpu.memory_space<vmem>>, %arg3: memref<32x8xf32, #tpu.memory_space<vmem>>, %arg4: memref<2x256xi32, #tpu.memory_space<vmem>>, %arg5: memref<2x49xf32, #tpu.memory_space<smem>>, %arg6: memref<2x32x256xf32, #tpu.memory_space<vmem>>) attributes {dimension_semantics = [#tpu.dimension_semantics<parallel>], iteration_bounds = array<i64: 1>, scalar_prefetch = 0 : i64, scratch_operands = 0 : i64, tpu.core_type = #tpu.core_type<tc>, window_params = [{transform_indices = @transform_0, window_bounds = array<i64: 2, 32, 256>}, {pipeline_mode = #tpu.pipeline_mode<synchronous>, transform_indices = @transform_1, window_bounds = array<i64: 8, 32>}, {pipeline_mode = #tpu.pipeline_mode<synchronous>, transform_indices = @transform_2, window_bounds = array<i64: 32, 8>}, {pipeline_mode = #tpu.pipeline_mode<synchronous>, transform_indices = @transform_3, window_bounds = array<i64: 2, 256>}, {transform_indices = @transform_4, window_bounds = array<i64: 2, 49>}, {transform_indices = @transform_5, window_bounds = array<i64: 2, 32, 256>}]} {
    %c0 = arith.constant 0 : index
    %c0_0 = arith.constant 0 : index
    %c0_1 = arith.constant 0 : index
    %0 = vector.load %arg1[%c0, %c0_0, %c0_1] : memref<2x32x256xf32, #tpu.memory_space<vmem>>, vector<1x32x256xf32>
    %1 = vector.shape_cast %0 : vector<1x32x256xf32> to vector<32x256xf32>
    %cst = arith.constant dense<0xFF800000> : vector<32xf32>
    %2 = vector.multi_reduction <maximumf>, %1, %cst [1] : vector<32x256xf32> to vector<32xf32>
    %3 = vector.shape_cast %2 : vector<32xf32> to vector<32x1xf32>
    %cst_2 = arith.constant dense<0.000000e+00> : vector<32xf32>
    %4 = vector.multi_reduction <add>, %1, %cst_2 [1] : vector<32x256xf32> to vector<32xf32>
    %5 = vector.shape_cast %4 : vector<32xf32> to vector<32x1xf32>
    %cst_3 = arith.constant 2.560000e+02 : f32
    %6 = vector.broadcast %cst_3 : f32 to vector<32x1xf32>
    %7 = arith.divf %5, %6 : vector<32x1xf32>
    %c1 = arith.constant 1 : index
    %c0_4 = arith.constant 0 : index
    %c0_5 = arith.constant 0 : index
    %8 = vector.load %arg1[%c1, %c0_4, %c0_5] : memref<2x32x256xf32, #tpu.memory_space<vmem>>, vector<1x32x256xf32>
    %9 = vector.shape_cast %8 : vector<1x32x256xf32> to vector<32x256xf32>
    %cst_6 = arith.constant dense<0xFF800000> : vector<32xf32>
    %10 = vector.multi_reduction <maximumf>, %9, %cst_6 [1] : vector<32x256xf32> to vector<32xf32>
    %11 = vector.shape_cast %10 : vector<32xf32> to vector<32x1xf32>
    %cst_7 = arith.constant dense<0.000000e+00> : vector<32xf32>
    %12 = vector.multi_reduction <add>, %9, %cst_7 [1] : vector<32x256xf32> to vector<32xf32>
    %13 = vector.shape_cast %12 : vector<32xf32> to vector<32x1xf32>
    %cst_8 = arith.constant 2.560000e+02 : f32
    %14 = vector.broadcast %cst_8 : f32 to vector<32x1xf32>
    %15 = arith.divf %13, %14 : vector<32x1xf32>
    %16 = tpu.iota {dimensions = array<i32: 1>} : vector<32x4xi32>
    %c2_i32 = arith.constant 2 : i32
    %17 = vector.broadcast %c2_i32 : i32 to vector<32x4xi32>
    %18 = arith.cmpi eq, %16, %17 : vector<32x4xi32>
    %19 = vector.shape_cast %11 : vector<32x1xf32> to vector<32x1xf32>
    %20 = vector.broadcast %19 : vector<32x1xf32> to vector<32x4xf32>
    %21 = vector.shape_cast %15 : vector<32x1xf32> to vector<32x1xf32>
    %22 = vector.broadcast %21 : vector<32x1xf32> to vector<32x4xf32>
    %23 = arith.select %18, %20, %22 : vector<32x4xi1>, vector<32x4xf32>
    %c1_i32 = arith.constant 1 : i32
    %24 = vector.broadcast %c1_i32 : i32 to vector<32x4xi32>
    %25 = arith.cmpi eq, %16, %24 : vector<32x4xi32>
    %26 = vector.shape_cast %7 : vector<32x1xf32> to vector<32x1xf32>
    %27 = vector.broadcast %26 : vector<32x1xf32> to vector<32x4xf32>
    %28 = arith.select %25, %27, %23 : vector<32x4xi1>, vector<32x4xf32>
    %c0_i32 = arith.constant 0 : i32
    %29 = vector.broadcast %c0_i32 : i32 to vector<32x4xi32>
    %30 = arith.cmpi eq, %16, %29 : vector<32x4xi32>
    %31 = vector.shape_cast %3 : vector<32x1xf32> to vector<32x1xf32>
    %32 = vector.broadcast %31 : vector<32x1xf32> to vector<32x4xf32>
    %33 = arith.select %30, %32, %28 : vector<32x4xi1>, vector<32x4xf32>
    %c0_9 = arith.constant 0 : index
    %c0_10 = arith.constant 0 : index
    %34 = vector.load %arg2[%c0_9, %c0_10] : memref<8x32xf32, #tpu.memory_space<vmem>>, vector<8x32xf32>
    %cst_11 = arith.constant dense<0.000000e+00> : vector<8x4xf32>
    %35 = tpu.matmul %34, %33, %cst_11 {dimension_numbers = #tpu.dot_dimension_numbers<[1], [0], [0], [1], [0, 0, 1, 1], [], []>} : vector<8x32xf32>, vector<32x4xf32>, vector<8x4xf32> -> vector<8x4xf32>
    %cst_12 = arith.constant 0.000000e+00 : f32
    %36 = vector.broadcast %cst_12 : f32 to vector<8x4xf32>
    %37 = arith.maximumf %35, %36 : vector<8x4xf32>
    %c0_13 = arith.constant 0 : index
    %c0_14 = arith.constant 0 : index
    %38 = vector.load %arg3[%c0_13, %c0_14] : memref<32x8xf32, #tpu.memory_space<vmem>>, vector<32x8xf32>
    %cst_15 = arith.constant dense<0.000000e+00> : vector<32x4xf32>
    %39 = tpu.matmul %38, %37, %cst_15 {dimension_numbers = #tpu.dot_dimension_numbers<[1], [0], [0], [1], [0, 0, 1, 1], [], []>} : vector<32x8xf32>, vector<8x4xf32>, vector<32x4xf32> -> vector<32x4xf32>
    %40 = vector.extract_strided_slice %39 {offsets = [0, 0], sizes = [32, 1], strides = [1, 1]} : vector<32x4xf32> to vector<32x1xf32>
    %41 = vector.extract_strided_slice %39 {offsets = [0, 1], sizes = [32, 1], strides = [1, 1]} : vector<32x4xf32> to vector<32x1xf32>
    %42 = arith.addf %40, %41 : vector<32x1xf32>
    %cst_16 = arith.constant -8.000000e+01 : f32
    %43 = vector.broadcast %cst_16 : f32 to vector<32x1xf32>
    %44 = arith.maximumf %42, %43 : vector<32x1xf32>
    %cst_17 = arith.constant 0.000000e+00 : f32
    %45 = vector.broadcast %cst_17 : f32 to vector<32x1xf32>
    %46 = arith.subf %45, %44 : vector<32x1xf32>
    %47 = math.exp %46 : vector<32x1xf32>
    %cst_18 = arith.constant 1.000000e+00 : f32
    %48 = vector.broadcast %cst_18 : f32 to vector<32x1xf32>
    %49 = arith.addf %48, %47 : vector<32x1xf32>
    %50 = tpu.reciprocal %49 {approx = true} : vector<32x1xf32> -> vector<32x1xf32>
    %51 = vector.broadcast %50 : vector<32x1xf32> to vector<32x256xf32>
    %52 = arith.mulf %1, %51 : vector<32x256xf32>
    %cst_19 = arith.constant dense<0xFF800000> : vector<256xf32>
    %53 = vector.multi_reduction <maximumf>, %52, %cst_19 [0] : vector<32x256xf32> to vector<256xf32>
    %54 = vector.shape_cast %53 : vector<256xf32> to vector<1x256xf32>
    %cst_20 = arith.constant dense<0.000000e+00> : vector<256xf32>
    %55 = vector.multi_reduction <add>, %52, %cst_20 [0] : vector<32x256xf32> to vector<256xf32>
    %56 = vector.shape_cast %55 : vector<256xf32> to vector<1x256xf32>
    %cst_21 = arith.constant 3.200000e+01 : f32
    %57 = vector.broadcast %cst_21 : f32 to vector<1x256xf32>
    %58 = arith.divf %56, %57 : vector<1x256xf32>
    %59 = vector.extract_strided_slice %39 {offsets = [0, 2], sizes = [32, 1], strides = [1, 1]} : vector<32x4xf32> to vector<32x1xf32>
    %60 = vector.extract_strided_slice %39 {offsets = [0, 3], sizes = [32, 1], strides = [1, 1]} : vector<32x4xf32> to vector<32x1xf32>
    %61 = arith.addf %59, %60 : vector<32x1xf32>
    %cst_22 = arith.constant -8.000000e+01 : f32
    %62 = vector.broadcast %cst_22 : f32 to vector<32x1xf32>
    %63 = arith.maximumf %61, %62 : vector<32x1xf32>
    %cst_23 = arith.constant 0.000000e+00 : f32
    %64 = vector.broadcast %cst_23 : f32 to vector<32x1xf32>
    %65 = arith.subf %64, %63 : vector<32x1xf32>
    %66 = math.exp %65 : vector<32x1xf32>
    %cst_24 = arith.constant 1.000000e+00 : f32
    %67 = vector.broadcast %cst_24 : f32 to vector<32x1xf32>
    %68 = arith.addf %67, %66 : vector<32x1xf32>
    %69 = tpu.reciprocal %68 {approx = true} : vector<32x1xf32> -> vector<32x1xf32>
    %70 = vector.broadcast %69 : vector<32x1xf32> to vector<32x256xf32>
    %71 = arith.mulf %9, %70 : vector<32x256xf32>
    %cst_25 = arith.constant dense<0xFF800000> : vector<256xf32>
    %72 = vector.multi_reduction <maximumf>, %71, %cst_25 [0] : vector<32x256xf32> to vector<256xf32>
    %73 = vector.shape_cast %72 : vector<256xf32> to vector<1x256xf32>
    %cst_26 = arith.constant dense<0.000000e+00> : vector<256xf32>
    %74 = vector.multi_reduction <add>, %71, %cst_26 [0] : vector<32x256xf32> to vector<256xf32>
    %75 = vector.shape_cast %74 : vector<256xf32> to vector<1x256xf32>
    %cst_27 = arith.constant 3.200000e+01 : f32
    %76 = vector.broadcast %cst_27 : f32 to vector<1x256xf32>
    %77 = arith.divf %75, %76 : vector<1x256xf32>
    %78 = tpu.iota {dimensions = array<i32: 0>} : vector<2x256xi32>
    %c0_i32_28 = arith.constant 0 : i32
    %79 = vector.broadcast %c0_i32_28 : i32 to vector<2x256xi32>
    %80 = arith.cmpi eq, %78, %79 : vector<2x256xi32>
    %81 = vector.shape_cast %54 : vector<1x256xf32> to vector<1x256xf32>
    %82 = vector.broadcast %81 : vector<1x256xf32> to vector<2x256xf32>
    %83 = vector.shape_cast %73 : vector<1x256xf32> to vector<1x256xf32>
    %84 = vector.broadcast %83 : vector<1x256xf32> to vector<2x256xf32>
    %85 = arith.select %80, %82, %84 : vector<2x256xi1>, vector<2x256xf32>
    %86 = tpu.iota {dimensions = array<i32: 0>} : vector<2x256xi32>
    %c0_i32_29 = arith.constant 0 : i32
    %87 = vector.broadcast %c0_i32_29 : i32 to vector<2x256xi32>
    %88 = arith.cmpi eq, %86, %87 : vector<2x256xi32>
    %89 = vector.shape_cast %58 : vector<1x256xf32> to vector<1x256xf32>
    %90 = vector.broadcast %89 : vector<1x256xf32> to vector<2x256xf32>
    %91 = vector.shape_cast %77 : vector<1x256xf32> to vector<1x256xf32>
    %92 = vector.broadcast %91 : vector<1x256xf32> to vector<2x256xf32>
    %93 = arith.select %88, %90, %92 : vector<2x256xi1>, vector<2x256xf32>
    %c0_30 = arith.constant 0 : index
    %c0_31 = arith.constant 0 : index
    %94 = vector.load %arg4[%c0_30, %c0_31] : memref<2x256xi32, #tpu.memory_space<vmem>>, vector<1x256xi32>
    %c1_32 = arith.constant 1 : index
    %c0_33 = arith.constant 0 : index
    %95 = vector.load %arg4[%c1_32, %c0_33] : memref<2x256xi32, #tpu.memory_space<vmem>>, vector<1x256xi32>
    %c-3_i32 = arith.constant -3 : i32
    %96 = vector.broadcast %c-3_i32 : i32 to vector<1x256xi32>
    %97 = arith.addi %94, %96 : vector<1x256xi32>
    %c0_i32_34 = arith.constant 0 : i32
    %98 = vector.broadcast %c0_i32_34 : i32 to vector<1x256xi32>
    %99 = arith.cmpi sge, %97, %98 : vector<1x256xi32>
    %c-3_i32_35 = arith.constant -3 : i32
    %100 = vector.broadcast %c-3_i32_35 : i32 to vector<1x256xi32>
    %101 = arith.addi %94, %100 : vector<1x256xi32>
    %c16_i32 = arith.constant 16 : i32
    %102 = vector.broadcast %c16_i32 : i32 to vector<1x256xi32>
    %103 = arith.cmpi slt, %101, %102 : vector<1x256xi32>
    %104 = arith.andi %99, %103 : vector<1x256xi1>
    %c-2_i32 = arith.constant -2 : i32
    %105 = vector.broadcast %c-2_i32 : i32 to vector<1x256xi32>
    %106 = arith.addi %94, %105 : vector<1x256xi32>
    %c0_i32_36 = arith.constant 0 : i32
    %107 = vector.broadcast %c0_i32_36 : i32 to vector<1x256xi32>
    %108 = arith.cmpi sge, %106, %107 : vector<1x256xi32>
    %c-2_i32_37 = arith.constant -2 : i32
    %109 = vector.broadcast %c-2_i32_37 : i32 to vector<1x256xi32>
    %110 = arith.addi %94, %109 : vector<1x256xi32>
    %c16_i32_38 = arith.constant 16 : i32
    %111 = vector.broadcast %c16_i32_38 : i32 to vector<1x256xi32>
    %112 = arith.cmpi slt, %110, %111 : vector<1x256xi32>
    %113 = arith.andi %108, %112 : vector<1x256xi1>
    %c-1_i32 = arith.constant -1 : i32
    %114 = vector.broadcast %c-1_i32 : i32 to vector<1x256xi32>
    %115 = arith.addi %94, %114 : vector<1x256xi32>
    %c0_i32_39 = arith.constant 0 : i32
    %116 = vector.broadcast %c0_i32_39 : i32 to vector<1x256xi32>
    %117 = arith.cmpi sge, %115, %116 : vector<1x256xi32>
    %c-1_i32_40 = arith.constant -1 : i32
    %118 = vector.broadcast %c-1_i32_40 : i32 to vector<1x256xi32>
    %119 = arith.addi %94, %118 : vector<1x256xi32>
    %c16_i32_41 = arith.constant 16 : i32
    %120 = vector.broadcast %c16_i32_41 : i32 to vector<1x256xi32>
    %121 = arith.cmpi slt, %119, %120 : vector<1x256xi32>
    %122 = arith.andi %117, %121 : vector<1x256xi1>
    %c0_i32_42 = arith.constant 0 : i32
    %123 = vector.broadcast %c0_i32_42 : i32 to vector<1x256xi32>
    %124 = arith.addi %94, %123 : vector<1x256xi32>
    %c0_i32_43 = arith.constant 0 : i32
    %125 = vector.broadcast %c0_i32_43 : i32 to vector<1x256xi32>
    %126 = arith.cmpi sge, %124, %125 : vector<1x256xi32>
    %c0_i32_44 = arith.constant 0 : i32
    %127 = vector.broadcast %c0_i32_44 : i32 to vector<1x256xi32>
    %128 = arith.addi %94, %127 : vector<1x256xi32>
    %c16_i32_45 = arith.constant 16 : i32
    %129 = vector.broadcast %c16_i32_45 : i32 to vector<1x256xi32>
    %130 = arith.cmpi slt, %128, %129 : vector<1x256xi32>
    %131 = arith.andi %126, %130 : vector<1x256xi1>
    %c1_i32_46 = arith.constant 1 : i32
    %132 = vector.broadcast %c1_i32_46 : i32 to vector<1x256xi32>
    %133 = arith.addi %94, %132 : vector<1x256xi32>
    %c0_i32_47 = arith.constant 0 : i32
    %134 = vector.broadcast %c0_i32_47 : i32 to vector<1x256xi32>
    %135 = arith.cmpi sge, %133, %134 : vector<1x256xi32>
    %c1_i32_48 = arith.constant 1 : i32
    %136 = vector.broadcast %c1_i32_48 : i32 to vector<1x256xi32>
    %137 = arith.addi %94, %136 : vector<1x256xi32>
    %c16_i32_49 = arith.constant 16 : i32
    %138 = vector.broadcast %c16_i32_49 : i32 to vector<1x256xi32>
    %139 = arith.cmpi slt, %137, %138 : vector<1x256xi32>
    %140 = arith.andi %135, %139 : vector<1x256xi1>
    %c2_i32_50 = arith.constant 2 : i32
    %141 = vector.broadcast %c2_i32_50 : i32 to vector<1x256xi32>
    %142 = arith.addi %94, %141 : vector<1x256xi32>
    %c0_i32_51 = arith.constant 0 : i32
    %143 = vector.broadcast %c0_i32_51 : i32 to vector<1x256xi32>
    %144 = arith.cmpi sge, %142, %143 : vector<1x256xi32>
    %c2_i32_52 = arith.constant 2 : i32
    %145 = vector.broadcast %c2_i32_52 : i32 to vector<1x256xi32>
    %146 = arith.addi %94, %145 : vector<1x256xi32>
    %c16_i32_53 = arith.constant 16 : i32
    %147 = vector.broadcast %c16_i32_53 : i32 to vector<1x256xi32>
    %148 = arith.cmpi slt, %146, %147 : vector<1x256xi32>
    %149 = arith.andi %144, %148 : vector<1x256xi1>
    %c3_i32 = arith.constant 3 : i32
    %150 = vector.broadcast %c3_i32 : i32 to vector<1x256xi32>
    %151 = arith.addi %94, %150 : vector<1x256xi32>
    %c0_i32_54 = arith.constant 0 : i32
    %152 = vector.broadcast %c0_i32_54 : i32 to vector<1x256xi32>
    %153 = arith.cmpi sge, %151, %152 : vector<1x256xi32>
    %c3_i32_55 = arith.constant 3 : i32
    %154 = vector.broadcast %c3_i32_55 : i32 to vector<1x256xi32>
    %155 = arith.addi %94, %154 : vector<1x256xi32>
    %c16_i32_56 = arith.constant 16 : i32
    %156 = vector.broadcast %c16_i32_56 : i32 to vector<1x256xi32>
    %157 = arith.cmpi slt, %155, %156 : vector<1x256xi32>
    %158 = arith.andi %153, %157 : vector<1x256xi1>
    %c-3_i32_57 = arith.constant -3 : i32
    %159 = vector.broadcast %c-3_i32_57 : i32 to vector<1x256xi32>
    %160 = arith.addi %95, %159 : vector<1x256xi32>
    %c0_i32_58 = arith.constant 0 : i32
    %161 = vector.broadcast %c0_i32_58 : i32 to vector<1x256xi32>
    %162 = arith.cmpi sge, %160, %161 : vector<1x256xi32>
    %c-3_i32_59 = arith.constant -3 : i32
    %163 = vector.broadcast %c-3_i32_59 : i32 to vector<1x256xi32>
    %164 = arith.addi %95, %163 : vector<1x256xi32>
    %c16_i32_60 = arith.constant 16 : i32
    %165 = vector.broadcast %c16_i32_60 : i32 to vector<1x256xi32>
    %166 = arith.cmpi slt, %164, %165 : vector<1x256xi32>
    %167 = arith.andi %162, %166 : vector<1x256xi1>
    %c-2_i32_61 = arith.constant -2 : i32
    %168 = vector.broadcast %c-2_i32_61 : i32 to vector<1x256xi32>
    %169 = arith.addi %95, %168 : vector<1x256xi32>
    %c0_i32_62 = arith.constant 0 : i32
    %170 = vector.broadcast %c0_i32_62 : i32 to vector<1x256xi32>
    %171 = arith.cmpi sge, %169, %170 : vector<1x256xi32>
    %c-2_i32_63 = arith.constant -2 : i32
    %172 = vector.broadcast %c-2_i32_63 : i32 to vector<1x256xi32>
    %173 = arith.addi %95, %172 : vector<1x256xi32>
    %c16_i32_64 = arith.constant 16 : i32
    %174 = vector.broadcast %c16_i32_64 : i32 to vector<1x256xi32>
    %175 = arith.cmpi slt, %173, %174 : vector<1x256xi32>
    %176 = arith.andi %171, %175 : vector<1x256xi1>
    %c-1_i32_65 = arith.constant -1 : i32
    %177 = vector.broadcast %c-1_i32_65 : i32 to vector<1x256xi32>
    %178 = arith.addi %95, %177 : vector<1x256xi32>
    %c0_i32_66 = arith.constant 0 : i32
    %179 = vector.broadcast %c0_i32_66 : i32 to vector<1x256xi32>
    %180 = arith.cmpi sge, %178, %179 : vector<1x256xi32>
    %c-1_i32_67 = arith.constant -1 : i32
    %181 = vector.broadcast %c-1_i32_67 : i32 to vector<1x256xi32>
    %182 = arith.addi %95, %181 : vector<1x256xi32>
    %c16_i32_68 = arith.constant 16 : i32
    %183 = vector.broadcast %c16_i32_68 : i32 to vector<1x256xi32>
    %184 = arith.cmpi slt, %182, %183 : vector<1x256xi32>
    %185 = arith.andi %180, %184 : vector<1x256xi1>
    %c0_i32_69 = arith.constant 0 : i32
    %186 = vector.broadcast %c0_i32_69 : i32 to vector<1x256xi32>
    %187 = arith.addi %95, %186 : vector<1x256xi32>
    %c0_i32_70 = arith.constant 0 : i32
    %188 = vector.broadcast %c0_i32_70 : i32 to vector<1x256xi32>
    %189 = arith.cmpi sge, %187, %188 : vector<1x256xi32>
    %c0_i32_71 = arith.constant 0 : i32
    %190 = vector.broadcast %c0_i32_71 : i32 to vector<1x256xi32>
    %191 = arith.addi %95, %190 : vector<1x256xi32>
    %c16_i32_72 = arith.constant 16 : i32
    %192 = vector.broadcast %c16_i32_72 : i32 to vector<1x256xi32>
    %193 = arith.cmpi slt, %191, %192 : vector<1x256xi32>
    %194 = arith.andi %189, %193 : vector<1x256xi1>
    %c1_i32_73 = arith.constant 1 : i32
    %195 = vector.broadcast %c1_i32_73 : i32 to vector<1x256xi32>
    %196 = arith.addi %95, %195 : vector<1x256xi32>
    %c0_i32_74 = arith.constant 0 : i32
    %197 = vector.broadcast %c0_i32_74 : i32 to vector<1x256xi32>
    %198 = arith.cmpi sge, %196, %197 : vector<1x256xi32>
    %c1_i32_75 = arith.constant 1 : i32
    %199 = vector.broadcast %c1_i32_75 : i32 to vector<1x256xi32>
    %200 = arith.addi %95, %199 : vector<1x256xi32>
    %c16_i32_76 = arith.constant 16 : i32
    %201 = vector.broadcast %c16_i32_76 : i32 to vector<1x256xi32>
    %202 = arith.cmpi slt, %200, %201 : vector<1x256xi32>
    %203 = arith.andi %198, %202 : vector<1x256xi1>
    %c2_i32_77 = arith.constant 2 : i32
    %204 = vector.broadcast %c2_i32_77 : i32 to vector<1x256xi32>
    %205 = arith.addi %95, %204 : vector<1x256xi32>
    %c0_i32_78 = arith.constant 0 : i32
    %206 = vector.broadcast %c0_i32_78 : i32 to vector<1x256xi32>
    %207 = arith.cmpi sge, %205, %206 : vector<1x256xi32>
    %c2_i32_79 = arith.constant 2 : i32
    %208 = vector.broadcast %c2_i32_79 : i32 to vector<1x256xi32>
    %209 = arith.addi %95, %208 : vector<1x256xi32>
    %c16_i32_80 = arith.constant 16 : i32
    %210 = vector.broadcast %c16_i32_80 : i32 to vector<1x256xi32>
    %211 = arith.cmpi slt, %209, %210 : vector<1x256xi32>
    %212 = arith.andi %207, %211 : vector<1x256xi1>
    %c3_i32_81 = arith.constant 3 : i32
    %213 = vector.broadcast %c3_i32_81 : i32 to vector<1x256xi32>
    %214 = arith.addi %95, %213 : vector<1x256xi32>
    %c0_i32_82 = arith.constant 0 : i32
    %215 = vector.broadcast %c0_i32_82 : i32 to vector<1x256xi32>
    %216 = arith.cmpi sge, %214, %215 : vector<1x256xi32>
    %c3_i32_83 = arith.constant 3 : i32
    %217 = vector.broadcast %c3_i32_83 : i32 to vector<1x256xi32>
    %218 = arith.addi %95, %217 : vector<1x256xi32>
    %c16_i32_84 = arith.constant 16 : i32
    %219 = vector.broadcast %c16_i32_84 : i32 to vector<1x256xi32>
    %220 = arith.cmpi slt, %218, %219 : vector<1x256xi32>
    %221 = arith.andi %216, %220 : vector<1x256xi1>
    %cst_85 = arith.constant 0.000000e+00 : f32
    %222 = vector.broadcast %cst_85 : f32 to vector<2x256xf32>
    %c51_i32 = arith.constant 51 : i32
    %223 = tpu.dynamic_rotate %85 by %c51_i32 dim 1 : vector<2x256xf32>, i32 -> vector<2x256xf32>
    %c0_86 = arith.constant 0 : index
    %c0_87 = arith.constant 0 : index
    %224 = memref.load %arg5[%c0_86, %c0_87] : memref<2x49xf32, #tpu.memory_space<smem>>
    %225 = vector.broadcast %224 : f32 to vector<2x256xf32>
    %226 = arith.mulf %223, %225 : vector<2x256xf32>
    %c51_i32_88 = arith.constant 51 : i32
    %227 = tpu.dynamic_rotate %93 by %c51_i32_88 dim 1 : vector<2x256xf32>, i32 -> vector<2x256xf32>
    %c1_89 = arith.constant 1 : index
    %c0_90 = arith.constant 0 : index
    %228 = memref.load %arg5[%c1_89, %c0_90] : memref<2x49xf32, #tpu.memory_space<smem>>
    %229 = vector.broadcast %228 : f32 to vector<2x256xf32>
    %230 = arith.mulf %227, %229 : vector<2x256xf32>
    %231 = arith.addf %226, %230 : vector<2x256xf32>
    %232 = arith.andi %104, %167 : vector<1x256xi1>
    %cst_91 = arith.constant 0.000000e+00 : f32
    %233 = vector.shape_cast %232 : vector<1x256xi1> to vector<1x256xi1>
    %234 = vector.broadcast %233 : vector<1x256xi1> to vector<2x256xi1>
    %235 = vector.broadcast %cst_91 : f32 to vector<2x256xf32>
    %236 = arith.select %234, %231, %235 : vector<2x256xi1>, vector<2x256xf32>
    %237 = arith.addf %222, %236 : vector<2x256xf32>
    %c50_i32 = arith.constant 50 : i32
    %238 = tpu.dynamic_rotate %85 by %c50_i32 dim 1 : vector<2x256xf32>, i32 -> vector<2x256xf32>
    %c0_92 = arith.constant 0 : index
    %c1_93 = arith.constant 1 : index
    %239 = memref.load %arg5[%c0_92, %c1_93] : memref<2x49xf32, #tpu.memory_space<smem>>
    %240 = vector.broadcast %239 : f32 to vector<2x256xf32>
    %241 = arith.mulf %238, %240 : vector<2x256xf32>
    %c50_i32_94 = arith.constant 50 : i32
    %242 = tpu.dynamic_rotate %93 by %c50_i32_94 dim 1 : vector<2x256xf32>, i32 -> vector<2x256xf32>
    %c1_95 = arith.constant 1 : index
    %c1_96 = arith.constant 1 : index
    %243 = memref.load %arg5[%c1_95, %c1_96] : memref<2x49xf32, #tpu.memory_space<smem>>
    %244 = vector.broadcast %243 : f32 to vector<2x256xf32>
    %245 = arith.mulf %242, %244 : vector<2x256xf32>
    %246 = arith.addf %241, %245 : vector<2x256xf32>
    %247 = arith.andi %104, %176 : vector<1x256xi1>
    %cst_97 = arith.constant 0.000000e+00 : f32
    %248 = vector.shape_cast %247 : vector<1x256xi1> to vector<1x256xi1>
    %249 = vector.broadcast %248 : vector<1x256xi1> to vector<2x256xi1>
    %250 = vector.broadcast %cst_97 : f32 to vector<2x256xf32>
    %251 = arith.select %249, %246, %250 : vector<2x256xi1>, vector<2x256xf32>
    %252 = arith.addf %237, %251 : vector<2x256xf32>
    %c49_i32 = arith.constant 49 : i32
    %253 = tpu.dynamic_rotate %85 by %c49_i32 dim 1 : vector<2x256xf32>, i32 -> vector<2x256xf32>
    %c0_98 = arith.constant 0 : index
    %c2 = arith.constant 2 : index
    %254 = memref.load %arg5[%c0_98, %c2] : memref<2x49xf32, #tpu.memory_space<smem>>
    %255 = vector.broadcast %254 : f32 to vector<2x256xf32>
    %256 = arith.mulf %253, %255 : vector<2x256xf32>
    %c49_i32_99 = arith.constant 49 : i32
    %257 = tpu.dynamic_rotate %93 by %c49_i32_99 dim 1 : vector<2x256xf32>, i32 -> vector<2x256xf32>
    %c1_100 = arith.constant 1 : index
    %c2_101 = arith.constant 2 : index
    %258 = memref.load %arg5[%c1_100, %c2_101] : memref<2x49xf32, #tpu.memory_space<smem>>
    %259 = vector.broadcast %258 : f32 to vector<2x256xf32>
    %260 = arith.mulf %257, %259 : vector<2x256xf32>
    %261 = arith.addf %256, %260 : vector<2x256xf32>
    %262 = arith.andi %104, %185 : vector<1x256xi1>
    %cst_102 = arith.constant 0.000000e+00 : f32
    %263 = vector.shape_cast %262 : vector<1x256xi1> to vector<1x256xi1>
    %264 = vector.broadcast %263 : vector<1x256xi1> to vector<2x256xi1>
    %265 = vector.broadcast %cst_102 : f32 to vector<2x256xf32>
    %266 = arith.select %264, %261, %265 : vector<2x256xi1>, vector<2x256xf32>
    %267 = arith.addf %252, %266 : vector<2x256xf32>
    %c48_i32 = arith.constant 48 : i32
    %268 = tpu.dynamic_rotate %85 by %c48_i32 dim 1 : vector<2x256xf32>, i32 -> vector<2x256xf32>
    %c0_103 = arith.constant 0 : index
    %c3 = arith.constant 3 : index
    %269 = memref.load %arg5[%c0_103, %c3] : memref<2x49xf32, #tpu.memory_space<smem>>
    %270 = vector.broadcast %269 : f32 to vector<2x256xf32>
    %271 = arith.mulf %268, %270 : vector<2x256xf32>
    %c48_i32_104 = arith.constant 48 : i32
    %272 = tpu.dynamic_rotate %93 by %c48_i32_104 dim 1 : vector<2x256xf32>, i32 -> vector<2x256xf32>
    %c1_105 = arith.constant 1 : index
    %c3_106 = arith.constant 3 : index
    %273 = memref.load %arg5[%c1_105, %c3_106] : memref<2x49xf32, #tpu.memory_space<smem>>
    %274 = vector.broadcast %273 : f32 to vector<2x256xf32>
    %275 = arith.mulf %272, %274 : vector<2x256xf32>
    %276 = arith.addf %271, %275 : vector<2x256xf32>
    %277 = arith.andi %104, %194 : vector<1x256xi1>
    %cst_107 = arith.constant 0.000000e+00 : f32
    %278 = vector.shape_cast %277 : vector<1x256xi1> to vector<1x256xi1>
    %279 = vector.broadcast %278 : vector<1x256xi1> to vector<2x256xi1>
    %280 = vector.broadcast %cst_107 : f32 to vector<2x256xf32>
    %281 = arith.select %279, %276, %280 : vector<2x256xi1>, vector<2x256xf32>
    %282 = arith.addf %267, %281 : vector<2x256xf32>
    %c47_i32 = arith.constant 47 : i32
    %283 = tpu.dynamic_rotate %85 by %c47_i32 dim 1 : vector<2x256xf32>, i32 -> vector<2x256xf32>
    %c0_108 = arith.constant 0 : index
    %c4 = arith.constant 4 : index
    %284 = memref.load %arg5[%c0_108, %c4] : memref<2x49xf32, #tpu.memory_space<smem>>
    %285 = vector.broadcast %284 : f32 to vector<2x256xf32>
    %286 = arith.mulf %283, %285 : vector<2x256xf32>
    %c47_i32_109 = arith.constant 47 : i32
    %287 = tpu.dynamic_rotate %93 by %c47_i32_109 dim 1 : vector<2x256xf32>, i32 -> vector<2x256xf32>
    %c1_110 = arith.constant 1 : index
    %c4_111 = arith.constant 4 : index
    %288 = memref.load %arg5[%c1_110, %c4_111] : memref<2x49xf32, #tpu.memory_space<smem>>
    %289 = vector.broadcast %288 : f32 to vector<2x256xf32>
    %290 = arith.mulf %287, %289 : vector<2x256xf32>
    %291 = arith.addf %286, %290 : vector<2x256xf32>
    %292 = arith.andi %104, %203 : vector<1x256xi1>
    %cst_112 = arith.constant 0.000000e+00 : f32
    %293 = vector.shape_cast %292 : vector<1x256xi1> to vector<1x256xi1>
    %294 = vector.broadcast %293 : vector<1x256xi1> to vector<2x256xi1>
    %295 = vector.broadcast %cst_112 : f32 to vector<2x256xf32>
    %296 = arith.select %294, %291, %295 : vector<2x256xi1>, vector<2x256xf32>
    %297 = arith.addf %282, %296 : vector<2x256xf32>
    %c46_i32 = arith.constant 46 : i32
    %298 = tpu.dynamic_rotate %85 by %c46_i32 dim 1 : vector<2x256xf32>, i32 -> vector<2x256xf32>
    %c0_113 = arith.constant 0 : index
    %c5 = arith.constant 5 : index
    %299 = memref.load %arg5[%c0_113, %c5] : memref<2x49xf32, #tpu.memory_space<smem>>
    %300 = vector.broadcast %299 : f32 to vector<2x256xf32>
    %301 = arith.mulf %298, %300 : vector<2x256xf32>
    %c46_i32_114 = arith.constant 46 : i32
    %302 = tpu.dynamic_rotate %93 by %c46_i32_114 dim 1 : vector<2x256xf32>, i32 -> vector<2x256xf32>
    %c1_115 = arith.constant 1 : index
    %c5_116 = arith.constant 5 : index
    %303 = memref.load %arg5[%c1_115, %c5_116] : memref<2x49xf32, #tpu.memory_space<smem>>
    %304 = vector.broadcast %303 : f32 to vector<2x256xf32>
    %305 = arith.mulf %302, %304 : vector<2x256xf32>
    %306 = arith.addf %301, %305 : vector<2x256xf32>
    %307 = arith.andi %104, %212 : vector<1x256xi1>
    %cst_117 = arith.constant 0.000000e+00 : f32
    %308 = vector.shape_cast %307 : vector<1x256xi1> to vector<1x256xi1>
    %309 = vector.broadcast %308 : vector<1x256xi1> to vector<2x256xi1>
    %310 = vector.broadcast %cst_117 : f32 to vector<2x256xf32>
    %311 = arith.select %309, %306, %310 : vector<2x256xi1>, vector<2x256xf32>
    %312 = arith.addf %297, %311 : vector<2x256xf32>
    %c45_i32 = arith.constant 45 : i32
    %313 = tpu.dynamic_rotate %85 by %c45_i32 dim 1 : vector<2x256xf32>, i32 -> vector<2x256xf32>
    %c0_118 = arith.constant 0 : index
    %c6 = arith.constant 6 : index
    %314 = memref.load %arg5[%c0_118, %c6] : memref<2x49xf32, #tpu.memory_space<smem>>
    %315 = vector.broadcast %314 : f32 to vector<2x256xf32>
    %316 = arith.mulf %313, %315 : vector<2x256xf32>
    %c45_i32_119 = arith.constant 45 : i32
    %317 = tpu.dynamic_rotate %93 by %c45_i32_119 dim 1 : vector<2x256xf32>, i32 -> vector<2x256xf32>
    %c1_120 = arith.constant 1 : index
    %c6_121 = arith.constant 6 : index
    %318 = memref.load %arg5[%c1_120, %c6_121] : memref<2x49xf32, #tpu.memory_space<smem>>
    %319 = vector.broadcast %318 : f32 to vector<2x256xf32>
    %320 = arith.mulf %317, %319 : vector<2x256xf32>
    %321 = arith.addf %316, %320 : vector<2x256xf32>
    %322 = arith.andi %104, %221 : vector<1x256xi1>
    %cst_122 = arith.constant 0.000000e+00 : f32
    %323 = vector.shape_cast %322 : vector<1x256xi1> to vector<1x256xi1>
    %324 = vector.broadcast %323 : vector<1x256xi1> to vector<2x256xi1>
    %325 = vector.broadcast %cst_122 : f32 to vector<2x256xf32>
    %326 = arith.select %324, %321, %325 : vector<2x256xi1>, vector<2x256xf32>
    %327 = arith.addf %312, %326 : vector<2x256xf32>
    %c35_i32 = arith.constant 35 : i32
    %328 = tpu.dynamic_rotate %85 by %c35_i32 dim 1 : vector<2x256xf32>, i32 -> vector<2x256xf32>
    %c0_123 = arith.constant 0 : index
    %c7 = arith.constant 7 : index
    %329 = memref.load %arg5[%c0_123, %c7] : memref<2x49xf32, #tpu.memory_space<smem>>
    %330 = vector.broadcast %329 : f32 to vector<2x256xf32>
    %331 = arith.mulf %328, %330 : vector<2x256xf32>
    %c35_i32_124 = arith.constant 35 : i32
    %332 = tpu.dynamic_rotate %93 by %c35_i32_124 dim 1 : vector<2x256xf32>, i32 -> vector<2x256xf32>
    %c1_125 = arith.constant 1 : index
    %c7_126 = arith.constant 7 : index
    %333 = memref.load %arg5[%c1_125, %c7_126] : memref<2x49xf32, #tpu.memory_space<smem>>
    %334 = vector.broadcast %333 : f32 to vector<2x256xf32>
    %335 = arith.mulf %332, %334 : vector<2x256xf32>
    %336 = arith.addf %331, %335 : vector<2x256xf32>
    %337 = arith.andi %113, %167 : vector<1x256xi1>
    %cst_127 = arith.constant 0.000000e+00 : f32
    %338 = vector.shape_cast %337 : vector<1x256xi1> to vector<1x256xi1>
    %339 = vector.broadcast %338 : vector<1x256xi1> to vector<2x256xi1>
    %340 = vector.broadcast %cst_127 : f32 to vector<2x256xf32>
    %341 = arith.select %339, %336, %340 : vector<2x256xi1>, vector<2x256xf32>
    %342 = arith.addf %327, %341 : vector<2x256xf32>
    %c34_i32 = arith.constant 34 : i32
    %343 = tpu.dynamic_rotate %85 by %c34_i32 dim 1 : vector<2x256xf32>, i32 -> vector<2x256xf32>
    %c0_128 = arith.constant 0 : index
    %c8 = arith.constant 8 : index
    %344 = memref.load %arg5[%c0_128, %c8] : memref<2x49xf32, #tpu.memory_space<smem>>
    %345 = vector.broadcast %344 : f32 to vector<2x256xf32>
    %346 = arith.mulf %343, %345 : vector<2x256xf32>
    %c34_i32_129 = arith.constant 34 : i32
    %347 = tpu.dynamic_rotate %93 by %c34_i32_129 dim 1 : vector<2x256xf32>, i32 -> vector<2x256xf32>
    %c1_130 = arith.constant 1 : index
    %c8_131 = arith.constant 8 : index
    %348 = memref.load %arg5[%c1_130, %c8_131] : memref<2x49xf32, #tpu.memory_space<smem>>
    %349 = vector.broadcast %348 : f32 to vector<2x256xf32>
    %350 = arith.mulf %347, %349 : vector<2x256xf32>
    %351 = arith.addf %346, %350 : vector<2x256xf32>
    %352 = arith.andi %113, %176 : vector<1x256xi1>
    %cst_132 = arith.constant 0.000000e+00 : f32
    %353 = vector.shape_cast %352 : vector<1x256xi1> to vector<1x256xi1>
    %354 = vector.broadcast %353 : vector<1x256xi1> to vector<2x256xi1>
    %355 = vector.broadcast %cst_132 : f32 to vector<2x256xf32>
    %356 = arith.select %354, %351, %355 : vector<2x256xi1>, vector<2x256xf32>
    %357 = arith.addf %342, %356 : vector<2x256xf32>
    %c33_i32 = arith.constant 33 : i32
    %358 = tpu.dynamic_rotate %85 by %c33_i32 dim 1 : vector<2x256xf32>, i32 -> vector<2x256xf32>
    %c0_133 = arith.constant 0 : index
    %c9 = arith.constant 9 : index
    %359 = memref.load %arg5[%c0_133, %c9] : memref<2x49xf32, #tpu.memory_space<smem>>
    %360 = vector.broadcast %359 : f32 to vector<2x256xf32>
    %361 = arith.mulf %358, %360 : vector<2x256xf32>
    %c33_i32_134 = arith.constant 33 : i32
    %362 = tpu.dynamic_rotate %93 by %c33_i32_134 dim 1 : vector<2x256xf32>, i32 -> vector<2x256xf32>
    %c1_135 = arith.constant 1 : index
    %c9_136 = arith.constant 9 : index
    %363 = memref.load %arg5[%c1_135, %c9_136] : memref<2x49xf32, #tpu.memory_space<smem>>
    %364 = vector.broadcast %363 : f32 to vector<2x256xf32>
    %365 = arith.mulf %362, %364 : vector<2x256xf32>
    %366 = arith.addf %361, %365 : vector<2x256xf32>
    %367 = arith.andi %113, %185 : vector<1x256xi1>
    %cst_137 = arith.constant 0.000000e+00 : f32
    %368 = vector.shape_cast %367 : vector<1x256xi1> to vector<1x256xi1>
    %369 = vector.broadcast %368 : vector<1x256xi1> to vector<2x256xi1>
    %370 = vector.broadcast %cst_137 : f32 to vector<2x256xf32>
    %371 = arith.select %369, %366, %370 : vector<2x256xi1>, vector<2x256xf32>
    %372 = arith.addf %357, %371 : vector<2x256xf32>
    %c32_i32 = arith.constant 32 : i32
    %373 = tpu.dynamic_rotate %85 by %c32_i32 dim 1 : vector<2x256xf32>, i32 -> vector<2x256xf32>
    %c0_138 = arith.constant 0 : index
    %c10 = arith.constant 10 : index
    %374 = memref.load %arg5[%c0_138, %c10] : memref<2x49xf32, #tpu.memory_space<smem>>
    %375 = vector.broadcast %374 : f32 to vector<2x256xf32>
    %376 = arith.mulf %373, %375 : vector<2x256xf32>
    %c32_i32_139 = arith.constant 32 : i32
    %377 = tpu.dynamic_rotate %93 by %c32_i32_139 dim 1 : vector<2x256xf32>, i32 -> vector<2x256xf32>
    %c1_140 = arith.constant 1 : index
    %c10_141 = arith.constant 10 : index
    %378 = memref.load %arg5[%c1_140, %c10_141] : memref<2x49xf32, #tpu.memory_space<smem>>
    %379 = vector.broadcast %378 : f32 to vector<2x256xf32>
    %380 = arith.mulf %377, %379 : vector<2x256xf32>
    %381 = arith.addf %376, %380 : vector<2x256xf32>
    %382 = arith.andi %113, %194 : vector<1x256xi1>
    %cst_142 = arith.constant 0.000000e+00 : f32
    %383 = vector.shape_cast %382 : vector<1x256xi1> to vector<1x256xi1>
    %384 = vector.broadcast %383 : vector<1x256xi1> to vector<2x256xi1>
    %385 = vector.broadcast %cst_142 : f32 to vector<2x256xf32>
    %386 = arith.select %384, %381, %385 : vector<2x256xi1>, vector<2x256xf32>
    %387 = arith.addf %372, %386 : vector<2x256xf32>
    %c31_i32 = arith.constant 31 : i32
    %388 = tpu.dynamic_rotate %85 by %c31_i32 dim 1 : vector<2x256xf32>, i32 -> vector<2x256xf32>
    %c0_143 = arith.constant 0 : index
    %c11 = arith.constant 11 : index
    %389 = memref.load %arg5[%c0_143, %c11] : memref<2x49xf32, #tpu.memory_space<smem>>
    %390 = vector.broadcast %389 : f32 to vector<2x256xf32>
    %391 = arith.mulf %388, %390 : vector<2x256xf32>
    %c31_i32_144 = arith.constant 31 : i32
    %392 = tpu.dynamic_rotate %93 by %c31_i32_144 dim 1 : vector<2x256xf32>, i32 -> vector<2x256xf32>
    %c1_145 = arith.constant 1 : index
    %c11_146 = arith.constant 11 : index
    %393 = memref.load %arg5[%c1_145, %c11_146] : memref<2x49xf32, #tpu.memory_space<smem>>
    %394 = vector.broadcast %393 : f32 to vector<2x256xf32>
    %395 = arith.mulf %392, %394 : vector<2x256xf32>
    %396 = arith.addf %391, %395 : vector<2x256xf32>
    %397 = arith.andi %113, %203 : vector<1x256xi1>
    %cst_147 = arith.constant 0.000000e+00 : f32
    %398 = vector.shape_cast %397 : vector<1x256xi1> to vector<1x256xi1>
    %399 = vector.broadcast %398 : vector<1x256xi1> to vector<2x256xi1>
    %400 = vector.broadcast %cst_147 : f32 to vector<2x256xf32>
    %401 = arith.select %399, %396, %400 : vector<2x256xi1>, vector<2x256xf32>
    %402 = arith.addf %387, %401 : vector<2x256xf32>
    %c30_i32 = arith.constant 30 : i32
    %403 = tpu.dynamic_rotate %85 by %c30_i32 dim 1 : vector<2x256xf32>, i32 -> vector<2x256xf32>
    %c0_148 = arith.constant 0 : index
    %c12 = arith.constant 12 : index
    %404 = memref.load %arg5[%c0_148, %c12] : memref<2x49xf32, #tpu.memory_space<smem>>
    %405 = vector.broadcast %404 : f32 to vector<2x256xf32>
    %406 = arith.mulf %403, %405 : vector<2x256xf32>
    %c30_i32_149 = arith.constant 30 : i32
    %407 = tpu.dynamic_rotate %93 by %c30_i32_149 dim 1 : vector<2x256xf32>, i32 -> vector<2x256xf32>
    %c1_150 = arith.constant 1 : index
    %c12_151 = arith.constant 12 : index
    %408 = memref.load %arg5[%c1_150, %c12_151] : memref<2x49xf32, #tpu.memory_space<smem>>
    %409 = vector.broadcast %408 : f32 to vector<2x256xf32>
    %410 = arith.mulf %407, %409 : vector<2x256xf32>
    %411 = arith.addf %406, %410 : vector<2x256xf32>
    %412 = arith.andi %113, %212 : vector<1x256xi1>
    %cst_152 = arith.constant 0.000000e+00 : f32
    %413 = vector.shape_cast %412 : vector<1x256xi1> to vector<1x256xi1>
    %414 = vector.broadcast %413 : vector<1x256xi1> to vector<2x256xi1>
    %415 = vector.broadcast %cst_152 : f32 to vector<2x256xf32>
    %416 = arith.select %414, %411, %415 : vector<2x256xi1>, vector<2x256xf32>
    %417 = arith.addf %402, %416 : vector<2x256xf32>
    %c29_i32 = arith.constant 29 : i32
    %418 = tpu.dynamic_rotate %85 by %c29_i32 dim 1 : vector<2x256xf32>, i32 -> vector<2x256xf32>
    %c0_153 = arith.constant 0 : index
    %c13 = arith.constant 13 : index
    %419 = memref.load %arg5[%c0_153, %c13] : memref<2x49xf32, #tpu.memory_space<smem>>
    %420 = vector.broadcast %419 : f32 to vector<2x256xf32>
    %421 = arith.mulf %418, %420 : vector<2x256xf32>
    %c29_i32_154 = arith.constant 29 : i32
    %422 = tpu.dynamic_rotate %93 by %c29_i32_154 dim 1 : vector<2x256xf32>, i32 -> vector<2x256xf32>
    %c1_155 = arith.constant 1 : index
    %c13_156 = arith.constant 13 : index
    %423 = memref.load %arg5[%c1_155, %c13_156] : memref<2x49xf32, #tpu.memory_space<smem>>
    %424 = vector.broadcast %423 : f32 to vector<2x256xf32>
    %425 = arith.mulf %422, %424 : vector<2x256xf32>
    %426 = arith.addf %421, %425 : vector<2x256xf32>
    %427 = arith.andi %113, %221 : vector<1x256xi1>
    %cst_157 = arith.constant 0.000000e+00 : f32
    %428 = vector.shape_cast %427 : vector<1x256xi1> to vector<1x256xi1>
    %429 = vector.broadcast %428 : vector<1x256xi1> to vector<2x256xi1>
    %430 = vector.broadcast %cst_157 : f32 to vector<2x256xf32>
    %431 = arith.select %429, %426, %430 : vector<2x256xi1>, vector<2x256xf32>
    %432 = arith.addf %417, %431 : vector<2x256xf32>
    %c19_i32 = arith.constant 19 : i32
    %433 = tpu.dynamic_rotate %85 by %c19_i32 dim 1 : vector<2x256xf32>, i32 -> vector<2x256xf32>
    %c0_158 = arith.constant 0 : index
    %c14 = arith.constant 14 : index
    %434 = memref.load %arg5[%c0_158, %c14] : memref<2x49xf32, #tpu.memory_space<smem>>
    %435 = vector.broadcast %434 : f32 to vector<2x256xf32>
    %436 = arith.mulf %433, %435 : vector<2x256xf32>
    %c19_i32_159 = arith.constant 19 : i32
    %437 = tpu.dynamic_rotate %93 by %c19_i32_159 dim 1 : vector<2x256xf32>, i32 -> vector<2x256xf32>
    %c1_160 = arith.constant 1 : index
    %c14_161 = arith.constant 14 : index
    %438 = memref.load %arg5[%c1_160, %c14_161] : memref<2x49xf32, #tpu.memory_space<smem>>
    %439 = vector.broadcast %438 : f32 to vector<2x256xf32>
    %440 = arith.mulf %437, %439 : vector<2x256xf32>
    %441 = arith.addf %436, %440 : vector<2x256xf32>
    %442 = arith.andi %122, %167 : vector<1x256xi1>
    %cst_162 = arith.constant 0.000000e+00 : f32
    %443 = vector.shape_cast %442 : vector<1x256xi1> to vector<1x256xi1>
    %444 = vector.broadcast %443 : vector<1x256xi1> to vector<2x256xi1>
    %445 = vector.broadcast %cst_162 : f32 to vector<2x256xf32>
    %446 = arith.select %444, %441, %445 : vector<2x256xi1>, vector<2x256xf32>
    %447 = arith.addf %432, %446 : vector<2x256xf32>
    %c18_i32 = arith.constant 18 : i32
    %448 = tpu.dynamic_rotate %85 by %c18_i32 dim 1 : vector<2x256xf32>, i32 -> vector<2x256xf32>
    %c0_163 = arith.constant 0 : index
    %c15 = arith.constant 15 : index
    %449 = memref.load %arg5[%c0_163, %c15] : memref<2x49xf32, #tpu.memory_space<smem>>
    %450 = vector.broadcast %449 : f32 to vector<2x256xf32>
    %451 = arith.mulf %448, %450 : vector<2x256xf32>
    %c18_i32_164 = arith.constant 18 : i32
    %452 = tpu.dynamic_rotate %93 by %c18_i32_164 dim 1 : vector<2x256xf32>, i32 -> vector<2x256xf32>
    %c1_165 = arith.constant 1 : index
    %c15_166 = arith.constant 15 : index
    %453 = memref.load %arg5[%c1_165, %c15_166] : memref<2x49xf32, #tpu.memory_space<smem>>
    %454 = vector.broadcast %453 : f32 to vector<2x256xf32>
    %455 = arith.mulf %452, %454 : vector<2x256xf32>
    %456 = arith.addf %451, %455 : vector<2x256xf32>
    %457 = arith.andi %122, %176 : vector<1x256xi1>
    %cst_167 = arith.constant 0.000000e+00 : f32
    %458 = vector.shape_cast %457 : vector<1x256xi1> to vector<1x256xi1>
    %459 = vector.broadcast %458 : vector<1x256xi1> to vector<2x256xi1>
    %460 = vector.broadcast %cst_167 : f32 to vector<2x256xf32>
    %461 = arith.select %459, %456, %460 : vector<2x256xi1>, vector<2x256xf32>
    %462 = arith.addf %447, %461 : vector<2x256xf32>
    %c17_i32 = arith.constant 17 : i32
    %463 = tpu.dynamic_rotate %85 by %c17_i32 dim 1 : vector<2x256xf32>, i32 -> vector<2x256xf32>
    %c0_168 = arith.constant 0 : index
    %c16 = arith.constant 16 : index
    %464 = memref.load %arg5[%c0_168, %c16] : memref<2x49xf32, #tpu.memory_space<smem>>
    %465 = vector.broadcast %464 : f32 to vector<2x256xf32>
    %466 = arith.mulf %463, %465 : vector<2x256xf32>
    %c17_i32_169 = arith.constant 17 : i32
    %467 = tpu.dynamic_rotate %93 by %c17_i32_169 dim 1 : vector<2x256xf32>, i32 -> vector<2x256xf32>
    %c1_170 = arith.constant 1 : index
    %c16_171 = arith.constant 16 : index
    %468 = memref.load %arg5[%c1_170, %c16_171] : memref<2x49xf32, #tpu.memory_space<smem>>
    %469 = vector.broadcast %468 : f32 to vector<2x256xf32>
    %470 = arith.mulf %467, %469 : vector<2x256xf32>
    %471 = arith.addf %466, %470 : vector<2x256xf32>
    %472 = arith.andi %122, %185 : vector<1x256xi1>
    %cst_172 = arith.constant 0.000000e+00 : f32
    %473 = vector.shape_cast %472 : vector<1x256xi1> to vector<1x256xi1>
    %474 = vector.broadcast %473 : vector<1x256xi1> to vector<2x256xi1>
    %475 = vector.broadcast %cst_172 : f32 to vector<2x256xf32>
    %476 = arith.select %474, %471, %475 : vector<2x256xi1>, vector<2x256xf32>
    %477 = arith.addf %462, %476 : vector<2x256xf32>
    %c16_i32_173 = arith.constant 16 : i32
    %478 = tpu.dynamic_rotate %85 by %c16_i32_173 dim 1 : vector<2x256xf32>, i32 -> vector<2x256xf32>
    %c0_174 = arith.constant 0 : index
    %c17 = arith.constant 17 : index
    %479 = memref.load %arg5[%c0_174, %c17] : memref<2x49xf32, #tpu.memory_space<smem>>
    %480 = vector.broadcast %479 : f32 to vector<2x256xf32>
    %481 = arith.mulf %478, %480 : vector<2x256xf32>
    %c16_i32_175 = arith.constant 16 : i32
    %482 = tpu.dynamic_rotate %93 by %c16_i32_175 dim 1 : vector<2x256xf32>, i32 -> vector<2x256xf32>
    %c1_176 = arith.constant 1 : index
    %c17_177 = arith.constant 17 : index
    %483 = memref.load %arg5[%c1_176, %c17_177] : memref<2x49xf32, #tpu.memory_space<smem>>
    %484 = vector.broadcast %483 : f32 to vector<2x256xf32>
    %485 = arith.mulf %482, %484 : vector<2x256xf32>
    %486 = arith.addf %481, %485 : vector<2x256xf32>
    %487 = arith.andi %122, %194 : vector<1x256xi1>
    %cst_178 = arith.constant 0.000000e+00 : f32
    %488 = vector.shape_cast %487 : vector<1x256xi1> to vector<1x256xi1>
    %489 = vector.broadcast %488 : vector<1x256xi1> to vector<2x256xi1>
    %490 = vector.broadcast %cst_178 : f32 to vector<2x256xf32>
    %491 = arith.select %489, %486, %490 : vector<2x256xi1>, vector<2x256xf32>
    %492 = arith.addf %477, %491 : vector<2x256xf32>
    %c15_i32 = arith.constant 15 : i32
    %493 = tpu.dynamic_rotate %85 by %c15_i32 dim 1 : vector<2x256xf32>, i32 -> vector<2x256xf32>
    %c0_179 = arith.constant 0 : index
    %c18 = arith.constant 18 : index
    %494 = memref.load %arg5[%c0_179, %c18] : memref<2x49xf32, #tpu.memory_space<smem>>
    %495 = vector.broadcast %494 : f32 to vector<2x256xf32>
    %496 = arith.mulf %493, %495 : vector<2x256xf32>
    %c15_i32_180 = arith.constant 15 : i32
    %497 = tpu.dynamic_rotate %93 by %c15_i32_180 dim 1 : vector<2x256xf32>, i32 -> vector<2x256xf32>
    %c1_181 = arith.constant 1 : index
    %c18_182 = arith.constant 18 : index
    %498 = memref.load %arg5[%c1_181, %c18_182] : memref<2x49xf32, #tpu.memory_space<smem>>
    %499 = vector.broadcast %498 : f32 to vector<2x256xf32>
    %500 = arith.mulf %497, %499 : vector<2x256xf32>
    %501 = arith.addf %496, %500 : vector<2x256xf32>
    %502 = arith.andi %122, %203 : vector<1x256xi1>
    %cst_183 = arith.constant 0.000000e+00 : f32
    %503 = vector.shape_cast %502 : vector<1x256xi1> to vector<1x256xi1>
    %504 = vector.broadcast %503 : vector<1x256xi1> to vector<2x256xi1>
    %505 = vector.broadcast %cst_183 : f32 to vector<2x256xf32>
    %506 = arith.select %504, %501, %505 : vector<2x256xi1>, vector<2x256xf32>
    %507 = arith.addf %492, %506 : vector<2x256xf32>
    %c14_i32 = arith.constant 14 : i32
    %508 = tpu.dynamic_rotate %85 by %c14_i32 dim 1 : vector<2x256xf32>, i32 -> vector<2x256xf32>
    %c0_184 = arith.constant 0 : index
    %c19 = arith.constant 19 : index
    %509 = memref.load %arg5[%c0_184, %c19] : memref<2x49xf32, #tpu.memory_space<smem>>
    %510 = vector.broadcast %509 : f32 to vector<2x256xf32>
    %511 = arith.mulf %508, %510 : vector<2x256xf32>
    %c14_i32_185 = arith.constant 14 : i32
    %512 = tpu.dynamic_rotate %93 by %c14_i32_185 dim 1 : vector<2x256xf32>, i32 -> vector<2x256xf32>
    %c1_186 = arith.constant 1 : index
    %c19_187 = arith.constant 19 : index
    %513 = memref.load %arg5[%c1_186, %c19_187] : memref<2x49xf32, #tpu.memory_space<smem>>
    %514 = vector.broadcast %513 : f32 to vector<2x256xf32>
    %515 = arith.mulf %512, %514 : vector<2x256xf32>
    %516 = arith.addf %511, %515 : vector<2x256xf32>
    %517 = arith.andi %122, %212 : vector<1x256xi1>
    %cst_188 = arith.constant 0.000000e+00 : f32
    %518 = vector.shape_cast %517 : vector<1x256xi1> to vector<1x256xi1>
    %519 = vector.broadcast %518 : vector<1x256xi1> to vector<2x256xi1>
    %520 = vector.broadcast %cst_188 : f32 to vector<2x256xf32>
    %521 = arith.select %519, %516, %520 : vector<2x256xi1>, vector<2x256xf32>
    %522 = arith.addf %507, %521 : vector<2x256xf32>
    %c13_i32 = arith.constant 13 : i32
    %523 = tpu.dynamic_rotate %85 by %c13_i32 dim 1 : vector<2x256xf32>, i32 -> vector<2x256xf32>
    %c0_189 = arith.constant 0 : index
    %c20 = arith.constant 20 : index
    %524 = memref.load %arg5[%c0_189, %c20] : memref<2x49xf32, #tpu.memory_space<smem>>
    %525 = vector.broadcast %524 : f32 to vector<2x256xf32>
    %526 = arith.mulf %523, %525 : vector<2x256xf32>
    %c13_i32_190 = arith.constant 13 : i32
    %527 = tpu.dynamic_rotate %93 by %c13_i32_190 dim 1 : vector<2x256xf32>, i32 -> vector<2x256xf32>
    %c1_191 = arith.constant 1 : index
    %c20_192 = arith.constant 20 : index
    %528 = memref.load %arg5[%c1_191, %c20_192] : memref<2x49xf32, #tpu.memory_space<smem>>
    %529 = vector.broadcast %528 : f32 to vector<2x256xf32>
    %530 = arith.mulf %527, %529 : vector<2x256xf32>
    %531 = arith.addf %526, %530 : vector<2x256xf32>
    %532 = arith.andi %122, %221 : vector<1x256xi1>
    %cst_193 = arith.constant 0.000000e+00 : f32
    %533 = vector.shape_cast %532 : vector<1x256xi1> to vector<1x256xi1>
    %534 = vector.broadcast %533 : vector<1x256xi1> to vector<2x256xi1>
    %535 = vector.broadcast %cst_193 : f32 to vector<2x256xf32>
    %536 = arith.select %534, %531, %535 : vector<2x256xi1>, vector<2x256xf32>
    %537 = arith.addf %522, %536 : vector<2x256xf32>
    %c3_i32_194 = arith.constant 3 : i32
    %538 = tpu.dynamic_rotate %85 by %c3_i32_194 dim 1 : vector<2x256xf32>, i32 -> vector<2x256xf32>
    %c0_195 = arith.constant 0 : index
    %c21 = arith.constant 21 : index
    %539 = memref.load %arg5[%c0_195, %c21] : memref<2x49xf32, #tpu.memory_space<smem>>
    %540 = vector.broadcast %539 : f32 to vector<2x256xf32>
    %541 = arith.mulf %538, %540 : vector<2x256xf32>
    %c3_i32_196 = arith.constant 3 : i32
    %542 = tpu.dynamic_rotate %93 by %c3_i32_196 dim 1 : vector<2x256xf32>, i32 -> vector<2x256xf32>
    %c1_197 = arith.constant 1 : index
    %c21_198 = arith.constant 21 : index
    %543 = memref.load %arg5[%c1_197, %c21_198] : memref<2x49xf32, #tpu.memory_space<smem>>
    %544 = vector.broadcast %543 : f32 to vector<2x256xf32>
    %545 = arith.mulf %542, %544 : vector<2x256xf32>
    %546 = arith.addf %541, %545 : vector<2x256xf32>
    %547 = arith.andi %131, %167 : vector<1x256xi1>
    %cst_199 = arith.constant 0.000000e+00 : f32
    %548 = vector.shape_cast %547 : vector<1x256xi1> to vector<1x256xi1>
    %549 = vector.broadcast %548 : vector<1x256xi1> to vector<2x256xi1>
    %550 = vector.broadcast %cst_199 : f32 to vector<2x256xf32>
    %551 = arith.select %549, %546, %550 : vector<2x256xi1>, vector<2x256xf32>
    %552 = arith.addf %537, %551 : vector<2x256xf32>
    %c2_i32_200 = arith.constant 2 : i32
    %553 = tpu.dynamic_rotate %85 by %c2_i32_200 dim 1 : vector<2x256xf32>, i32 -> vector<2x256xf32>
    %c0_201 = arith.constant 0 : index
    %c22 = arith.constant 22 : index
    %554 = memref.load %arg5[%c0_201, %c22] : memref<2x49xf32, #tpu.memory_space<smem>>
    %555 = vector.broadcast %554 : f32 to vector<2x256xf32>
    %556 = arith.mulf %553, %555 : vector<2x256xf32>
    %c2_i32_202 = arith.constant 2 : i32
    %557 = tpu.dynamic_rotate %93 by %c2_i32_202 dim 1 : vector<2x256xf32>, i32 -> vector<2x256xf32>
    %c1_203 = arith.constant 1 : index
    %c22_204 = arith.constant 22 : index
    %558 = memref.load %arg5[%c1_203, %c22_204] : memref<2x49xf32, #tpu.memory_space<smem>>
    %559 = vector.broadcast %558 : f32 to vector<2x256xf32>
    %560 = arith.mulf %557, %559 : vector<2x256xf32>
    %561 = arith.addf %556, %560 : vector<2x256xf32>
    %562 = arith.andi %131, %176 : vector<1x256xi1>
    %cst_205 = arith.constant 0.000000e+00 : f32
    %563 = vector.shape_cast %562 : vector<1x256xi1> to vector<1x256xi1>
    %564 = vector.broadcast %563 : vector<1x256xi1> to vector<2x256xi1>
    %565 = vector.broadcast %cst_205 : f32 to vector<2x256xf32>
    %566 = arith.select %564, %561, %565 : vector<2x256xi1>, vector<2x256xf32>
    %567 = arith.addf %552, %566 : vector<2x256xf32>
    %c1_i32_206 = arith.constant 1 : i32
    %568 = tpu.dynamic_rotate %85 by %c1_i32_206 dim 1 : vector<2x256xf32>, i32 -> vector<2x256xf32>
    %c0_207 = arith.constant 0 : index
    %c23 = arith.constant 23 : index
    %569 = memref.load %arg5[%c0_207, %c23] : memref<2x49xf32, #tpu.memory_space<smem>>
    %570 = vector.broadcast %569 : f32 to vector<2x256xf32>
    %571 = arith.mulf %568, %570 : vector<2x256xf32>
    %c1_i32_208 = arith.constant 1 : i32
    %572 = tpu.dynamic_rotate %93 by %c1_i32_208 dim 1 : vector<2x256xf32>, i32 -> vector<2x256xf32>
    %c1_209 = arith.constant 1 : index
    %c23_210 = arith.constant 23 : index
    %573 = memref.load %arg5[%c1_209, %c23_210] : memref<2x49xf32, #tpu.memory_space<smem>>
    %574 = vector.broadcast %573 : f32 to vector<2x256xf32>
    %575 = arith.mulf %572, %574 : vector<2x256xf32>
    %576 = arith.addf %571, %575 : vector<2x256xf32>
    %577 = arith.andi %131, %185 : vector<1x256xi1>
    %cst_211 = arith.constant 0.000000e+00 : f32
    %578 = vector.shape_cast %577 : vector<1x256xi1> to vector<1x256xi1>
    %579 = vector.broadcast %578 : vector<1x256xi1> to vector<2x256xi1>
    %580 = vector.broadcast %cst_211 : f32 to vector<2x256xf32>
    %581 = arith.select %579, %576, %580 : vector<2x256xi1>, vector<2x256xf32>
    %582 = arith.addf %567, %581 : vector<2x256xf32>
    %c0_i32_212 = arith.constant 0 : i32
    %583 = tpu.dynamic_rotate %85 by %c0_i32_212 dim 1 : vector<2x256xf32>, i32 -> vector<2x256xf32>
    %c0_213 = arith.constant 0 : index
    %c24 = arith.constant 24 : index
    %584 = memref.load %arg5[%c0_213, %c24] : memref<2x49xf32, #tpu.memory_space<smem>>
    %585 = vector.broadcast %584 : f32 to vector<2x256xf32>
    %586 = arith.mulf %583, %585 : vector<2x256xf32>
    %c0_i32_214 = arith.constant 0 : i32
    %587 = tpu.dynamic_rotate %93 by %c0_i32_214 dim 1 : vector<2x256xf32>, i32 -> vector<2x256xf32>
    %c1_215 = arith.constant 1 : index
    %c24_216 = arith.constant 24 : index
    %588 = memref.load %arg5[%c1_215, %c24_216] : memref<2x49xf32, #tpu.memory_space<smem>>
    %589 = vector.broadcast %588 : f32 to vector<2x256xf32>
    %590 = arith.mulf %587, %589 : vector<2x256xf32>
    %591 = arith.addf %586, %590 : vector<2x256xf32>
    %592 = arith.andi %131, %194 : vector<1x256xi1>
    %cst_217 = arith.constant 0.000000e+00 : f32
    %593 = vector.shape_cast %592 : vector<1x256xi1> to vector<1x256xi1>
    %594 = vector.broadcast %593 : vector<1x256xi1> to vector<2x256xi1>
    %595 = vector.broadcast %cst_217 : f32 to vector<2x256xf32>
    %596 = arith.select %594, %591, %595 : vector<2x256xi1>, vector<2x256xf32>
    %597 = arith.addf %582, %596 : vector<2x256xf32>
    %c255_i32 = arith.constant 255 : i32
    %598 = tpu.dynamic_rotate %85 by %c255_i32 dim 1 : vector<2x256xf32>, i32 -> vector<2x256xf32>
    %c0_218 = arith.constant 0 : index
    %c25 = arith.constant 25 : index
    %599 = memref.load %arg5[%c0_218, %c25] : memref<2x49xf32, #tpu.memory_space<smem>>
    %600 = vector.broadcast %599 : f32 to vector<2x256xf32>
    %601 = arith.mulf %598, %600 : vector<2x256xf32>
    %c255_i32_219 = arith.constant 255 : i32
    %602 = tpu.dynamic_rotate %93 by %c255_i32_219 dim 1 : vector<2x256xf32>, i32 -> vector<2x256xf32>
    %c1_220 = arith.constant 1 : index
    %c25_221 = arith.constant 25 : index
    %603 = memref.load %arg5[%c1_220, %c25_221] : memref<2x49xf32, #tpu.memory_space<smem>>
    %604 = vector.broadcast %603 : f32 to vector<2x256xf32>
    %605 = arith.mulf %602, %604 : vector<2x256xf32>
    %606 = arith.addf %601, %605 : vector<2x256xf32>
    %607 = arith.andi %131, %203 : vector<1x256xi1>
    %cst_222 = arith.constant 0.000000e+00 : f32
    %608 = vector.shape_cast %607 : vector<1x256xi1> to vector<1x256xi1>
    %609 = vector.broadcast %608 : vector<1x256xi1> to vector<2x256xi1>
    %610 = vector.broadcast %cst_222 : f32 to vector<2x256xf32>
    %611 = arith.select %609, %606, %610 : vector<2x256xi1>, vector<2x256xf32>
    %612 = arith.addf %597, %611 : vector<2x256xf32>
    %c254_i32 = arith.constant 254 : i32
    %613 = tpu.dynamic_rotate %85 by %c254_i32 dim 1 : vector<2x256xf32>, i32 -> vector<2x256xf32>
    %c0_223 = arith.constant 0 : index
    %c26 = arith.constant 26 : index
    %614 = memref.load %arg5[%c0_223, %c26] : memref<2x49xf32, #tpu.memory_space<smem>>
    %615 = vector.broadcast %614 : f32 to vector<2x256xf32>
    %616 = arith.mulf %613, %615 : vector<2x256xf32>
    %c254_i32_224 = arith.constant 254 : i32
    %617 = tpu.dynamic_rotate %93 by %c254_i32_224 dim 1 : vector<2x256xf32>, i32 -> vector<2x256xf32>
    %c1_225 = arith.constant 1 : index
    %c26_226 = arith.constant 26 : index
    %618 = memref.load %arg5[%c1_225, %c26_226] : memref<2x49xf32, #tpu.memory_space<smem>>
    %619 = vector.broadcast %618 : f32 to vector<2x256xf32>
    %620 = arith.mulf %617, %619 : vector<2x256xf32>
    %621 = arith.addf %616, %620 : vector<2x256xf32>
    %622 = arith.andi %131, %212 : vector<1x256xi1>
    %cst_227 = arith.constant 0.000000e+00 : f32
    %623 = vector.shape_cast %622 : vector<1x256xi1> to vector<1x256xi1>
    %624 = vector.broadcast %623 : vector<1x256xi1> to vector<2x256xi1>
    %625 = vector.broadcast %cst_227 : f32 to vector<2x256xf32>
    %626 = arith.select %624, %621, %625 : vector<2x256xi1>, vector<2x256xf32>
    %627 = arith.addf %612, %626 : vector<2x256xf32>
    %c253_i32 = arith.constant 253 : i32
    %628 = tpu.dynamic_rotate %85 by %c253_i32 dim 1 : vector<2x256xf32>, i32 -> vector<2x256xf32>
    %c0_228 = arith.constant 0 : index
    %c27 = arith.constant 27 : index
    %629 = memref.load %arg5[%c0_228, %c27] : memref<2x49xf32, #tpu.memory_space<smem>>
    %630 = vector.broadcast %629 : f32 to vector<2x256xf32>
    %631 = arith.mulf %628, %630 : vector<2x256xf32>
    %c253_i32_229 = arith.constant 253 : i32
    %632 = tpu.dynamic_rotate %93 by %c253_i32_229 dim 1 : vector<2x256xf32>, i32 -> vector<2x256xf32>
    %c1_230 = arith.constant 1 : index
    %c27_231 = arith.constant 27 : index
    %633 = memref.load %arg5[%c1_230, %c27_231] : memref<2x49xf32, #tpu.memory_space<smem>>
    %634 = vector.broadcast %633 : f32 to vector<2x256xf32>
    %635 = arith.mulf %632, %634 : vector<2x256xf32>
    %636 = arith.addf %631, %635 : vector<2x256xf32>
    %637 = arith.andi %131, %221 : vector<1x256xi1>
    %cst_232 = arith.constant 0.000000e+00 : f32
    %638 = vector.shape_cast %637 : vector<1x256xi1> to vector<1x256xi1>
    %639 = vector.broadcast %638 : vector<1x256xi1> to vector<2x256xi1>
    %640 = vector.broadcast %cst_232 : f32 to vector<2x256xf32>
    %641 = arith.select %639, %636, %640 : vector<2x256xi1>, vector<2x256xf32>
    %642 = arith.addf %627, %641 : vector<2x256xf32>
    %c243_i32 = arith.constant 243 : i32
    %643 = tpu.dynamic_rotate %85 by %c243_i32 dim 1 : vector<2x256xf32>, i32 -> vector<2x256xf32>
    %c0_233 = arith.constant 0 : index
    %c28 = arith.constant 28 : index
    %644 = memref.load %arg5[%c0_233, %c28] : memref<2x49xf32, #tpu.memory_space<smem>>
    %645 = vector.broadcast %644 : f32 to vector<2x256xf32>
    %646 = arith.mulf %643, %645 : vector<2x256xf32>
    %c243_i32_234 = arith.constant 243 : i32
    %647 = tpu.dynamic_rotate %93 by %c243_i32_234 dim 1 : vector<2x256xf32>, i32 -> vector<2x256xf32>
    %c1_235 = arith.constant 1 : index
    %c28_236 = arith.constant 28 : index
    %648 = memref.load %arg5[%c1_235, %c28_236] : memref<2x49xf32, #tpu.memory_space<smem>>
    %649 = vector.broadcast %648 : f32 to vector<2x256xf32>
    %650 = arith.mulf %647, %649 : vector<2x256xf32>
    %651 = arith.addf %646, %650 : vector<2x256xf32>
    %652 = arith.andi %140, %167 : vector<1x256xi1>
    %cst_237 = arith.constant 0.000000e+00 : f32
    %653 = vector.shape_cast %652 : vector<1x256xi1> to vector<1x256xi1>
    %654 = vector.broadcast %653 : vector<1x256xi1> to vector<2x256xi1>
    %655 = vector.broadcast %cst_237 : f32 to vector<2x256xf32>
    %656 = arith.select %654, %651, %655 : vector<2x256xi1>, vector<2x256xf32>
    %657 = arith.addf %642, %656 : vector<2x256xf32>
    %c242_i32 = arith.constant 242 : i32
    %658 = tpu.dynamic_rotate %85 by %c242_i32 dim 1 : vector<2x256xf32>, i32 -> vector<2x256xf32>
    %c0_238 = arith.constant 0 : index
    %c29 = arith.constant 29 : index
    %659 = memref.load %arg5[%c0_238, %c29] : memref<2x49xf32, #tpu.memory_space<smem>>
    %660 = vector.broadcast %659 : f32 to vector<2x256xf32>
    %661 = arith.mulf %658, %660 : vector<2x256xf32>
    %c242_i32_239 = arith.constant 242 : i32
    %662 = tpu.dynamic_rotate %93 by %c242_i32_239 dim 1 : vector<2x256xf32>, i32 -> vector<2x256xf32>
    %c1_240 = arith.constant 1 : index
    %c29_241 = arith.constant 29 : index
    %663 = memref.load %arg5[%c1_240, %c29_241] : memref<2x49xf32, #tpu.memory_space<smem>>
    %664 = vector.broadcast %663 : f32 to vector<2x256xf32>
    %665 = arith.mulf %662, %664 : vector<2x256xf32>
    %666 = arith.addf %661, %665 : vector<2x256xf32>
    %667 = arith.andi %140, %176 : vector<1x256xi1>
    %cst_242 = arith.constant 0.000000e+00 : f32
    %668 = vector.shape_cast %667 : vector<1x256xi1> to vector<1x256xi1>
    %669 = vector.broadcast %668 : vector<1x256xi1> to vector<2x256xi1>
    %670 = vector.broadcast %cst_242 : f32 to vector<2x256xf32>
    %671 = arith.select %669, %666, %670 : vector<2x256xi1>, vector<2x256xf32>
    %672 = arith.addf %657, %671 : vector<2x256xf32>
    %c241_i32 = arith.constant 241 : i32
    %673 = tpu.dynamic_rotate %85 by %c241_i32 dim 1 : vector<2x256xf32>, i32 -> vector<2x256xf32>
    %c0_243 = arith.constant 0 : index
    %c30 = arith.constant 30 : index
    %674 = memref.load %arg5[%c0_243, %c30] : memref<2x49xf32, #tpu.memory_space<smem>>
    %675 = vector.broadcast %674 : f32 to vector<2x256xf32>
    %676 = arith.mulf %673, %675 : vector<2x256xf32>
    %c241_i32_244 = arith.constant 241 : i32
    %677 = tpu.dynamic_rotate %93 by %c241_i32_244 dim 1 : vector<2x256xf32>, i32 -> vector<2x256xf32>
    %c1_245 = arith.constant 1 : index
    %c30_246 = arith.constant 30 : index
    %678 = memref.load %arg5[%c1_245, %c30_246] : memref<2x49xf32, #tpu.memory_space<smem>>
    %679 = vector.broadcast %678 : f32 to vector<2x256xf32>
    %680 = arith.mulf %677, %679 : vector<2x256xf32>
    %681 = arith.addf %676, %680 : vector<2x256xf32>
    %682 = arith.andi %140, %185 : vector<1x256xi1>
    %cst_247 = arith.constant 0.000000e+00 : f32
    %683 = vector.shape_cast %682 : vector<1x256xi1> to vector<1x256xi1>
    %684 = vector.broadcast %683 : vector<1x256xi1> to vector<2x256xi1>
    %685 = vector.broadcast %cst_247 : f32 to vector<2x256xf32>
    %686 = arith.select %684, %681, %685 : vector<2x256xi1>, vector<2x256xf32>
    %687 = arith.addf %672, %686 : vector<2x256xf32>
    %c240_i32 = arith.constant 240 : i32
    %688 = tpu.dynamic_rotate %85 by %c240_i32 dim 1 : vector<2x256xf32>, i32 -> vector<2x256xf32>
    %c0_248 = arith.constant 0 : index
    %c31 = arith.constant 31 : index
    %689 = memref.load %arg5[%c0_248, %c31] : memref<2x49xf32, #tpu.memory_space<smem>>
    %690 = vector.broadcast %689 : f32 to vector<2x256xf32>
    %691 = arith.mulf %688, %690 : vector<2x256xf32>
    %c240_i32_249 = arith.constant 240 : i32
    %692 = tpu.dynamic_rotate %93 by %c240_i32_249 dim 1 : vector<2x256xf32>, i32 -> vector<2x256xf32>
    %c1_250 = arith.constant 1 : index
    %c31_251 = arith.constant 31 : index
    %693 = memref.load %arg5[%c1_250, %c31_251] : memref<2x49xf32, #tpu.memory_space<smem>>
    %694 = vector.broadcast %693 : f32 to vector<2x256xf32>
    %695 = arith.mulf %692, %694 : vector<2x256xf32>
    %696 = arith.addf %691, %695 : vector<2x256xf32>
    %697 = arith.andi %140, %194 : vector<1x256xi1>
    %cst_252 = arith.constant 0.000000e+00 : f32
    %698 = vector.shape_cast %697 : vector<1x256xi1> to vector<1x256xi1>
    %699 = vector.broadcast %698 : vector<1x256xi1> to vector<2x256xi1>
    %700 = vector.broadcast %cst_252 : f32 to vector<2x256xf32>
    %701 = arith.select %699, %696, %700 : vector<2x256xi1>, vector<2x256xf32>
    %702 = arith.addf %687, %701 : vector<2x256xf32>
    %c239_i32 = arith.constant 239 : i32
    %703 = tpu.dynamic_rotate %85 by %c239_i32 dim 1 : vector<2x256xf32>, i32 -> vector<2x256xf32>
    %c0_253 = arith.constant 0 : index
    %c32 = arith.constant 32 : index
    %704 = memref.load %arg5[%c0_253, %c32] : memref<2x49xf32, #tpu.memory_space<smem>>
    %705 = vector.broadcast %704 : f32 to vector<2x256xf32>
    %706 = arith.mulf %703, %705 : vector<2x256xf32>
    %c239_i32_254 = arith.constant 239 : i32
    %707 = tpu.dynamic_rotate %93 by %c239_i32_254 dim 1 : vector<2x256xf32>, i32 -> vector<2x256xf32>
    %c1_255 = arith.constant 1 : index
    %c32_256 = arith.constant 32 : index
    %708 = memref.load %arg5[%c1_255, %c32_256] : memref<2x49xf32, #tpu.memory_space<smem>>
    %709 = vector.broadcast %708 : f32 to vector<2x256xf32>
    %710 = arith.mulf %707, %709 : vector<2x256xf32>
    %711 = arith.addf %706, %710 : vector<2x256xf32>
    %712 = arith.andi %140, %203 : vector<1x256xi1>
    %cst_257 = arith.constant 0.000000e+00 : f32
    %713 = vector.shape_cast %712 : vector<1x256xi1> to vector<1x256xi1>
    %714 = vector.broadcast %713 : vector<1x256xi1> to vector<2x256xi1>
    %715 = vector.broadcast %cst_257 : f32 to vector<2x256xf32>
    %716 = arith.select %714, %711, %715 : vector<2x256xi1>, vector<2x256xf32>
    %717 = arith.addf %702, %716 : vector<2x256xf32>
    %c238_i32 = arith.constant 238 : i32
    %718 = tpu.dynamic_rotate %85 by %c238_i32 dim 1 : vector<2x256xf32>, i32 -> vector<2x256xf32>
    %c0_258 = arith.constant 0 : index
    %c33 = arith.constant 33 : index
    %719 = memref.load %arg5[%c0_258, %c33] : memref<2x49xf32, #tpu.memory_space<smem>>
    %720 = vector.broadcast %719 : f32 to vector<2x256xf32>
    %721 = arith.mulf %718, %720 : vector<2x256xf32>
    %c238_i32_259 = arith.constant 238 : i32
    %722 = tpu.dynamic_rotate %93 by %c238_i32_259 dim 1 : vector<2x256xf32>, i32 -> vector<2x256xf32>
    %c1_260 = arith.constant 1 : index
    %c33_261 = arith.constant 33 : index
    %723 = memref.load %arg5[%c1_260, %c33_261] : memref<2x49xf32, #tpu.memory_space<smem>>
    %724 = vector.broadcast %723 : f32 to vector<2x256xf32>
    %725 = arith.mulf %722, %724 : vector<2x256xf32>
    %726 = arith.addf %721, %725 : vector<2x256xf32>
    %727 = arith.andi %140, %212 : vector<1x256xi1>
    %cst_262 = arith.constant 0.000000e+00 : f32
    %728 = vector.shape_cast %727 : vector<1x256xi1> to vector<1x256xi1>
    %729 = vector.broadcast %728 : vector<1x256xi1> to vector<2x256xi1>
    %730 = vector.broadcast %cst_262 : f32 to vector<2x256xf32>
    %731 = arith.select %729, %726, %730 : vector<2x256xi1>, vector<2x256xf32>
    %732 = arith.addf %717, %731 : vector<2x256xf32>
    %c237_i32 = arith.constant 237 : i32
    %733 = tpu.dynamic_rotate %85 by %c237_i32 dim 1 : vector<2x256xf32>, i32 -> vector<2x256xf32>
    %c0_263 = arith.constant 0 : index
    %c34 = arith.constant 34 : index
    %734 = memref.load %arg5[%c0_263, %c34] : memref<2x49xf32, #tpu.memory_space<smem>>
    %735 = vector.broadcast %734 : f32 to vector<2x256xf32>
    %736 = arith.mulf %733, %735 : vector<2x256xf32>
    %c237_i32_264 = arith.constant 237 : i32
    %737 = tpu.dynamic_rotate %93 by %c237_i32_264 dim 1 : vector<2x256xf32>, i32 -> vector<2x256xf32>
    %c1_265 = arith.constant 1 : index
    %c34_266 = arith.constant 34 : index
    %738 = memref.load %arg5[%c1_265, %c34_266] : memref<2x49xf32, #tpu.memory_space<smem>>
    %739 = vector.broadcast %738 : f32 to vector<2x256xf32>
    %740 = arith.mulf %737, %739 : vector<2x256xf32>
    %741 = arith.addf %736, %740 : vector<2x256xf32>
    %742 = arith.andi %140, %221 : vector<1x256xi1>
    %cst_267 = arith.constant 0.000000e+00 : f32
    %743 = vector.shape_cast %742 : vector<1x256xi1> to vector<1x256xi1>
    %744 = vector.broadcast %743 : vector<1x256xi1> to vector<2x256xi1>
    %745 = vector.broadcast %cst_267 : f32 to vector<2x256xf32>
    %746 = arith.select %744, %741, %745 : vector<2x256xi1>, vector<2x256xf32>
    %747 = arith.addf %732, %746 : vector<2x256xf32>
    %c227_i32 = arith.constant 227 : i32
    %748 = tpu.dynamic_rotate %85 by %c227_i32 dim 1 : vector<2x256xf32>, i32 -> vector<2x256xf32>
    %c0_268 = arith.constant 0 : index
    %c35 = arith.constant 35 : index
    %749 = memref.load %arg5[%c0_268, %c35] : memref<2x49xf32, #tpu.memory_space<smem>>
    %750 = vector.broadcast %749 : f32 to vector<2x256xf32>
    %751 = arith.mulf %748, %750 : vector<2x256xf32>
    %c227_i32_269 = arith.constant 227 : i32
    %752 = tpu.dynamic_rotate %93 by %c227_i32_269 dim 1 : vector<2x256xf32>, i32 -> vector<2x256xf32>
    %c1_270 = arith.constant 1 : index
    %c35_271 = arith.constant 35 : index
    %753 = memref.load %arg5[%c1_270, %c35_271] : memref<2x49xf32, #tpu.memory_space<smem>>
    %754 = vector.broadcast %753 : f32 to vector<2x256xf32>
    %755 = arith.mulf %752, %754 : vector<2x256xf32>
    %756 = arith.addf %751, %755 : vector<2x256xf32>
    %757 = arith.andi %149, %167 : vector<1x256xi1>
    %cst_272 = arith.constant 0.000000e+00 : f32
    %758 = vector.shape_cast %757 : vector<1x256xi1> to vector<1x256xi1>
    %759 = vector.broadcast %758 : vector<1x256xi1> to vector<2x256xi1>
    %760 = vector.broadcast %cst_272 : f32 to vector<2x256xf32>
    %761 = arith.select %759, %756, %760 : vector<2x256xi1>, vector<2x256xf32>
    %762 = arith.addf %747, %761 : vector<2x256xf32>
    %c226_i32 = arith.constant 226 : i32
    %763 = tpu.dynamic_rotate %85 by %c226_i32 dim 1 : vector<2x256xf32>, i32 -> vector<2x256xf32>
    %c0_273 = arith.constant 0 : index
    %c36 = arith.constant 36 : index
    %764 = memref.load %arg5[%c0_273, %c36] : memref<2x49xf32, #tpu.memory_space<smem>>
    %765 = vector.broadcast %764 : f32 to vector<2x256xf32>
    %766 = arith.mulf %763, %765 : vector<2x256xf32>
    %c226_i32_274 = arith.constant 226 : i32
    %767 = tpu.dynamic_rotate %93 by %c226_i32_274 dim 1 : vector<2x256xf32>, i32 -> vector<2x256xf32>
    %c1_275 = arith.constant 1 : index
    %c36_276 = arith.constant 36 : index
    %768 = memref.load %arg5[%c1_275, %c36_276] : memref<2x49xf32, #tpu.memory_space<smem>>
    %769 = vector.broadcast %768 : f32 to vector<2x256xf32>
    %770 = arith.mulf %767, %769 : vector<2x256xf32>
    %771 = arith.addf %766, %770 : vector<2x256xf32>
    %772 = arith.andi %149, %176 : vector<1x256xi1>
    %cst_277 = arith.constant 0.000000e+00 : f32
    %773 = vector.shape_cast %772 : vector<1x256xi1> to vector<1x256xi1>
    %774 = vector.broadcast %773 : vector<1x256xi1> to vector<2x256xi1>
    %775 = vector.broadcast %cst_277 : f32 to vector<2x256xf32>
    %776 = arith.select %774, %771, %775 : vector<2x256xi1>, vector<2x256xf32>
    %777 = arith.addf %762, %776 : vector<2x256xf32>
    %c225_i32 = arith.constant 225 : i32
    %778 = tpu.dynamic_rotate %85 by %c225_i32 dim 1 : vector<2x256xf32>, i32 -> vector<2x256xf32>
    %c0_278 = arith.constant 0 : index
    %c37 = arith.constant 37 : index
    %779 = memref.load %arg5[%c0_278, %c37] : memref<2x49xf32, #tpu.memory_space<smem>>
    %780 = vector.broadcast %779 : f32 to vector<2x256xf32>
    %781 = arith.mulf %778, %780 : vector<2x256xf32>
    %c225_i32_279 = arith.constant 225 : i32
    %782 = tpu.dynamic_rotate %93 by %c225_i32_279 dim 1 : vector<2x256xf32>, i32 -> vector<2x256xf32>
    %c1_280 = arith.constant 1 : index
    %c37_281 = arith.constant 37 : index
    %783 = memref.load %arg5[%c1_280, %c37_281] : memref<2x49xf32, #tpu.memory_space<smem>>
    %784 = vector.broadcast %783 : f32 to vector<2x256xf32>
    %785 = arith.mulf %782, %784 : vector<2x256xf32>
    %786 = arith.addf %781, %785 : vector<2x256xf32>
    %787 = arith.andi %149, %185 : vector<1x256xi1>
    %cst_282 = arith.constant 0.000000e+00 : f32
    %788 = vector.shape_cast %787 : vector<1x256xi1> to vector<1x256xi1>
    %789 = vector.broadcast %788 : vector<1x256xi1> to vector<2x256xi1>
    %790 = vector.broadcast %cst_282 : f32 to vector<2x256xf32>
    %791 = arith.select %789, %786, %790 : vector<2x256xi1>, vector<2x256xf32>
    %792 = arith.addf %777, %791 : vector<2x256xf32>
    %c224_i32 = arith.constant 224 : i32
    %793 = tpu.dynamic_rotate %85 by %c224_i32 dim 1 : vector<2x256xf32>, i32 -> vector<2x256xf32>
    %c0_283 = arith.constant 0 : index
    %c38 = arith.constant 38 : index
    %794 = memref.load %arg5[%c0_283, %c38] : memref<2x49xf32, #tpu.memory_space<smem>>
    %795 = vector.broadcast %794 : f32 to vector<2x256xf32>
    %796 = arith.mulf %793, %795 : vector<2x256xf32>
    %c224_i32_284 = arith.constant 224 : i32
    %797 = tpu.dynamic_rotate %93 by %c224_i32_284 dim 1 : vector<2x256xf32>, i32 -> vector<2x256xf32>
    %c1_285 = arith.constant 1 : index
    %c38_286 = arith.constant 38 : index
    %798 = memref.load %arg5[%c1_285, %c38_286] : memref<2x49xf32, #tpu.memory_space<smem>>
    %799 = vector.broadcast %798 : f32 to vector<2x256xf32>
    %800 = arith.mulf %797, %799 : vector<2x256xf32>
    %801 = arith.addf %796, %800 : vector<2x256xf32>
    %802 = arith.andi %149, %194 : vector<1x256xi1>
    %cst_287 = arith.constant 0.000000e+00 : f32
    %803 = vector.shape_cast %802 : vector<1x256xi1> to vector<1x256xi1>
    %804 = vector.broadcast %803 : vector<1x256xi1> to vector<2x256xi1>
    %805 = vector.broadcast %cst_287 : f32 to vector<2x256xf32>
    %806 = arith.select %804, %801, %805 : vector<2x256xi1>, vector<2x256xf32>
    %807 = arith.addf %792, %806 : vector<2x256xf32>
    %c223_i32 = arith.constant 223 : i32
    %808 = tpu.dynamic_rotate %85 by %c223_i32 dim 1 : vector<2x256xf32>, i32 -> vector<2x256xf32>
    %c0_288 = arith.constant 0 : index
    %c39 = arith.constant 39 : index
    %809 = memref.load %arg5[%c0_288, %c39] : memref<2x49xf32, #tpu.memory_space<smem>>
    %810 = vector.broadcast %809 : f32 to vector<2x256xf32>
    %811 = arith.mulf %808, %810 : vector<2x256xf32>
    %c223_i32_289 = arith.constant 223 : i32
    %812 = tpu.dynamic_rotate %93 by %c223_i32_289 dim 1 : vector<2x256xf32>, i32 -> vector<2x256xf32>
    %c1_290 = arith.constant 1 : index
    %c39_291 = arith.constant 39 : index
    %813 = memref.load %arg5[%c1_290, %c39_291] : memref<2x49xf32, #tpu.memory_space<smem>>
    %814 = vector.broadcast %813 : f32 to vector<2x256xf32>
    %815 = arith.mulf %812, %814 : vector<2x256xf32>
    %816 = arith.addf %811, %815 : vector<2x256xf32>
    %817 = arith.andi %149, %203 : vector<1x256xi1>
    %cst_292 = arith.constant 0.000000e+00 : f32
    %818 = vector.shape_cast %817 : vector<1x256xi1> to vector<1x256xi1>
    %819 = vector.broadcast %818 : vector<1x256xi1> to vector<2x256xi1>
    %820 = vector.broadcast %cst_292 : f32 to vector<2x256xf32>
    %821 = arith.select %819, %816, %820 : vector<2x256xi1>, vector<2x256xf32>
    %822 = arith.addf %807, %821 : vector<2x256xf32>
    %c222_i32 = arith.constant 222 : i32
    %823 = tpu.dynamic_rotate %85 by %c222_i32 dim 1 : vector<2x256xf32>, i32 -> vector<2x256xf32>
    %c0_293 = arith.constant 0 : index
    %c40 = arith.constant 40 : index
    %824 = memref.load %arg5[%c0_293, %c40] : memref<2x49xf32, #tpu.memory_space<smem>>
    %825 = vector.broadcast %824 : f32 to vector<2x256xf32>
    %826 = arith.mulf %823, %825 : vector<2x256xf32>
    %c222_i32_294 = arith.constant 222 : i32
    %827 = tpu.dynamic_rotate %93 by %c222_i32_294 dim 1 : vector<2x256xf32>, i32 -> vector<2x256xf32>
    %c1_295 = arith.constant 1 : index
    %c40_296 = arith.constant 40 : index
    %828 = memref.load %arg5[%c1_295, %c40_296] : memref<2x49xf32, #tpu.memory_space<smem>>
    %829 = vector.broadcast %828 : f32 to vector<2x256xf32>
    %830 = arith.mulf %827, %829 : vector<2x256xf32>
    %831 = arith.addf %826, %830 : vector<2x256xf32>
    %832 = arith.andi %149, %212 : vector<1x256xi1>
    %cst_297 = arith.constant 0.000000e+00 : f32
    %833 = vector.shape_cast %832 : vector<1x256xi1> to vector<1x256xi1>
    %834 = vector.broadcast %833 : vector<1x256xi1> to vector<2x256xi1>
    %835 = vector.broadcast %cst_297 : f32 to vector<2x256xf32>
    %836 = arith.select %834, %831, %835 : vector<2x256xi1>, vector<2x256xf32>
    %837 = arith.addf %822, %836 : vector<2x256xf32>
    %c221_i32 = arith.constant 221 : i32
    %838 = tpu.dynamic_rotate %85 by %c221_i32 dim 1 : vector<2x256xf32>, i32 -> vector<2x256xf32>
    %c0_298 = arith.constant 0 : index
    %c41 = arith.constant 41 : index
    %839 = memref.load %arg5[%c0_298, %c41] : memref<2x49xf32, #tpu.memory_space<smem>>
    %840 = vector.broadcast %839 : f32 to vector<2x256xf32>
    %841 = arith.mulf %838, %840 : vector<2x256xf32>
    %c221_i32_299 = arith.constant 221 : i32
    %842 = tpu.dynamic_rotate %93 by %c221_i32_299 dim 1 : vector<2x256xf32>, i32 -> vector<2x256xf32>
    %c1_300 = arith.constant 1 : index
    %c41_301 = arith.constant 41 : index
    %843 = memref.load %arg5[%c1_300, %c41_301] : memref<2x49xf32, #tpu.memory_space<smem>>
    %844 = vector.broadcast %843 : f32 to vector<2x256xf32>
    %845 = arith.mulf %842, %844 : vector<2x256xf32>
    %846 = arith.addf %841, %845 : vector<2x256xf32>
    %847 = arith.andi %149, %221 : vector<1x256xi1>
    %cst_302 = arith.constant 0.000000e+00 : f32
    %848 = vector.shape_cast %847 : vector<1x256xi1> to vector<1x256xi1>
    %849 = vector.broadcast %848 : vector<1x256xi1> to vector<2x256xi1>
    %850 = vector.broadcast %cst_302 : f32 to vector<2x256xf32>
    %851 = arith.select %849, %846, %850 : vector<2x256xi1>, vector<2x256xf32>
    %852 = arith.addf %837, %851 : vector<2x256xf32>
    %c211_i32 = arith.constant 211 : i32
    %853 = tpu.dynamic_rotate %85 by %c211_i32 dim 1 : vector<2x256xf32>, i32 -> vector<2x256xf32>
    %c0_303 = arith.constant 0 : index
    %c42 = arith.constant 42 : index
    %854 = memref.load %arg5[%c0_303, %c42] : memref<2x49xf32, #tpu.memory_space<smem>>
    %855 = vector.broadcast %854 : f32 to vector<2x256xf32>
    %856 = arith.mulf %853, %855 : vector<2x256xf32>
    %c211_i32_304 = arith.constant 211 : i32
    %857 = tpu.dynamic_rotate %93 by %c211_i32_304 dim 1 : vector<2x256xf32>, i32 -> vector<2x256xf32>
    %c1_305 = arith.constant 1 : index
    %c42_306 = arith.constant 42 : index
    %858 = memref.load %arg5[%c1_305, %c42_306] : memref<2x49xf32, #tpu.memory_space<smem>>
    %859 = vector.broadcast %858 : f32 to vector<2x256xf32>
    %860 = arith.mulf %857, %859 : vector<2x256xf32>
    %861 = arith.addf %856, %860 : vector<2x256xf32>
    %862 = arith.andi %158, %167 : vector<1x256xi1>
    %cst_307 = arith.constant 0.000000e+00 : f32
    %863 = vector.shape_cast %862 : vector<1x256xi1> to vector<1x256xi1>
    %864 = vector.broadcast %863 : vector<1x256xi1> to vector<2x256xi1>
    %865 = vector.broadcast %cst_307 : f32 to vector<2x256xf32>
    %866 = arith.select %864, %861, %865 : vector<2x256xi1>, vector<2x256xf32>
    %867 = arith.addf %852, %866 : vector<2x256xf32>
    %c210_i32 = arith.constant 210 : i32
    %868 = tpu.dynamic_rotate %85 by %c210_i32 dim 1 : vector<2x256xf32>, i32 -> vector<2x256xf32>
    %c0_308 = arith.constant 0 : index
    %c43 = arith.constant 43 : index
    %869 = memref.load %arg5[%c0_308, %c43] : memref<2x49xf32, #tpu.memory_space<smem>>
    %870 = vector.broadcast %869 : f32 to vector<2x256xf32>
    %871 = arith.mulf %868, %870 : vector<2x256xf32>
    %c210_i32_309 = arith.constant 210 : i32
    %872 = tpu.dynamic_rotate %93 by %c210_i32_309 dim 1 : vector<2x256xf32>, i32 -> vector<2x256xf32>
    %c1_310 = arith.constant 1 : index
    %c43_311 = arith.constant 43 : index
    %873 = memref.load %arg5[%c1_310, %c43_311] : memref<2x49xf32, #tpu.memory_space<smem>>
    %874 = vector.broadcast %873 : f32 to vector<2x256xf32>
    %875 = arith.mulf %872, %874 : vector<2x256xf32>
    %876 = arith.addf %871, %875 : vector<2x256xf32>
    %877 = arith.andi %158, %176 : vector<1x256xi1>
    %cst_312 = arith.constant 0.000000e+00 : f32
    %878 = vector.shape_cast %877 : vector<1x256xi1> to vector<1x256xi1>
    %879 = vector.broadcast %878 : vector<1x256xi1> to vector<2x256xi1>
    %880 = vector.broadcast %cst_312 : f32 to vector<2x256xf32>
    %881 = arith.select %879, %876, %880 : vector<2x256xi1>, vector<2x256xf32>
    %882 = arith.addf %867, %881 : vector<2x256xf32>
    %c209_i32 = arith.constant 209 : i32
    %883 = tpu.dynamic_rotate %85 by %c209_i32 dim 1 : vector<2x256xf32>, i32 -> vector<2x256xf32>
    %c0_313 = arith.constant 0 : index
    %c44 = arith.constant 44 : index
    %884 = memref.load %arg5[%c0_313, %c44] : memref<2x49xf32, #tpu.memory_space<smem>>
    %885 = vector.broadcast %884 : f32 to vector<2x256xf32>
    %886 = arith.mulf %883, %885 : vector<2x256xf32>
    %c209_i32_314 = arith.constant 209 : i32
    %887 = tpu.dynamic_rotate %93 by %c209_i32_314 dim 1 : vector<2x256xf32>, i32 -> vector<2x256xf32>
    %c1_315 = arith.constant 1 : index
    %c44_316 = arith.constant 44 : index
    %888 = memref.load %arg5[%c1_315, %c44_316] : memref<2x49xf32, #tpu.memory_space<smem>>
    %889 = vector.broadcast %888 : f32 to vector<2x256xf32>
    %890 = arith.mulf %887, %889 : vector<2x256xf32>
    %891 = arith.addf %886, %890 : vector<2x256xf32>
    %892 = arith.andi %158, %185 : vector<1x256xi1>
    %cst_317 = arith.constant 0.000000e+00 : f32
    %893 = vector.shape_cast %892 : vector<1x256xi1> to vector<1x256xi1>
    %894 = vector.broadcast %893 : vector<1x256xi1> to vector<2x256xi1>
    %895 = vector.broadcast %cst_317 : f32 to vector<2x256xf32>
    %896 = arith.select %894, %891, %895 : vector<2x256xi1>, vector<2x256xf32>
    %897 = arith.addf %882, %896 : vector<2x256xf32>
    %c208_i32 = arith.constant 208 : i32
    %898 = tpu.dynamic_rotate %85 by %c208_i32 dim 1 : vector<2x256xf32>, i32 -> vector<2x256xf32>
    %c0_318 = arith.constant 0 : index
    %c45 = arith.constant 45 : index
    %899 = memref.load %arg5[%c0_318, %c45] : memref<2x49xf32, #tpu.memory_space<smem>>
    %900 = vector.broadcast %899 : f32 to vector<2x256xf32>
    %901 = arith.mulf %898, %900 : vector<2x256xf32>
    %c208_i32_319 = arith.constant 208 : i32
    %902 = tpu.dynamic_rotate %93 by %c208_i32_319 dim 1 : vector<2x256xf32>, i32 -> vector<2x256xf32>
    %c1_320 = arith.constant 1 : index
    %c45_321 = arith.constant 45 : index
    %903 = memref.load %arg5[%c1_320, %c45_321] : memref<2x49xf32, #tpu.memory_space<smem>>
    %904 = vector.broadcast %903 : f32 to vector<2x256xf32>
    %905 = arith.mulf %902, %904 : vector<2x256xf32>
    %906 = arith.addf %901, %905 : vector<2x256xf32>
    %907 = arith.andi %158, %194 : vector<1x256xi1>
    %cst_322 = arith.constant 0.000000e+00 : f32
    %908 = vector.shape_cast %907 : vector<1x256xi1> to vector<1x256xi1>
    %909 = vector.broadcast %908 : vector<1x256xi1> to vector<2x256xi1>
    %910 = vector.broadcast %cst_322 : f32 to vector<2x256xf32>
    %911 = arith.select %909, %906, %910 : vector<2x256xi1>, vector<2x256xf32>
    %912 = arith.addf %897, %911 : vector<2x256xf32>
    %c207_i32 = arith.constant 207 : i32
    %913 = tpu.dynamic_rotate %85 by %c207_i32 dim 1 : vector<2x256xf32>, i32 -> vector<2x256xf32>
    %c0_323 = arith.constant 0 : index
    %c46 = arith.constant 46 : index
    %914 = memref.load %arg5[%c0_323, %c46] : memref<2x49xf32, #tpu.memory_space<smem>>
    %915 = vector.broadcast %914 : f32 to vector<2x256xf32>
    %916 = arith.mulf %913, %915 : vector<2x256xf32>
    %c207_i32_324 = arith.constant 207 : i32
    %917 = tpu.dynamic_rotate %93 by %c207_i32_324 dim 1 : vector<2x256xf32>, i32 -> vector<2x256xf32>
    %c1_325 = arith.constant 1 : index
    %c46_326 = arith.constant 46 : index
    %918 = memref.load %arg5[%c1_325, %c46_326] : memref<2x49xf32, #tpu.memory_space<smem>>
    %919 = vector.broadcast %918 : f32 to vector<2x256xf32>
    %920 = arith.mulf %917, %919 : vector<2x256xf32>
    %921 = arith.addf %916, %920 : vector<2x256xf32>
    %922 = arith.andi %158, %203 : vector<1x256xi1>
    %cst_327 = arith.constant 0.000000e+00 : f32
    %923 = vector.shape_cast %922 : vector<1x256xi1> to vector<1x256xi1>
    %924 = vector.broadcast %923 : vector<1x256xi1> to vector<2x256xi1>
    %925 = vector.broadcast %cst_327 : f32 to vector<2x256xf32>
    %926 = arith.select %924, %921, %925 : vector<2x256xi1>, vector<2x256xf32>
    %927 = arith.addf %912, %926 : vector<2x256xf32>
    %c206_i32 = arith.constant 206 : i32
    %928 = tpu.dynamic_rotate %85 by %c206_i32 dim 1 : vector<2x256xf32>, i32 -> vector<2x256xf32>
    %c0_328 = arith.constant 0 : index
    %c47 = arith.constant 47 : index
    %929 = memref.load %arg5[%c0_328, %c47] : memref<2x49xf32, #tpu.memory_space<smem>>
    %930 = vector.broadcast %929 : f32 to vector<2x256xf32>
    %931 = arith.mulf %928, %930 : vector<2x256xf32>
    %c206_i32_329 = arith.constant 206 : i32
    %932 = tpu.dynamic_rotate %93 by %c206_i32_329 dim 1 : vector<2x256xf32>, i32 -> vector<2x256xf32>
    %c1_330 = arith.constant 1 : index
    %c47_331 = arith.constant 47 : index
    %933 = memref.load %arg5[%c1_330, %c47_331] : memref<2x49xf32, #tpu.memory_space<smem>>
    %934 = vector.broadcast %933 : f32 to vector<2x256xf32>
    %935 = arith.mulf %932, %934 : vector<2x256xf32>
    %936 = arith.addf %931, %935 : vector<2x256xf32>
    %937 = arith.andi %158, %212 : vector<1x256xi1>
    %cst_332 = arith.constant 0.000000e+00 : f32
    %938 = vector.shape_cast %937 : vector<1x256xi1> to vector<1x256xi1>
    %939 = vector.broadcast %938 : vector<1x256xi1> to vector<2x256xi1>
    %940 = vector.broadcast %cst_332 : f32 to vector<2x256xf32>
    %941 = arith.select %939, %936, %940 : vector<2x256xi1>, vector<2x256xf32>
    %942 = arith.addf %927, %941 : vector<2x256xf32>
    %c205_i32 = arith.constant 205 : i32
    %943 = tpu.dynamic_rotate %85 by %c205_i32 dim 1 : vector<2x256xf32>, i32 -> vector<2x256xf32>
    %c0_333 = arith.constant 0 : index
    %c48 = arith.constant 48 : index
    %944 = memref.load %arg5[%c0_333, %c48] : memref<2x49xf32, #tpu.memory_space<smem>>
    %945 = vector.broadcast %944 : f32 to vector<2x256xf32>
    %946 = arith.mulf %943, %945 : vector<2x256xf32>
    %c205_i32_334 = arith.constant 205 : i32
    %947 = tpu.dynamic_rotate %93 by %c205_i32_334 dim 1 : vector<2x256xf32>, i32 -> vector<2x256xf32>
    %c1_335 = arith.constant 1 : index
    %c48_336 = arith.constant 48 : index
    %948 = memref.load %arg5[%c1_335, %c48_336] : memref<2x49xf32, #tpu.memory_space<smem>>
    %949 = vector.broadcast %948 : f32 to vector<2x256xf32>
    %950 = arith.mulf %947, %949 : vector<2x256xf32>
    %951 = arith.addf %946, %950 : vector<2x256xf32>
    %952 = arith.andi %158, %221 : vector<1x256xi1>
    %cst_337 = arith.constant 0.000000e+00 : f32
    %953 = vector.shape_cast %952 : vector<1x256xi1> to vector<1x256xi1>
    %954 = vector.broadcast %953 : vector<1x256xi1> to vector<2x256xi1>
    %955 = vector.broadcast %cst_337 : f32 to vector<2x256xf32>
    %956 = arith.select %954, %951, %955 : vector<2x256xi1>, vector<2x256xf32>
    %957 = arith.addf %942, %956 : vector<2x256xf32>
    %cst_338 = arith.constant -8.000000e+01 : f32
    %958 = vector.broadcast %cst_338 : f32 to vector<2x256xf32>
    %959 = arith.maximumf %957, %958 : vector<2x256xf32>
    %cst_339 = arith.constant 0.000000e+00 : f32
    %960 = vector.broadcast %cst_339 : f32 to vector<2x256xf32>
    %961 = arith.subf %960, %959 : vector<2x256xf32>
    %962 = math.exp %961 : vector<2x256xf32>
    %cst_340 = arith.constant 1.000000e+00 : f32
    %963 = vector.broadcast %cst_340 : f32 to vector<2x256xf32>
    %964 = arith.addf %963, %962 : vector<2x256xf32>
    %965 = tpu.reciprocal %964 {approx = true} : vector<2x256xf32> -> vector<2x256xf32>
    %966 = vector.extract_strided_slice %965 {offsets = [0, 0], sizes = [1, 256], strides = [1, 1]} : vector<2x256xf32> to vector<1x256xf32>
    %967 = vector.broadcast %966 : vector<1x256xf32> to vector<32x256xf32>
    %968 = arith.mulf %52, %967 : vector<32x256xf32>
    %c0_341 = arith.constant 0 : index
    %c0_342 = arith.constant 0 : index
    %c0_343 = arith.constant 0 : index
    %969 = vector.load %arg6[%c0_341, %c0_342, %c0_343] : memref<2x32x256xf32, #tpu.memory_space<vmem>>, vector<1x32x256xf32>
    %970 = vector.shape_cast %969 : vector<1x32x256xf32> to vector<32x256xf32>
    %971 = vector.shape_cast %968 : vector<32x256xf32> to vector<1x32x256xf32>
    tpu.vector_store %arg6[%c0_341, %c0_342, %c0_343], %971 {strides = array<i32>} : memref<2x32x256xf32, #tpu.memory_space<vmem>>, vector<1x32x256xf32>,
    %972 = vector.extract_strided_slice %965 {offsets = [1, 0], sizes = [1, 256], strides = [1, 1]} : vector<2x256xf32> to vector<1x256xf32>
    %973 = vector.broadcast %972 : vector<1x256xf32> to vector<32x256xf32>
    %974 = arith.mulf %71, %973 : vector<32x256xf32>
    %c1_344 = arith.constant 1 : index
    %c0_345 = arith.constant 0 : index
    %c0_346 = arith.constant 0 : index
    %975 = vector.load %arg6[%c1_344, %c0_345, %c0_346] : memref<2x32x256xf32, #tpu.memory_space<vmem>>, vector<1x32x256xf32>
    %976 = vector.shape_cast %975 : vector<1x32x256xf32> to vector<32x256xf32>
    %977 = vector.shape_cast %974 : vector<32x256xf32> to vector<1x32x256xf32>
    tpu.vector_store %arg6[%c1_344, %c0_345, %c0_346], %977 {strides = array<i32>} : memref<2x32x256xf32, #tpu.memory_space<vmem>>, vector<1x32x256xf32>,
    return
  }
  func.func @transform_0(%arg0: i32) -> (i32, i32, i32) {
    %c0_i32 = arith.constant 0 : i32
    %c0_i32_0 = arith.constant 0 : i32
    %c0_i32_1 = arith.constant 0 : i32
    return %arg0, %c0_i32, %c0_i32_0 : i32, i32, i32
  }
  func.func @transform_1(%arg0: i32) -> (i32, i32) {
    %c0_i32 = arith.constant 0 : i32
    %c0_i32_0 = arith.constant 0 : i32
    %c0_i32_1 = arith.constant 0 : i32
    return %c0_i32, %c0_i32_0 : i32, i32
  }
  func.func @transform_2(%arg0: i32) -> (i32, i32) {
    %c0_i32 = arith.constant 0 : i32
    %c0_i32_0 = arith.constant 0 : i32
    %c0_i32_1 = arith.constant 0 : i32
    return %c0_i32, %c0_i32_0 : i32, i32
  }
  func.func @transform_3(%arg0: i32) -> (i32, i32) {
    %c0_i32 = arith.constant 0 : i32
    %c0_i32_0 = arith.constant 0 : i32
    %c0_i32_1 = arith.constant 0 : i32
    return %c0_i32, %c0_i32_0 : i32, i32
  }
  func.func @transform_4(%arg0: i32) -> (i32, i32) {
    %c0_i32 = arith.constant 0 : i32
    %c0_i32_0 = arith.constant 0 : i32
    %c0_i32_1 = arith.constant 0 : i32
    return %c0_i32, %c0_i32_0 : i32, i32
  }
  func.func @transform_5(%arg0: i32) -> (i32, i32, i32) {
    %c0_i32 = arith.constant 0 : i32
    %c0_i32_0 = arith.constant 0 : i32
    %c0_i32_1 = arith.constant 0 : i32
    return %arg0, %c0_i32, %c0_i32_0 : i32, i32, i32
  }
}

</mosaic_0001>

<bundles_post_ra>
// kernel: cbam_pallas.1
= control target key start
LH: loop header
LB: loop body
LE: loop exit
PB: predicated region body
PF: predicated region fallthrough
CT: control target
= control target key end

     0   :  { %10 = vsyncpa [#allocation3], 0  ;;  %s2326_s21 = smov [#allocation2]   ;;  %s5411_s0 = inlined_call_operand.vmem [shape: f32[2,32,256], index: 0, kind: input, shape index: {}]   ;;  %s5412_s1 = inlined_call_operand.vmem [shape: f32[8,32], index: 1, kind: input, shape index: {}]   ;;  %s5413_s2 = inlined_call_operand.vmem [shape: f32[32,8], index: 2, kind: input, shape index: {}]   ;;  %s5414_s3 = inlined_call_operand.vmem [shape: s32[2,256], index: 3, kind: input, shape index: {}]   ;;  %s5415_s4 = inlined_call_operand.vmem [shape: f32[2,49], index: 4, kind: input, shape index: {}]   ;;  %s5416_s5 = inlined_call_operand.vmem [shape: f32[2,32,256], index: 5, kind: output, shape index: {}]  }
   0x1   :  { %s24_s20 = sshll.u32 %s5415_s4, 4  ;;  %s25_s20 = int_to_ptr.vmem [resolvable:$true] %s24_s20 }
   0x2   :  { %27 = dma.vmem_to_smem %s25_s20, 32, %s2326_s21, [#allocation3]  }
   0x3   :  { %2324 = dma.done.wait [#allocation3], 32  }
   0x4   :  { %2325 = vsyncadd [#allocation3], 4294967264 }
   0x5   :  { %32 = sfence }
   0x6   :  { %v2415_v0 = vld [vmem:[%s5411_s0 + $0x20] sm:$0xff]  ;;  %v2420_v1 = vld [vmem:[%s5411_s0 + $0x28] sm:$0xff]  ;;  %v2441_v7 = vld [vmem:[%s5411_s0 + $0x30] sm:$0xff]  ;;  %v2327_v38 = vmov 256.0   ;;  %v113_v49 = vlaneseq  ;;  %vm131_vm4 = vcmask 261120   ;;  %vm160_vm5 = vcmask 64512  }
   0x7   :  { %v2425_v2 = vld [vmem:[%s5411_s0] sm:$0xff]  ;;  %v47_v3 = vmax.f32 %v2415_v0, %v2420_v1  ;;  %v2432_v4 = vld [vmem:[%s5411_s0 + $0x8] sm:$0xff]  ;;  %v2446_v8 = vld [vmem:[%s5411_s0 + $0x38] sm:$0xff]  ;;  %v59_v18 = vadd.f32 %v2420_v1, %v2415_v0  ;;  %2283 = vrcp.f32 %v2327_v38  ;;  %s2328_s10 = smov 127   ;;  %s2332_s11 = smov 51  }
   0x8   :  { %v53_v5 = vadd.f32 %v2432_v4, %v2425_v2  ;;  %v41_v6 = vmax.f32 %v2425_v2, %v2432_v4  ;;  %v2451_v9 = vld [vmem:[%s5411_s0 + $0x10] sm:$0xff]  ;;  %v2456_v10 = vld [vmem:[%s5411_s0 + $0x18] sm:$0xff]  ;;  %v50_v11 = vmax.f32 %v2441_v7, %v2446_v8  ;;  %v2467_v14 = vld [vmem:[%s5411_s0 + $0x40] sm:$0xff]  ;;  %v62_v16 = vadd.f32 %v2446_v8, %v2441_v7  ;;  %s2333_s12 = smov 48   ;;  %s2334_s13 = smov 50  }
   0x9   :  { %48 = vmax.xlane.f32.xlu1 %v47_v3  ;;  %v56_v12 = vadd.f32 %v2456_v10, %v2451_v9  ;;  %v44_v13 = vmax.f32 %v2451_v9, %v2456_v10  ;;  %v2472_v15 = vld [vmem:[%s5411_s0 + $0x48] sm:$0xff]  ;;  %v2483_v19 = vld [vmem:[%s5411_s0 + $0x60] sm:$0xff]  ;;  %v2493_v21 = vld [vmem:[%s5411_s0 + $0x70] sm:$0xff]  ;;  %v2525_v53 = vand.u32 127, %v113_v49  ;;  %s2335_s14 = smov 46   ;;  %s2336_s15 = smov 45  }
   0xa   :  { %54 = vadd.xlane.f32.xlu2 %v53_v5  ;;  %42 = vmax.xlane.f32.xlu0 %v41_v6  ;;  %v85_v17 = vmax.f32 %v2467_v14, %v2472_v15  ;;  %v2488_v20 = vld [vmem:[%s5411_s0 + $0x68] sm:$0xff]  ;;  %v2498_v22 = vld [vmem:[%s5411_s0 + $0x78] sm:$0xff]  ;;  %v2503_v23 = vld [vmem:[%s5411_s0 + $0x50] sm:$0xff]  ;;  %v97_v30 = vadd.f32 %v2472_v15, %v2467_v14  ;;  %s2337_s16 = smov 47   ;;  %s2338_s17 = smov 34  }
   0xb   :  { %v2508_v24 = vld [vmem:[%s5411_s0 + $0x58] sm:$0xff]  ;;  %v91_v25 = vmax.f32 %v2483_v19, %v2488_v20  ;;  %v94_v26 = vmax.f32 %v2493_v21, %v2498_v22  ;;  %v103_v29 = vadd.f32 %v2488_v20, %v2483_v19  ;;  %v106_v31 = vadd.f32 %v2498_v22, %v2493_v21  ;;  %s2339_s18 = smov 33   ;;  %s2340_s19 = smov 35  }
   0xc   :  { %v88_v27 = vmax.f32 %v2503_v23, %v2508_v24  ;;  %v100_v28 = vadd.f32 %v2508_v24, %v2503_v23  ;;  %vm115_vm1 = vcmp.eq.s32.totalorder %v2525_v53, 2  ;;  %vm120_vm2 = vcmp.eq.s32.totalorder %v2525_v53, 1  ;;  %s2341_s20 = smov 31   ;;  %s2342_s21 = smov 30  }
   0xd   :  { %v2284_v42 = vpop.eup %2283  ;;  %vm125_vm3 = vcmp.eq.s32.totalorder %v2525_v53, 0  ;;  %s2343_s22 = smov 32   ;;  %s2344_s23 = smov 19   ;;  %vm5509_vm8 = vcmp.lt.s32.totalorder %v2525_v53, 127  ;;  %vm5518_vm9 = vcmp.lt.s32.totalorder %v2525_v53, 1  ;;  %vm5497_vm10 = vcmp.lt.s32.totalorder %v2525_v53, 115 }
   0xe   :  { %v66_v43 = vmul.f32 256.0, %v2284_v42  ;;  %vm70_vm0 = vweird.f32 %v2284_v42  ;;  %s2345_s24 = smov 18   ;;  %s2346_s25 = smov 29   ;;  %vm5519_vm11 = vcmp.lt.s32.totalorder %v2525_v53, 126  ;;  %vm5498_vm12 = vcmp.lt.s32.totalorder %v2525_v53, 125 }
   0xf   :  { %s2347_s26 = smov 16   ;;  %s2348_s27 = smov 15   ;;  %vm5494_vm13 = vcmp.lt.s32.totalorder %v2525_v53, 112  ;;  %vm5510_vm14 = vcmp.lt.s32.totalorder %v2525_v53, 114  ;;  %vm5496_vm15 = vcmp.lt.s32.totalorder %v2525_v53, 113 }
  0x10   :  { %v67_v44 = vsub.f32 1.0, %v66_v43  ;;  %s2349_s0 = smov 17   ;;  %s2350_s4 = smov 13  }
  0x11   :  { %51 = vmax.xlane.f32.xlu1 %v50_v11  ;;  %s2351_s28 = smov 3   ;;  %s2352_s29 = smov 14  }
  0x12   :  { %57 = vadd.xlane.f32.xlu2 %v56_v12  ;;  %45 = vmax.xlane.f32.xlu0 %v44_v13  ;;  %v68_v48 = vmul.f32 %v2284_v42, %v67_v44  ;;  %s5417_s30 = smov 1   ;;  %s2354_s6 = smov 2  }
  0x13   :  { %s5421_s7 = smov 125   ;;  %s5425_s8 = smov 115  }
  0x14   :  { %v69_v50 = vadd.f32 %v2284_v42, %v68_v48  ;;  %s5427_s9 = smov 113  }
  0x16   :  { %v71_v54 = vsel %vm70_vm0, %v2284_v42, %v69_v50  ;;  %vm5489_vm0 = vcmp.lt.s32.totalorder %v2525_v53, 109 }
  0x19   :  { %63 = vadd.xlane.f32.xlu1 %v62_v16 }
  0x1a   :  { %86 = vmax.xlane.f32.xlu2 %v85_v17  ;;  %60 = vadd.xlane.f32.xlu0 %v59_v18 }
  0x21   :  { %92 = vmax.xlane.f32.xlu1 %v91_v25 }
  0x22   :  { %95 = vmax.xlane.f32.xlu2 %v94_v26  ;;  %89 = vmax.xlane.f32.xlu0 %v88_v27 }
  0x29   :  { %101 = vadd.xlane.f32.xlu1 %v100_v28  ;;  %v130_v28 = vld [vmem:[%s5412_s1] sm:$0xff]  ;;  %s5419_s1 = smov 126  }
  0x2a   :  { %104 = vadd.xlane.f32.xlu2 %v103_v29  ;;  %98 = vadd.xlane.f32.xlu0 %v97_v30 }
  0x32   :  { %107 = vadd.xlane.f32.xlu0 %v106_v31 }
  0x7c   :  { %v49_v32 = vpop.xlane.xlu1 %48 }
  0x7d   :  { %v55_v33 = vpop.xlane.xlu2 %54  ;;  %v43_v34 = vpop.xlane.xlu0 %42 }
  0x7e   :  { %v72_v17 = vmul.f32 %v71_v54, %v55_v33  ;;  %v157_v33 = vld [vmem:[%s5413_s2 + $0x8] sm:$0xff] }
  0x84   :  { %v52_v35 = vpop.xlane.xlu1 %51 }
  0x85   :  { %v58_v36 = vpop.xlane.xlu2 %57  ;;  %v46_v37 = vpop.xlane.xlu0 %45 }
  0x86   :  { %v73_v6 = vmul.f32 %v71_v54, %v58_v36 }
  0x8c   :  { %v64_v39 = vpop.xlane.xlu1 %63 }
  0x8d   :  { %v87_v40 = vpop.xlane.xlu2 %86  ;;  %v61_v41 = vpop.xlane.xlu0 %60  ;;  %v75_v62 = vmul.f32 %v71_v54, %v64_v39 }
  0x8e   :  { %v74_v63 = vmul.f32 %v71_v54, %v61_v41 }
  0x94   :  { %v93_v47 = vpop.xlane.xlu1 %92 }
  0x95   :  { %v96_v45 = vpop.xlane.xlu2 %95  ;;  %v90_v46 = vpop.xlane.xlu0 %89 }
  0x9c   :  { %v102_v55 = vpop.xlane.xlu1 %101 }
  0x9d   :  { %v99_v51 = vpop.xlane.xlu0 %98  ;;  %v105_v52 = vpop.xlane.xlu2 %104  ;;  %v110_v57 = vmul.f32 %v102_v55, %v71_v54 }
  0x9e   :  { %v111_v56 = vmul.f32 %v105_v52, %v71_v54  ;;  %v109_v59 = vmul.f32 %v99_v51, %v71_v54 }
  0x9f   :  { %v117_v5 = vsel %vm115_vm1, %v90_v46, %v110_v57  ;;  %v2330_v46 = vmov 2  }
  0xa0   :  { %v118_v61 = vsel %vm115_vm1, %v93_v47, %v111_v56  ;;  %v116_v16 = vsel %vm115_vm1, %v87_v40, %v109_v59  ;;  %v122_v18 = vsel %vm120_vm2, %v73_v6, %v117_v5  ;;  %v5439_v40 = vmov 0   ;;  %2278 = vset.pattern.permute.xlu2 %v2330_v46 }
  0xa1   :  { %v123_v12 = vsel %vm120_vm2, %v74_v63, %v118_v61  ;;  %v121_v26 = vsel %vm120_vm2, %v72_v17, %v116_v16  ;;  %v127_v27 = vsel %vm125_vm3, %v46_v37, %v122_v18  ;;  %2279 = vset.pattern.permute.xlu0 %v5439_v40  ;;  %2277 = vset.pattern.permute.xlu1 %v5439_v40 }
  0xa2   :  { %v128_v25 = vsel %vm125_vm3, %v49_v32, %v123_v12  ;;  %v126_v29 = vsel %vm125_vm3, %v43_v34, %v121_v26  ;;  %v156_v32 = vld [vmem:[%s5413_s2] sm:$0xff]  ;;  %v158_v34 = vld [vmem:[%s5413_s2 + $0x10] sm:$0xff] }
  0xa5   :  { %v108_v58 = vpop.xlane.xlu0 %107 }
  0xa6   :  { %v112_v60 = vmul.f32 %v108_v58, %v71_v54 }
  0xa8   :  { %v119_v3 = vsel %vm115_vm1, %v96_v45, %v112_v60  ;;  %vm5495_vm1 = vcmp.lt.s32.totalorder %v2525_v53, 111 }
  0xa9   :  { %v124_v11 = vsel %vm120_vm2, %v75_v62, %v119_v3  ;;  %vm5492_vm2 = vcmp.lt.s32.totalorder %v2525_v53, 110 }
  0xaa   :  { %v129_v13 = vsel %vm125_vm3, %v52_v35, %v124_v11  ;;  %v159_v35 = vld [vmem:[%s5413_s2 + $0x18] sm:$0xff]  ;;  %s2331_s2 = smov 49   ;;  %vm5480_vm3 = vcmp.lt.s32.totalorder %v2525_v53, 97 }
  0xab   :  { %147 = vmatpush.msra.mxu0 %v129_v13 }
  0xad   :  { %148 = vmatpush.msra.mxu0 %v128_v25 }
  0xaf   :  { %149 = vmatpush.msra.mxu0 %v127_v27 }
  0xb1   :  { %150 = vmatpush.msra.mxu0 %v126_v29 }
  0xb2   :  { %2111 = vmatmul.msk.f32.vlgmr.msra.gmra.mxu0 %vm131_vm4, %v130_v28  ;;  %vm5490_vm4 = vcmp.lt.s32.totalorder %v2525_v53, 99 }
 0x12f   :  { %v152_v30 = vpop.f32.mrf.mxu0 }
 0x130   :  { %v155_v31 = vmax.f32 %v152_v30, 0.0 }
 0x132   :  { %188 = vmatpush.msra.mxu1 %v155_v31  ;;  %2222 = vmatpush.msra.mxu2 %v155_v31 }
 0x133   :  { %2223 = vmatpush.msra.mxu3 %v155_v31  ;;  %2112 = vmatmul.msk.f32.vlgmr.msra.gmra.mxu1 %vm160_vm5, %v156_v32 }
 0x134   :  { %2113 = vmatmul.msk.f32.vlgmr.msra.gmra.mxu2 %vm160_vm5, %v157_v33  ;;  %2115 = vmatmul.msk.f32.vlgmr.msra.gmra.mxu3 %vm160_vm5, %v159_v35 }
 0x13c   :  { %2114 = vmatmul.msk.f32.gmra.mxu2 %vm160_vm5, %v158_v34  ;;  %vm5488_vm5 = vcmp.lt.s32.totalorder %v2525_v53, 98 }
 0x1b0   :  { %v190_v36 = vpop.f32.mrf.mxu1 }
 0x1b1   :  { %206 = vrot.lane.b32.xlu1 %v190_v36, %s2328_s10 }
 0x1b7   :  { %v193_v37 = vpop.f32.mrf.mxu2  ;;  %v199_v38 = vpop.f32.mrf.mxu3 }
 0x1b8   :  { %208 = vrot.lane.b32.xlu2 %v193_v37, %s2328_s10 }
 0x1bf   :  { %v196_v39 = vpop.f32.mrf.mxu2 }
 0x1c0   :  { %212 = vrot.lane.b32.xlu2 %v199_v38, %s2328_s10  ;;  %210 = vrot.lane.b32.xlu0 %v196_v39, %s2328_s10 }
 0x212   :  { %v209_v41 = vpop.permute.xlu2 %208 }
 0x213   :  { %v219_v42 = vadd.f32 %v209_v41, %v193_v37 }
 0x215   :  { %v223_v43 = vmax.f32 %v219_v42, -80.0 }
 0x217   :  { %v227_v44 = vsub.f32 0.0, %v223_v43 }
 0x219   :  { %v232_v45 = vmul.f32 1.442695, %v227_v44 }
 0x21a   :  { %v213_v47 = vpop.permute.xlu2 %212 }
 0x21b   :  { %2285 = vpow2.f32 %v232_v45  ;;  %v221_v50 = vadd.f32 %v213_v47, %v199_v38 }
 0x21d   :  { %v225_v55 = vmax.f32 %v221_v50, -80.0 }
 0x21f   :  { %v229_v58 = vsub.f32 0.0, %v225_v55 }
 0x221   :  { %v2286_v48 = vpop.eup %2285  ;;  %v236_v61 = vmul.f32 1.442695, %v229_v58 }
 0x222   :  { %v239_v51 = vadd.f32 1.0, %v2286_v48 }
 0x223   :  { %v207_v52 = vpop.permute.xlu1 %206 }
 0x224   :  { %2287 = vrcp.f32 %v239_v51  ;;  %v218_v54 = vadd.f32 %v207_v52, %v190_v36 }
 0x226   :  { %v222_v56 = vmax.f32 %v218_v54, -80.0 }
 0x228   :  { %v226_v57 = vsub.f32 0.0, %v222_v56 }
 0x22a   :  { %v2288_v59 = vpop.eup %2287  ;;  %v230_v60 = vmul.f32 1.442695, %v226_v57 }
 0x22b   :  { %253 = vperm.xlu0 %2279, %v2288_v59  }
 0x22c   :  { %2289 = vpow2.f32 %v230_v60 }
 0x22d   :  { %2291 = vpow2.f32 %v236_v61 }
 0x232   :  { %v211_v62 = vpop.permute.xlu0 %210  ;;  %v2290_v63 = vpop.eup %2289 }
 0x233   :  { %v220_v3 = vadd.f32 %v211_v62, %v196_v39  ;;  %2282 = vset.pattern.permute.xlu0 %v2330_v46  ;;  %v238_v5 = vadd.f32 1.0, %v2290_v63  ;;  %v2292_v11 = vpop.eup %2291 }
 0x234   :  { %v241_v16 = vadd.f32 1.0, %v2292_v11 }
 0x235   :  { %v224_v6 = vmax.f32 %v220_v3, -80.0  ;;  %2293 = vrcp.f32 %v238_v5  ;;  %v2633_v5 = vshrl.u32 %v113_v49, 7 }
 0x237   :  { %v228_v12 = vsub.f32 0.0, %v224_v6  ;;  %vm383_vm6 = vcmp.eq.s32.totalorder %v2633_v5, 0 }
 0x239   :  { %v234_v13 = vmul.f32 1.442695, %v228_v12 }
 0x23b   :  { %2295 = vpow2.f32 %v234_v13  ;;  %v2294_v17 = vpop.eup %2293 }
 0x23c   :  { %320 = vperm.xlu2 %2278, %v2294_v17   ;;  %248 = vperm.xlu1 %2277, %v2294_v17   ;;  %2297 = vrcp.f32 %v241_v16 }
 0x241   :  { %v2296_v18 = vpop.eup %2295 }
 0x242   :  { %v240_v25 = vadd.f32 1.0, %v2296_v18  ;;  %v2298_v26 = vpop.eup %2297 }
 0x244   :  { %2299 = vrcp.f32 %v240_v25  ;;  %332 = vperm.xlu2 %2278, %v2298_v26   ;;  %263 = vperm.xlu1 %2277, %v2298_v26  }
 0x24a   :  { %v2300_v27 = vpop.eup %2299 }
 0x24b   :  { %328 = vperm.xlu0 %2282, %v2300_v27  }
 0x24c   :  { %2281 = vset.pattern.permute.xlu2 %v5439_v40  ;;  %2280 = vset.pattern.permute.xlu1 %v2330_v46 }
 0x24d   :  { %258 = vperm.xlu2 %2281, %v2300_v27   ;;  %324 = vperm.xlu1 %2280, %v2288_v59  }
 0x296   :  { %v321_v28 = vpop.permute.xlu2 %320 }
 0x297   :  { %v2607_v46 = vmul.f32 %v2467_v14, %v321_v28  ;;  %v2610_v47 = vmul.f32 %v2472_v15, %v321_v28 }
 0x299   :  { %5541 = vst [vmem:[#allocation15_spill] sm:$0xff] %v2607_v46 }
 0x29a   :  { %5542 = vst [vmem:[#allocation16_spill] sm:$0xff] %v2610_v47 }
 0x29d   :  { %v254_v31 = vpop.permute.xlu0 %253 }
 0x29e   :  { %v333_v29 = vpop.permute.xlu2 %332  ;;  %v2575_v34 = vmul.f32 %v254_v31, %v2451_v9  ;;  %v2578_v36 = vmul.f32 %v254_v31, %v2456_v10 }
 0x29f   :  { %v2613_v48 = vmul.f32 %v2493_v21, %v333_v29  ;;  %v2616_v50 = vmul.f32 %v2498_v22, %v333_v29 }
 0x2a0   :  { %5533 = vst [vmem:[#allocation7_spill] sm:$0xff] %v2575_v34 }
 0x2a1   :  { %5534 = vst [vmem:[#allocation8_spill] sm:$0xff] %v2578_v36 }
 0x2a2   :  { %5543 = vst [vmem:[#allocation17_spill] sm:$0xff] %v2613_v48 }
 0x2a3   :  { %5544 = vst [vmem:[#allocation18_spill] sm:$0xff] %v2616_v50 }
 0x2a7   :  { %v259_v32 = vpop.permute.xlu2 %258 }
 0x2a8   :  { %v2581_v38 = vmul.f32 %v259_v32, %v2415_v0  ;;  %v2584_v39 = vmul.f32 %v259_v32, %v2420_v1 }
 0x2aa   :  { %5535 = vst [vmem:[#allocation9_spill] sm:$0xff] %v2581_v38 }
 0x2ab   :  { %5536 = vst [vmem:[#allocation10_spill] sm:$0xff] %v2584_v39 }
 0x2ae   :  { %v249_v30 = vpop.permute.xlu1 %248 }
 0x2af   :  { %v2569_v33 = vmul.f32 %v249_v30, %v2425_v2  ;;  %v2572_v35 = vmul.f32 %v249_v30, %v2432_v4 }
 0x2b1   :  { %5531 = vst [vmem:[#allocation5_spill] sm:$0xff] %v2569_v33  ;;  %v274_v4 = vmax.f32 %v2569_v33, %v2581_v38  ;;  %v283_v9 = vmax.f32 %v2572_v35, %v2584_v39 }
 0x2b2   :  { %5532 = vst [vmem:[#allocation6_spill] sm:$0xff] %v2572_v35 }
 0x2b6   :  { %v264_v37 = vpop.permute.xlu1 %263 }
 0x2b7   :  { %v2587_v41 = vmul.f32 %v264_v37, %v2441_v7  ;;  %v2590_v2 = vmul.f32 %v264_v37, %v2446_v8 }
 0x2b9   :  { %5537 = vst [vmem:[#allocation11_spill] sm:$0xff] %v2587_v41  ;;  %v275_v10 = vmax.f32 %v2575_v34, %v2587_v41  ;;  %v284_v0 = vmax.f32 %v2578_v36, %v2590_v2 }
 0x2ba   :  { %5538 = vst [vmem:[#allocation12_spill] sm:$0xff] %v2590_v2 }
 0x2bb   :  { %v276_v1 = vmax.f32 %v274_v4, %v275_v10  ;;  %v285_v42 = vmax.f32 %v283_v9, %v284_v0 }
 0x2bd   :  { %v329_v43 = vpop.permute.xlu0 %328  ;;  %v277_v7 = vrot.slane %v276_v1, 4  ;;  %v286_v44 = vrot.slane %v285_v42, 4 }
 0x2be   :  { %v2601_v8 = vmul.f32 %v2483_v19, %v329_v43  ;;  %v2604_v45 = vmul.f32 %v2488_v20, %v329_v43 }
 0x2bf   :  { %v325_v51 = vpop.permute.xlu1 %324  ;;  %v278_v52 = vmax.f32 %v276_v1, %v277_v7  ;;  %v287_v54 = vmax.f32 %v285_v42, %v286_v44 }
 0x2c0   :  { %5539 = vst [vmem:[#allocation13_spill] sm:$0xff] %v2601_v8  ;;  %v2619_v19 = vmul.f32 %v2503_v23, %v325_v51  ;;  %v2622_v20 = vmul.f32 %v2508_v24, %v325_v51  ;;  %v343_v14 = vmax.f32 %v2607_v46, %v2601_v8  ;;  %v352_v15 = vmax.f32 %v2610_v47, %v2604_v45 }
 0x2c1   :  { %5540 = vst [vmem:[#allocation14_spill] sm:$0xff] %v2604_v45  ;;  %v279_v55 = vrot.slane %v278_v52, 2  ;;  %v288_v56 = vrot.slane %v287_v54, 2 }
 0x2c2   :  { %5545 = vst [vmem:[#allocation19_spill] sm:$0xff] %v2619_v19  ;;  %v344_v21 = vmax.f32 %v2619_v19, %v2613_v48  ;;  %v353_v22 = vmax.f32 %v2622_v20, %v2616_v50  ;;  %v361_v40 = vadd.f32 %v2619_v19, %v2607_v46 }
 0x2c3   :  { %5546 = vst [vmem:[#allocation20_spill] sm:$0xff] %v2622_v20  ;;  %v280_v24 = vmax.f32 %v278_v52, %v279_v55  ;;  %v289_v60 = vmax.f32 %v287_v54, %v288_v56 }
 0x2c4   :  { %v345_v57 = vmax.f32 %v343_v14, %v344_v21  ;;  %v354_v23 = vmax.f32 %v352_v15, %v353_v22 }
 0x2c5   :  { %v281_v6 = vrot.slane %v280_v24, 1  ;;  %v290_v11 = vrot.slane %v289_v60, 1 }
 0x2c6   :  { %v346_v58 = vrot.slane %v345_v57, 4  ;;  %v355_v59 = vrot.slane %v354_v23, 4 }
 0x2c7   :  { %v282_v18 = vmax.f32 %v280_v24, %v281_v6  ;;  %v291_v25 = vmax.f32 %v289_v60, %v290_v11 }
 0x2c8   :  { %v347_v61 = vmax.f32 %v345_v57, %v346_v58  ;;  %v356_v62 = vmax.f32 %v354_v23, %v355_v59 }
 0x2ca   :  { %v348_v63 = vrot.slane %v347_v61, 2  ;;  %v357_v3 = vrot.slane %v356_v62, 2 }
 0x2cc   :  { %v349_v12 = vmax.f32 %v347_v61, %v348_v63  ;;  %v358_v13 = vmax.f32 %v356_v62, %v357_v3 }
 0x2ce   :  { %v350_v16 = vrot.slane %v349_v12, 1  ;;  %v359_v17 = vrot.slane %v358_v13, 1 }
 0x2d0   :  { %v351_v26 = vmax.f32 %v349_v12, %v350_v16  ;;  %v360_v27 = vmax.f32 %v358_v13, %v359_v17  ;;  %v370_v13 = vadd.f32 %v2622_v20, %v2610_v47  ;;  %v2371_v47 = vmov 32.0  }
 0x2d1   :  { %2301 = vrcp.f32 %v2371_v47 }
 0x2d2   :  { %v2638_v28 = vsel %vm383_vm6, %v282_v18, %v351_v26  ;;  %v2642_v49 = vsel %vm383_vm6, %v291_v25, %v360_v27  ;;  %v301_v18 = vadd.f32 %v2578_v36, %v2572_v35  ;;  %v371_v25 = vadd.f32 %v370_v13, %v2604_v45 }
 0x2d3   :  { %5547 = vst [vmem:[#allocation21_spill] sm:$0xff] %v2638_v28  ;;  %513 = vrot.lane.b32.xlu0 %v2642_v49, %s2331_s2  ;;  %447 = vrot.lane.b32.xlu2 %v2642_v49, %s2332_s11 }
 0x2d4   :  { %5548 = vst [vmem:[#allocation22_spill] sm:$0xff] %v2642_v49  ;;  %445 = vrot.lane.b32.xlu1 %v2638_v28, %s2332_s11  ;;  %v302_v27 = vadd.f32 %v301_v18, %v2584_v39  ;;  %v372_v20 = vadd.f32 %v371_v25, %v2616_v50  ;;  %v292_v25 = vadd.f32 %v2575_v34, %v2569_v33 }
 0x2d5   :  { %v362_v50 = vadd.f32 %v361_v40, %v2601_v8 }
 0x2d6   :  { %v303_v13 = vadd.f32 %v302_v27, %v2590_v2  ;;  %v373_v19 = vrot.slane %v372_v20, 4  ;;  %v293_v47 = vadd.f32 %v292_v25, %v2581_v38 }
 0x2d7   :  { %v2302_v36 = vpop.eup %2301  ;;  %v363_v27 = vadd.f32 %v362_v50, %v2613_v48 }
 0x2d8   :  { %v304_v39 = vrot.slane %v303_v13, 4  ;;  %v374_v2 = vadd.f32 %v373_v19, %v372_v20  ;;  %v294_v40 = vadd.f32 %v293_v47, %v2587_v41  ;;  %v311_v35 = vmul.f32 32.0, %v2302_v36 }
 0x2d9   :  { %v364_v50 = vrot.slane %v363_v27, 4  ;;  %vm315_vm7 = vweird.f32 %v2302_v36 }
 0x2da   :  { %v305_v8 = vadd.f32 %v304_v39, %v303_v13  ;;  %v375_v19 = vrot.slane %v374_v2, 2  ;;  %v295_v48 = vrot.slane %v294_v40, 4  ;;  %v312_v33 = vsub.f32 1.0, %v311_v35 }
 0x2db   :  { %544 = vrot.lane.b32.xlu0 %v2638_v28, %s2333_s12  ;;  %478 = vrot.lane.b32.xlu2 %v2638_v28, %s2334_s13 }
 0x2dc   :  { %480 = vrot.lane.b32.xlu1 %v2642_v49, %s2334_s13  ;;  %v306_v38 = vrot.slane %v305_v8, 2  ;;  %v296_v39 = vadd.f32 %v295_v48, %v294_v40  ;;  %v313_v47 = vmul.f32 %v2302_v36, %v312_v33 }
 0x2de   :  { %v307_v13 = vadd.f32 %v306_v38, %v305_v8 }
 0x2e3   :  { %612 = vrot.lane.b32.xlu0 %v2642_v49, %s2335_s14  ;;  %546 = vrot.lane.b32.xlu2 %v2642_v49, %s2333_s12 }
 0x2e4   :  { %511 = vrot.lane.b32.xlu1 %v2638_v28, %s2331_s2 }
 0x2eb   :  { %643 = vrot.lane.b32.xlu0 %v2638_v28, %s2336_s15  ;;  %577 = vrot.lane.b32.xlu2 %v2638_v28, %s2337_s16 }
 0x2ec   :  { %579 = vrot.lane.b32.xlu1 %v2642_v49, %s2337_s16 }
 0x2f3   :  { %711 = vrot.lane.b32.xlu0 %v2642_v49, %s2338_s17  ;;  %645 = vrot.lane.b32.xlu2 %v2642_v49, %s2336_s15 }
 0x2f4   :  { %610 = vrot.lane.b32.xlu1 %v2638_v28, %s2335_s14 }
 0x2fb   :  { %742 = vrot.lane.b32.xlu0 %v2638_v28, %s2339_s18  ;;  %676 = vrot.lane.b32.xlu2 %v2638_v28, %s2340_s19 }
 0x2fc   :  { %678 = vrot.lane.b32.xlu1 %v2642_v49, %s2340_s19 }
 0x303   :  { %810 = vrot.lane.b32.xlu0 %v2642_v49, %s2341_s20  ;;  %744 = vrot.lane.b32.xlu2 %v2642_v49, %s2339_s18 }
 0x304   :  { %709 = vrot.lane.b32.xlu1 %v2638_v28, %s2338_s17 }
 0x30b   :  { %841 = vrot.lane.b32.xlu0 %v2638_v28, %s2342_s21  ;;  %775 = vrot.lane.b32.xlu2 %v2638_v28, %s2343_s22 }
 0x30c   :  { %777 = vrot.lane.b32.xlu1 %v2642_v49, %s2343_s22 }
 0x313   :  { %909 = vrot.lane.b32.xlu0 %v2642_v49, %s2344_s23  ;;  %843 = vrot.lane.b32.xlu2 %v2642_v49, %s2342_s21 }
 0x314   :  { %808 = vrot.lane.b32.xlu1 %v2638_v28, %s2341_s20 }
 0x31b   :  { %940 = vrot.lane.b32.xlu0 %v2638_v28, %s2345_s24  ;;  %874 = vrot.lane.b32.xlu2 %v2638_v28, %s2346_s25 }
 0x31c   :  { %876 = vrot.lane.b32.xlu1 %v2642_v49, %s2346_s25 }
 0x323   :  { %1008 = vrot.lane.b32.xlu0 %v2642_v49, %s2347_s26  ;;  %942 = vrot.lane.b32.xlu2 %v2642_v49, %s2345_s24 }
 0x324   :  { %907 = vrot.lane.b32.xlu1 %v2638_v28, %s2344_s23 }
 0x32b   :  { %1039 = vrot.lane.b32.xlu0 %v2638_v28, %s2348_s27  ;;  %973 = vrot.lane.b32.xlu2 %v2638_v28, %s2349_s0 }
 0x32c   :  { %975 = vrot.lane.b32.xlu1 %v2642_v49, %s2349_s0 }
 0x32d   :  { %v2716_v29 = vpop.permute.xlu2 %447 }
 0x333   :  { %1107 = vrot.lane.b32.xlu0 %v2642_v49, %s2350_s4  ;;  %1041 = vrot.lane.b32.xlu2 %v2642_v49, %s2348_s27 }
 0x334   :  { %1006 = vrot.lane.b32.xlu1 %v2638_v28, %s2347_s26 }
 0x335   :  { %v2724_v30 = vpop.permute.xlu2 %478 }
 0x33b   :  { %1138 = vrot.lane.b32.xlu0 %v2638_v28, %s2351_s28  ;;  %1072 = vrot.lane.b32.xlu2 %v2638_v28, %s2352_s29 }
 0x33c   :  { %1074 = vrot.lane.b32.xlu1 %v2642_v49, %s2352_s29 }
 0x33d   :  { %v2732_v31 = vpop.permute.xlu2 %546 }
 0x343   :  { %1206 = vrot.lane.b32.xlu0 %v2642_v49, %s5417_s30  ;;  %1140 = vrot.lane.b32.xlu2 %v2642_v49, %s2351_s28 }
 0x344   :  { %1105 = vrot.lane.b32.xlu1 %v2638_v28, %s2350_s4 }
 0x345   :  { %v2740_v32 = vpop.permute.xlu0 %513  ;;  %v2742_v37 = vpop.permute.xlu2 %577 }
 0x346   :  { %v2744_v4 = vpop.permute.xlu1 %445 }
 0x34b   :  { %1257 = vrot.lane.b32.xlu0 %v2638_v28, %s2328_s10  ;;  %1171 = vrot.lane.b32.xlu2 %v2638_v28, %s2354_s6 }
 0x34c   :  { %1173 = vrot.lane.b32.xlu1 %v2642_v49, %s2354_s6 }
 0x34d   :  { %v2752_v9 = vpop.permute.xlu0 %544  ;;  %v2754_v10 = vpop.permute.xlu2 %645 }
 0x34e   :  { %v2756_v0 = vpop.permute.xlu1 %480 }
 0x353   :  { %1325 = vrot.lane.b32.xlu0 %v2642_v49, %s5421_s7  ;;  %1259 = vrot.lane.b32.xlu2 %v2642_v49, %s2328_s10 }
 0x354   :  { %1204 = vrot.lane.b32.xlu1 %v2638_v28, %s5417_s30  ;;  %s5431_s30 = smov 112  }
 0x355   :  { %v2764_v1 = vpop.permute.xlu0 %612  ;;  %v2766_v42 = vpop.permute.xlu2 %676 }
 0x356   :  { %v2768_v43 = vpop.permute.xlu1 %511 }
 0x35b   :  { %1356 = vrot.lane.b32.xlu0 %v2638_v28, %s5425_s8  ;;  %1290 = vrot.lane.b32.xlu2 %v2638_v28, %s5419_s1 }
 0x35c   :  { %1292 = vrot.lane.b32.xlu1 %v2642_v49, %s5419_s1  ;;  %s5423_s1 = smov 114  }
 0x35d   :  { %v2776_v7 = vpop.permute.xlu0 %643  ;;  %v2778_v44 = vpop.permute.xlu2 %744 }
 0x35e   :  { %v2780_v51 = vpop.permute.xlu1 %579 }
 0x363   :  { %1424 = vrot.lane.b32.xlu0 %v2642_v49, %s5427_s9  ;;  %1358 = vrot.lane.b32.xlu2 %v2642_v49, %s5425_s8  ;;  %s5429_s8 = smov 111  }
 0x364   :  { %1323 = vrot.lane.b32.xlu1 %v2638_v28, %s5421_s7  ;;  %s5433_s7 = smov 110  }
 0x365   :  { %v2788_v52 = vpop.permute.xlu0 %711  ;;  %v2790_v54 = vpop.permute.xlu2 %775 }
 0x366   :  { %v2792_v14 = vpop.permute.xlu1 %610 }
 0x36b   :  { %1455 = vrot.lane.b32.xlu0 %v2638_v28, %s5431_s30  ;;  %1389 = vrot.lane.b32.xlu2 %v2638_v28, %s5423_s1 }
 0x36c   :  { %1391 = vrot.lane.b32.xlu1 %v2642_v49, %s5423_s1  ;;  %s5437_s1 = smov 109  }
 0x36d   :  { %v2800_v15 = vpop.permute.xlu0 %742  ;;  %v2802_v21 = vpop.permute.xlu2 %843 }
 0x36e   :  { %v2804_v22 = vpop.permute.xlu1 %678 }
 0x373   :  { %1523 = vrot.lane.b32.xlu0 %v2642_v49, %s5433_s7  ;;  %1457 = vrot.lane.b32.xlu2 %v2642_v49, %s5431_s30  ;;  %s5435_s30 = smov 99  }
 0x374   :  { %1422 = vrot.lane.b32.xlu1 %v2638_v28, %s5427_s9  ;;  %s5442_s9 = smov 98  }
 0x375   :  { %v2812_v55 = vpop.permute.xlu0 %810  ;;  %v2814_v56 = vpop.permute.xlu2 %874 }
 0x376   :  { %5549 = vst [vmem:[#allocation23_spill] sm:$0xff] %v2814_v56  ;;  %v2816_v57 = vpop.permute.xlu1 %709 }
 0x37b   :  { %1554 = vrot.lane.b32.xlu0 %v2638_v28, %s5437_s1  ;;  %1488 = vrot.lane.b32.xlu2 %v2638_v28, %s5429_s8 }
 0x37c   :  { %1490 = vrot.lane.b32.xlu1 %v2642_v49, %s5429_s8  ;;  %s2365_s8 = smov 97  }
 0x37d   :  { %v2824_v23 = vpop.permute.xlu0 %841  ;;  %v2826_v58 = vpop.permute.xlu2 %942 }
 0x37e   :  { %v2828_v59 = vpop.permute.xlu1 %777 }
 0x383   :  { %1622 = vrot.lane.b32.xlu0 %v2642_v49, %s5442_s9  ;;  %1556 = vrot.lane.b32.xlu2 %v2642_v49, %s5437_s1  ;;  %s5464_s1 = smov 96  }
 0x384   :  { %1521 = vrot.lane.b32.xlu1 %v2638_v28, %s5433_s7  ;;  %s5452_s7 = smov 95  }
 0x385   :  { %v2836_v24 = vpop.permute.xlu0 %909  ;;  %v2838_v60 = vpop.permute.xlu2 %973 }
 0x386   :  { %5550 = vst [vmem:[#allocation24_spill] sm:$0xff] %v2836_v24  ;;  %v2840_v61 = vpop.permute.xlu1 %808 }
 0x387   :  { %5551 = vst [vmem:[#allocation25_spill] sm:$0xff] %v2838_v60 }
 0x38b   :  { %1653 = vrot.lane.b32.xlu0 %v2638_v28, %s2365_s8  ;;  %1587 = vrot.lane.b32.xlu2 %v2638_v28, %s5435_s30 }
 0x38c   :  { %1589 = vrot.lane.b32.xlu1 %v2642_v49, %s5435_s30  ;;  %s5454_s30 = smov 94  }
 0x38d   :  { %v2848_v62 = vpop.permute.xlu0 %940  ;;  %v2850_v63 = vpop.permute.xlu2 %1041 }
 0x38e   :  { %5552 = vst [vmem:[#allocation26_spill] sm:$0xff] %v2850_v63  ;;  %v2852_v3 = vpop.permute.xlu1 %876 }
 0x38f   :  { %5553 = vst [vmem:[#allocation27_spill] sm:$0xff] %v2852_v3 }
 0x393   :  { %1721 = vrot.lane.b32.xlu0 %v2642_v49, %s5452_s7  ;;  %1655 = vrot.lane.b32.xlu2 %v2642_v49, %s2365_s8 }
 0x394   :  { %1620 = vrot.lane.b32.xlu1 %v2638_v28, %s5442_s9  ;;  %s2370_s9 = smov 83  }
 0x395   :  { %v2860_v6 = vpop.permute.xlu0 %1008  ;;  %v2862_v11 = vpop.permute.xlu2 %1072 }
 0x396   :  { %5554 = vst [vmem:[#allocation28_spill] sm:$0xff] %v2860_v6  ;;  %v2864_v12 = vpop.permute.xlu1 %907 }
 0x397   :  { %5555 = vst [vmem:[#allocation29_spill] sm:$0xff] %v2862_v11 }
 0x398   :  { %5556 = vst [vmem:[#allocation30_spill] sm:$0xff] %v2864_v12 }
 0x39b   :  { %1752 = vrot.lane.b32.xlu0 %v2638_v28, %s5454_s30  ;;  %1686 = vrot.lane.b32.xlu2 %v2638_v28, %s5464_s1 }
 0x39c   :  { %1688 = vrot.lane.b32.xlu1 %v2642_v49, %s5464_s1  ;;  %s5475_s1 = smov 80  }
 0x39d   :  { %v2874_v16 = vpop.permute.xlu0 %1039  ;;  %v2876_v17 = vpop.permute.xlu2 %1140 }
 0x39e   :  { %5557 = vst [vmem:[#allocation31_spill] sm:$0xff] %v2874_v16  ;;  %v2881_v26 = vpop.permute.xlu1 %975 }
 0x39f   :  { %5558 = vst [vmem:[#allocation32_spill] sm:$0xff] %v2876_v17  ;;  %v365_v17 = vadd.f32 %v364_v50, %v363_v27  ;;  %v308_v27 = vrot.slane %v307_v13, 1  ;;  %v314_v50 = vadd.f32 %v2302_v36, %v313_v47 }
 0x3a0   :  { %5559 = vst [vmem:[#allocation33_spill] sm:$0xff] %v2881_v26 }
 0x3a1   :  { %v309_v38 = vadd.f32 %v308_v27, %v307_v13  ;;  %v316_v8 = vsel %vm315_vm7, %v2302_v36, %v314_v50  ;;  %vm5481_vm7 = vcmp.lt.s32.totalorder %v2525_v53, 96 }
 0x3a3   :  { %1820 = vrot.lane.b32.xlu0 %v2642_v49, %s2370_s9  ;;  %1754 = vrot.lane.b32.xlu2 %v2642_v49, %s5454_s30  ;;  %s5471_s30 = smov 93   ;;  %v318_v13 = vmul.f32 %v316_v8, %v309_v38 }
 0x3a4   :  { %1719 = vrot.lane.b32.xlu1 %v2638_v28, %s5452_s7  ;;  %s5473_s7 = smov 82  }
 0x3a5   :  { %v2894_v18 = vpop.permute.xlu0 %1107  ;;  %v2896_v45 = vpop.permute.xlu2 %1171 }
 0x3a6   :  { %5560 = vst [vmem:[#allocation34_spill] sm:$0xff] %v2894_v18  ;;  %v2901_v46 = vpop.permute.xlu1 %1006  ;;  %v376_v18 = vadd.f32 %v375_v19, %v374_v2  ;;  %v297_v2 = vrot.slane %v296_v39, 2 }
 0x3a7   :  { %5561 = vst [vmem:[#allocation35_spill] sm:$0xff] %v2896_v45  ;;  %v366_v45 = vrot.slane %v365_v17, 2 }
 0x3a8   :  { %5562 = vst [vmem:[#allocation36_spill] sm:$0xff] %v2901_v46  ;;  %v298_v33 = vadd.f32 %v297_v2, %v296_v39 }
 0x3a9   :  { %v367_v19 = vadd.f32 %v366_v45, %v365_v17 }
 0x3aa   :  { %v299_v39 = vrot.slane %v298_v33, 1 }
 0x3ab   :  { %1851 = vrot.lane.b32.xlu0 %v2638_v28, %s5473_s7  ;;  %1785 = vrot.lane.b32.xlu2 %v2638_v28, %s5471_s30  ;;  %v368_v45 = vrot.slane %v367_v19, 1 }
 0x3ac   :  { %1787 = vrot.lane.b32.xlu1 %v2642_v49, %s5471_s30  ;;  %s2375_s30 = smov 79  }
 0x3ad   :  { %v2912_v34 = vpop.permute.xlu0 %1138  ;;  %v1260_v25 = vpop.permute.xlu2 %1259  ;;  %v369_v2 = vadd.f32 %v368_v45, %v367_v19 }
 0x3ae   :  { %5563 = vst [vmem:[#allocation37_spill] sm:$0xff] %v2912_v34  ;;  %v2914_v20 = vpop.permute.xlu1 %1074 }
 0x3af   :  { %5564 = vst [vmem:[#allocation38_spill] sm:$0xff] %v2914_v20  ;;  %v377_v20 = vrot.slane %v376_v18, 1  ;;  %v379_v50 = vmul.f32 %v369_v2, %v316_v8 }
 0x3b1   :  { %v378_v11 = vadd.f32 %v377_v20, %v376_v18 }
 0x3b3   :  { %1919 = vrot.lane.b32.xlu0 %v2642_v49, %s5475_s1  ;;  %1853 = vrot.lane.b32.xlu2 %v2642_v49, %s5473_s7  ;;  %s2376_s7 = smov 81   ;;  %v380_v17 = vmul.f32 %v378_v11, %v316_v8  ;;  %v300_v11 = vadd.f32 %v299_v39, %v298_v33 }
 0x3b4   :  { %1818 = vrot.lane.b32.xlu1 %v2638_v28, %s2370_s9 }
 0x3b5   :  { %v1207_v41 = vpop.permute.xlu0 %1206  ;;  %v1291_v34 = vpop.permute.xlu2 %1290  ;;  %v2943_v36 = vsel %vm383_vm6, %v318_v13, %v380_v17  ;;  %v317_v45 = vmul.f32 %v316_v8, %v300_v11 }
 0x3b6   :  { %v2922_v35 = vpop.permute.xlu1 %1105 }
 0x3b7   :  { %5565 = vst [vmem:[#allocation39_spill] sm:$0xff] %v2922_v35  ;;  %v2962_v33 = vsel %vm383_vm6, %v317_v45, %v379_v50  ;;  %vm5479_vm6 = vcmp.lt.s32.totalorder %v2525_v53, 94 }
 0x3bb   :  { %1950 = vrot.lane.b32.xlu0 %v2638_v28, %s2375_s30  ;;  %1884 = vrot.lane.b32.xlu2 %v2638_v28, %s2376_s7 }
 0x3bc   :  { %1886 = vrot.lane.b32.xlu1 %v2642_v49, %s2376_s7 }
 0x3bd   :  { %v1258_v48 = vpop.permute.xlu0 %1257  ;;  %v1359_v40 = vpop.permute.xlu2 %1358 }
 0x3be   :  { %v2933_v18 = vsel %vm5509_vm8, %v1258_v48, %v1260_v25  ;;  %v2937_v20 = vsel %vm5509_vm8, %v1260_v25, %v1258_v48  ;;  %v2939_v47 = vpop.permute.xlu1 %1173 }
 0x3bf   :  { %5566 = vst [vmem:[#allocation40_spill] sm:$0xff] %v2933_v18 }
 0x3c0   :  { %5567 = vst [vmem:[#allocation41_spill] sm:$0xff] %v2937_v20 }
 0x3c1   :  { %5568 = vst [vmem:[#allocation42_spill] sm:$0xff] %v2939_v47 }
 0x3c3   :  { %458 = vrot.lane.b32.xlu0 %v2943_v36, %s2332_s11  ;;  %1952 = vrot.lane.b32.xlu2 %v2642_v49, %s2375_s30 }
 0x3c4   :  { %1917 = vrot.lane.b32.xlu1 %v2638_v28, %s5475_s1  ;;  %s5477_s1 = smov 78  }
 0x3c5   :  { %v1326_v25 = vpop.permute.xlu0 %1325  ;;  %v1390_v27 = vpop.permute.xlu2 %1389 }
 0x3c6   :  { %v1205_v19 = vpop.permute.xlu1 %1204 }
 0x3c7   :  { %v2954_v38 = vsel %vm5518_vm9, %v1205_v19, %v1207_v41  ;;  %v2958_v48 = vsel %vm5518_vm9, %v1207_v41, %v1205_v19 }
 0x3c8   :  { %5569 = vst [vmem:[#allocation43_spill] sm:$0xff] %v2954_v38 }
 0x3c9   :  { %5570 = vst [vmem:[#allocation44_spill] sm:$0xff] %v2958_v48 }
 0x3cb   :  { %489 = vrot.lane.b32.xlu0 %v2962_v33, %s2334_s13  ;;  %1983 = vrot.lane.b32.xlu2 %v2638_v28, %s5477_s1 }
 0x3cc   :  { %1985 = vrot.lane.b32.xlu1 %v2642_v49, %s5477_s1  ;;  %s2378_s1 = smov 77  }
 0x3cd   :  { %v1357_v41 = vpop.permute.xlu0 %1356  ;;  %v1458_v8 = vpop.permute.xlu2 %1457 }
 0x3ce   :  { %v2974_v5 = vsel %vm5497_vm10, %v1357_v41, %v1359_v40  ;;  %v2978_v17 = vsel %vm5497_vm10, %v1359_v40, %v1357_v41  ;;  %v1293_v39 = vpop.permute.xlu1 %1292 }
 0x3cf   :  { %5571 = vst [vmem:[#allocation45_spill] sm:$0xff] %v2974_v5  ;;  %v2982_v13 = vsel %vm5519_vm11, %v1291_v34, %v1293_v39  ;;  %v2986_v2 = vsel %vm5519_vm11, %v1293_v39, %v1291_v34 }
 0x3d0   :  { %5572 = vst [vmem:[#allocation46_spill] sm:$0xff] %v2978_v17 }
 0x3d1   :  { %5573 = vst [vmem:[#allocation47_spill] sm:$0xff] %v2982_v13 }
 0x3d2   :  { %5574 = vst [vmem:[#allocation48_spill] sm:$0xff] %v2986_v2 }
 0x3d3   :  { %557 = vrot.lane.b32.xlu0 %v2943_v36, %s2333_s12  ;;  %491 = vrot.lane.b32.xlu2 %v2943_v36, %s2334_s13  ;;  %s5658_s13 = smov 125  }
 0x3d4   :  { %2016 = vrot.lane.b32.xlu1 %v2638_v28, %s2378_s1 }
 0x3d5   :  { %v1425_v40 = vpop.permute.xlu0 %1424  ;;  %v1489_v11 = vpop.permute.xlu2 %1488 }
 0x3d6   :  { %v1324_v50 = vpop.permute.xlu1 %1323 }
 0x3d7   :  { %v2997_v19 = vsel %vm5498_vm12, %v1324_v50, %v1326_v25  ;;  %v3001_v34 = vsel %vm5498_vm12, %v1326_v25, %v1324_v50 }
 0x3d8   :  { %5575 = vst [vmem:[#allocation49_spill] sm:$0xff] %v2997_v19 }
 0x3d9   :  { %5576 = vst [vmem:[#allocation50_spill] sm:$0xff] %v3001_v34 }
 0x3db   :  { %588 = vrot.lane.b32.xlu0 %v2962_v33, %s2337_s16  ;;  %522 = vrot.lane.b32.xlu2 %v2962_v33, %s2331_s2 }
 0x3dc   :  { %456 = vrot.lane.b32.xlu1 %v2962_v33, %s2332_s11  ;;  %s3509_s11 = sld [smem:[#allocation2 + $0x83]] }
 0x3dd   :  { %v1456_v45 = vpop.permute.xlu0 %1455  ;;  %v1557_v41 = vpop.permute.xlu2 %1556 }
 0x3de   :  { %v3013_v39 = vsel %vm5494_vm13, %v1456_v45, %v1458_v8  ;;  %v3017_v25 = vsel %vm5494_vm13, %v1458_v8, %v1456_v45  ;;  %v1392_v50 = vpop.permute.xlu1 %1391 }
 0x3df   :  { %5577 = vst [vmem:[#allocation51_spill] sm:$0xff] %v3013_v39  ;;  %v3021_v17 = vsel %vm5510_vm14, %v1390_v27, %v1392_v50  ;;  %v3025_v5 = vsel %vm5510_vm14, %v1392_v50, %v1390_v27 }
 0x3e0   :  { %5578 = vst [vmem:[#allocation52_spill] sm:$0xff] %v3017_v25 }
 0x3e1   :  { %5579 = vst [vmem:[#allocation53_spill] sm:$0xff] %v3021_v17 }
 0x3e2   :  { %5580 = vst [vmem:[#allocation54_spill] sm:$0xff] %v3025_v5 }
 0x3e3   :  { %656 = vrot.lane.b32.xlu0 %v2943_v36, %s2336_s15  ;;  %590 = vrot.lane.b32.xlu2 %v2943_v36, %s2337_s16  ;;  %s3259_s16 = sld [smem:[#allocation2]] }
 0x3e4   :  { %524 = vrot.lane.b32.xlu1 %v2943_v36, %s2331_s2  ;;  %s5645_s2 = smov 115  }
 0x3e5   :  { %v1524_v8 = vpop.permute.xlu0 %1523  ;;  %v1588_v45 = vpop.permute.xlu2 %1587 }
 0x3e6   :  { %v1423_v25 = vpop.permute.xlu1 %1422 }
 0x3e7   :  { %v3036_v39 = vsel %vm5496_vm15, %v1423_v25, %v1425_v40  ;;  %v3040_v27 = vsel %vm5496_vm15, %v1425_v40, %v1423_v25 }
 0x3e8   :  { %5581 = vst [vmem:[#allocation55_spill] sm:$0xff] %v3036_v39 }
 0x3e9   :  { %5582 = vst [vmem:[#allocation56_spill] sm:$0xff] %v3040_v27 }
 0x3eb   :  { %687 = vrot.lane.b32.xlu0 %v2962_v33, %s2340_s19  ;;  %621 = vrot.lane.b32.xlu2 %v2962_v33, %s2335_s14 }
 0x3ec   :  { %555 = vrot.lane.b32.xlu1 %v2962_v33, %s2333_s12  ;;  %s5657_s12 = smov 114  }
 0x3ed   :  { %v1555_v50 = vpop.permute.xlu0 %1554  ;;  %v1656_v34 = vpop.permute.xlu2 %1655 }
 0x3ee   :  { %v3052_v39 = vsel %vm5489_vm0, %v1555_v50, %v1557_v41  ;;  %v3056_v40 = vsel %vm5489_vm0, %v1557_v41, %v1555_v50  ;;  %v1491_v25 = vpop.permute.xlu1 %1490 }
 0x3ef   :  { %5583 = vst [vmem:[#allocation57_spill] sm:$0xff] %v3052_v39  ;;  %v3060_v27 = vsel %vm5495_vm1, %v1489_v11, %v1491_v25  ;;  %v3064_v19 = vsel %vm5495_vm1, %v1491_v25, %v1489_v11 }
 0x3f0   :  { %5584 = vst [vmem:[#allocation58_spill] sm:$0xff] %v3056_v40 }
 0x3f1   :  { %5585 = vst [vmem:[#allocation59_spill] sm:$0xff] %v3060_v27 }
 0x3f2   :  { %5586 = vst [vmem:[#allocation60_spill] sm:$0xff] %v3064_v19 }
 0x3f3   :  { %755 = vrot.lane.b32.xlu0 %v2943_v36, %s2339_s18  ;;  %689 = vrot.lane.b32.xlu2 %v2943_v36, %s2340_s19  ;;  %s3278_s19 = sld [smem:[#allocation2 + $0x2]] }
 0x3f4   :  { %623 = vrot.lane.b32.xlu1 %v2943_v36, %s2335_s14  ;;  %s3253_s14 = sld [smem:[#allocation2 + $0x18]] }
 0x3f5   :  { %v1623_v41 = vpop.permute.xlu0 %1622  ;;  %v1687_v50 = vpop.permute.xlu2 %1686 }
 0x3f6   :  { %v1522_v40 = vpop.permute.xlu1 %1521 }
 0x3f7   :  { %v3075_v39 = vsel %vm5492_vm2, %v1522_v40, %v1524_v8  ;;  %v3079_v11 = vsel %vm5492_vm2, %v1524_v8, %v1522_v40 }
 0x3f8   :  { %5587 = vst [vmem:[#allocation61_spill] sm:$0xff] %v3075_v39 }
 0x3f9   :  { %5588 = vst [vmem:[#allocation62_spill] sm:$0xff] %v3079_v11 }
 0x3fa   :  { %v5628_v35 = vstv %s3253_s14 }
 0x3fb   :  { %786 = vrot.lane.b32.xlu0 %v2962_v33, %s2343_s22  ;;  %720 = vrot.lane.b32.xlu2 %v2962_v33, %s2338_s17 }
 0x3fc   :  { %654 = vrot.lane.b32.xlu1 %v2962_v33, %s2336_s15  ;;  %s3257_s15 = sld [smem:[#allocation2 + $0x98]] }
 0x3fd   :  { %v1654_v25 = vpop.permute.xlu0 %1653  ;;  %v1755_v19 = vpop.permute.xlu2 %1754 }
 0x3fe   :  { %v3091_v39 = vsel %vm5480_vm3, %v1654_v25, %v1656_v34  ;;  %v3095_v8 = vsel %vm5480_vm3, %v1656_v34, %v1654_v25  ;;  %v1590_v40 = vpop.permute.xlu1 %1589  ;;  %vm5482_vm3 = vcmp.lt.s32.totalorder %v2525_v53, 82 }
 0x3ff   :  { %5589 = vst [vmem:[#allocation63_spill] sm:$0xff] %v3091_v39  ;;  %v3099_v11 = vsel %vm5490_vm4, %v1588_v45, %v1590_v40  ;;  %v3103_v27 = vsel %vm5490_vm4, %v1590_v40, %v1588_v45 }
 0x400   :  { %5590 = vst [vmem:[#allocation64_spill] sm:$0xff] %v3095_v8 }
 0x401   :  { %5591 = vst [vmem:[#allocation65_spill] sm:$0xff] %v3099_v11 }
 0x402   :  { %5592 = vst [vmem:[#allocation66_spill] sm:$0xff] %v3103_v27 }
 0x403   :  { %854 = vrot.lane.b32.xlu0 %v2943_v36, %s2342_s21  ;;  %788 = vrot.lane.b32.xlu2 %v2943_v36, %s2343_s22  ;;  %s3304_s22 = sld [smem:[#allocation2 + $0x5]] }
 0x404   :  { %722 = vrot.lane.b32.xlu1 %v2943_v36, %s2338_s17  ;;  %s3261_s17 = sld [smem:[#allocation2 + $0x3]] }
 0x405   :  { %v1722_v34 = vpop.permute.xlu0 %1721  ;;  %v1786_v25 = vpop.permute.xlu2 %1785 }
 0x406   :  { %v1621_v8 = vpop.permute.xlu1 %1620 }
 0x407   :  { %v3114_v39 = vsel %vm5488_vm5, %v1621_v8, %v1623_v41  ;;  %v3118_v45 = vsel %vm5488_vm5, %v1623_v41, %v1621_v8 }
 0x408   :  { %5593 = vst [vmem:[#allocation67_spill] sm:$0xff] %v3114_v39 }
 0x409   :  { %5594 = vst [vmem:[#allocation68_spill] sm:$0xff] %v3118_v45 }
 0x40b   :  { %885 = vrot.lane.b32.xlu0 %v2962_v33, %s2346_s25  ;;  %819 = vrot.lane.b32.xlu2 %v2962_v33, %s2341_s20 }
 0x40c   :  { %753 = vrot.lane.b32.xlu1 %v2962_v33, %s2339_s18  ;;  %s3267_s18 = sld [smem:[#allocation2 + $0x1]] }
 0x40d   :  { %v1753_v40 = vpop.permute.xlu0 %1752  ;;  %v1854_v27 = vpop.permute.xlu2 %1853 }
 0x40e   :  { %v3130_v39 = vsel %vm5479_vm6, %v1753_v40, %v1755_v19  ;;  %v3134_v41 = vsel %vm5479_vm6, %v1755_v19, %v1753_v40  ;;  %v1689_v8 = vpop.permute.xlu1 %1688  ;;  %vm5484_vm6 = vcmp.lt.s32.totalorder %v2525_v53, 95 }
 0x40f   :  { %5595 = vst [vmem:[#allocation69_spill] sm:$0xff] %v3130_v39  ;;  %v3138_v45 = vsel %vm5481_vm7, %v1687_v50, %v1689_v8  ;;  %v3142_v11 = vsel %vm5481_vm7, %v1689_v8, %v1687_v50  ;;  %vm5483_vm7 = vcmp.lt.s32.totalorder %v2525_v53, 93 }
 0x410   :  { %5596 = vst [vmem:[#allocation70_spill] sm:$0xff] %v3134_v41 }
 0x411   :  { %5597 = vst [vmem:[#allocation71_spill] sm:$0xff] %v3138_v45 }
 0x412   :  { %5598 = vst [vmem:[#allocation72_spill] sm:$0xff] %v3142_v11 }
 0x413   :  { %953 = vrot.lane.b32.xlu0 %v2943_v36, %s2345_s24  ;;  %887 = vrot.lane.b32.xlu2 %v2943_v36, %s2346_s25  ;;  %s3350_s25 = sld [smem:[#allocation2 + $0x80]] }
 0x414   :  { %821 = vrot.lane.b32.xlu1 %v2943_v36, %s2341_s20  ;;  %s3285_s20 = sld [smem:[#allocation2 + $0x6]] }
 0x415   :  { %v1821_v19 = vpop.permute.xlu0 %1820  ;;  %v1885_v40 = vpop.permute.xlu2 %1884 }
 0x416   :  { %v1720_v41 = vpop.permute.xlu1 %1719 }
 0x417   :  { %v3153_v39 = vsel %vm5484_vm6, %v1720_v41, %v1722_v34  ;;  %v3157_v50 = vsel %vm5484_vm6, %v1722_v34, %v1720_v41  ;;  %vm5486_vm6 = vcmp.lt.s32.totalorder %v2525_v53, 81 }
 0x418   :  { %5599 = vst [vmem:[#allocation73_spill] sm:$0xff] %v3153_v39 }
 0x419   :  { %5600 = vst [vmem:[#allocation74_spill] sm:$0xff] %v3157_v50  ;;  %v463_v24 = vstv %s3350_s25  ;;  %s3755_s25 = sld [smem:[#allocation2 + $0x88]] }
 0x41b   :  { %984 = vrot.lane.b32.xlu0 %v2962_v33, %s2349_s0  ;;  %918 = vrot.lane.b32.xlu2 %v2962_v33, %s2344_s23 }
 0x41c   :  { %852 = vrot.lane.b32.xlu1 %v2962_v33, %s2342_s21  ;;  %s3290_s21 = sld [smem:[#allocation2 + $0x4]] }
 0x41d   :  { %v1852_v8 = vpop.permute.xlu0 %1851  ;;  %v1953_v11 = vpop.permute.xlu2 %1952 }
 0x41e   :  { %v3169_v39 = vsel %vm5482_vm3, %v1852_v8, %v1854_v27  ;;  %v3173_v34 = vsel %vm5482_vm3, %v1854_v27, %v1852_v8  ;;  %v1788_v41 = vpop.permute.xlu1 %1787  ;;  %vm5487_vm3 = vcmp.lt.s32.totalorder %v2525_v53, 83 }
 0x41f   :  { %5601 = vst [vmem:[#allocation75_spill] sm:$0xff] %v3169_v39  ;;  %v3177_v50 = vsel %vm5483_vm7, %v1786_v25, %v1788_v41  ;;  %v3181_v45 = vsel %vm5483_vm7, %v1788_v41, %v1786_v25  ;;  %vm5485_vm7 = vcmp.lt.s32.totalorder %v2525_v53, 79 }
 0x420   :  { %5602 = vst [vmem:[#allocation76_spill] sm:$0xff] %v3173_v34 }
 0x421   :  { %5603 = vst [vmem:[#allocation77_spill] sm:$0xff] %v3177_v50 }
 0x422   :  { %5604 = vst [vmem:[#allocation78_spill] sm:$0xff] %v3181_v45 }
 0x423   :  { %1052 = vrot.lane.b32.xlu0 %v2943_v36, %s2348_s27  ;;  %986 = vrot.lane.b32.xlu2 %v2943_v36, %s2349_s0  ;;  %s5631_s0 = smov 126  }
 0x424   :  { %920 = vrot.lane.b32.xlu1 %v2943_v36, %s2344_s23  ;;  %s3314_s23 = sld [smem:[#allocation2 + $0x81]] }
 0x425   :  { %v1920_v27 = vpop.permute.xlu0 %1919  ;;  %v1984_v8 = vpop.permute.xlu2 %1983 }
 0x426   :  { %v1819_v34 = vpop.permute.xlu1 %1818 }
 0x427   :  { %v3192_v39 = vsel %vm5487_vm3, %v1819_v34, %v1821_v19  ;;  %v3196_v25 = vsel %vm5487_vm3, %v1821_v19, %v1819_v34 }
 0x428   :  { %5605 = vst [vmem:[#allocation79_spill] sm:$0xff] %v3192_v39 }
 0x429   :  { %5606 = vst [vmem:[#allocation80_spill] sm:$0xff] %v3196_v25 }
 0x42b   :  { %1083 = vrot.lane.b32.xlu0 %v2962_v33, %s2352_s29  ;;  %1017 = vrot.lane.b32.xlu2 %v2962_v33, %s2347_s26 }
 0x42c   :  { %951 = vrot.lane.b32.xlu1 %v2962_v33, %s2345_s24  ;;  %s3324_s24 = sld [smem:[#allocation2 + $0x9]] }
 0x42d   :  { %v1951_v41 = vpop.permute.xlu0 %1950  ;;  %v492_v45 = vpop.permute.xlu2 %491 }
 0x42e   :  { %v3208_v39 = vsel %vm5485_vm7, %v1951_v41, %v1953_v11  ;;  %v3212_v19 = vsel %vm5485_vm7, %v1953_v11, %v1951_v41  ;;  %v1887_v34 = vpop.permute.xlu1 %1886  ;;  %vm5491_vm7 = vcmp.lt.s32.totalorder %v2525_v53, 80  ;;  %v3232_v11 = vld [vmem:[%s5414_s3 + $0x1] ss:$2 sm:$0x3] }
 0x42f   :  { %5607 = vst [vmem:[#allocation81_spill] sm:$0xff] %v3208_v39  ;;  %v3216_v25 = vsel %vm5486_vm6, %v1885_v40, %v1887_v34  ;;  %v3220_v50 = vsel %vm5486_vm6, %v1887_v34, %v1885_v40  ;;  %v3241_v34 = vld [vmem:[%s5414_s3] ss:$2 sm:$0x3]  ;;  %vm430_vm6 = vcmp.ge.s32.totalorder %v3232_v11, 0  ;;  %vm431_vm3 = vcmp.lt.s32.totalorder %v3232_v11, 16 }
 0x430   :  { %5608 = vst [vmem:[#allocation82_spill] sm:$0xff] %v3212_v19  ;;  %vm403_vm5 = vcmp.ge.s32.totalorder %v3241_v34, 0  ;;  %vm404_vm0 = vcmp.lt.s32.totalorder %v3241_v34, 16  ;;  %vm3263_vm4 = vmand %vm430_vm6, %vm431_vm3  ;;  %vm5499_vm3 = vcmp.lt.s32.totalorder %v2525_v53, 78  ;;  %vm482_vm6 = vcmp.lt.s32.totalorder %v2525_v53, 50 }
 0x431   :  { %5609 = vst [vmem:[#allocation83_spill] sm:$0xff] %v3216_v25  ;;  %v418_v5 = vadd.s32 4294967293, %v3232_v11  ;;  %v484_v47 = vsel %vm482_vm6, %v2756_v0, %v2724_v30  ;;  %v433_v60 = vadd.s32 1, %v3232_v11 }
 0x432   :  { %5610 = vst [vmem:[#allocation84_spill] sm:$0xff] %v3220_v50 }
 0x433   :  { %1151 = vrot.lane.b32.xlu0 %v2943_v36, %s2351_s28  ;;  %1085 = vrot.lane.b32.xlu2 %v2943_v36, %s2352_s29  ;;  %vm419_vm15 = vcmp.ge.s32.totalorder %v418_v5, 0  ;;  %vm420_vm10 = vcmp.lt.s32.totalorder %v418_v5, 16  ;;  %s3417_s29 = sld [smem:[#allocation2 + $0x82]]  ;;  %vm435_vm9 = vcmp.lt.s32.totalorder %v433_v60, 16 }
 0x434   :  { %1019 = vrot.lane.b32.xlu1 %v2943_v36, %s2347_s26  ;;  %s3397_s26 = sld [smem:[#allocation2 + $0x7]] }
 0x435   :  { %v3234_v41 = vpop.permute.xlu0 %458  ;;  %v3236_v40 = vpop.permute.xlu2 %522 }
 0x436   :  { %v1918_v19 = vpop.permute.xlu1 %1917 }
 0x437   :  { %v3245_v39 = vsel %vm5491_vm7, %v1918_v19, %v1920_v27  ;;  %v3249_v50 = vsel %vm5491_vm7, %v1920_v27, %v1918_v19  ;;  %v391_v27 = vadd.s32 4294967293, %v3241_v34  ;;  %vm3274_vm7 = vmand %vm403_vm5, %vm404_vm0  ;;  %v5615_v19 = vmov 0 }
 0x438   :  { %5611 = vst [vmem:[#allocation85_spill] sm:$0xff] %v3245_v39  ;;  %v5616_v19 = vsel %vm3274_vm7, 4294967295, %v5615_v19  ;;  %vm1247_vm0 = vmand %vm3274_vm7, %vm3263_vm4 }
 0x439   :  { %5612 = vst [vmem:[#allocation86_spill] sm:$0xff] %v3249_v50  ;;  %v422_v50 = vadd.s32 4294967294, %v3232_v11  ;;  %vm392_vm5 = vcmp.ge.s32.totalorder %v391_v27, 0  ;;  %vm393_vm2 = vcmp.lt.s32.totalorder %v391_v27, 16 }
 0x43a   :  { %5617 = vst [vmem:[#allocation87_spill] sm:$0xff] %v5616_v19  ;;  %vm3319_vm12 = vmand %vm392_vm5, %vm393_vm2  ;;  %vm449_vm2 = vcmp.lt.s32.totalorder %v2525_v53, 51  ;;  %v426_v19 = vadd.s32 4294967295, %v3232_v11  ;;  %vm515_vm5 = vcmp.lt.s32.totalorder %v2525_v53, 49 }
 0x43b   :  { %1182 = vrot.lane.b32.xlu0 %v2962_v33, %s2354_s6  ;;  %1116 = vrot.lane.b32.xlu2 %v2962_v33, %s2350_s4  ;;  %vm423_vm13 = vcmp.ge.s32.totalorder %v422_v50, 0  ;;  %vm424_vm1 = vcmp.lt.s32.totalorder %v422_v50, 16  ;;  %v3356_v50 = vmul.f32 %v5628_v35, %v2642_v49  ;;  %v450_v46 = vsel %vm449_vm2, %v2744_v4, %v2716_v29 }
 0x43c   :  { %1050 = vrot.lane.b32.xlu1 %v2962_v33, %s2348_s27  ;;  %v451_v35 = vsel %vm449_vm2, %v2716_v29, %v2744_v4  ;;  %v496_v4 = vstv %s3314_s23  ;;  %vm427_vm8 = vcmp.ge.s32.totalorder %v426_v19, 0  ;;  %vm428_vm14 = vcmp.lt.s32.totalorder %v426_v19, 16  ;;  %s3400_s27 = sld [smem:[#allocation2 + $0x8]] }
 0x43d   :  { %v490_v25 = vpop.permute.xlu0 %489  ;;  %v3287_v20 = vpop.permute.xlu2 %590  ;;  %5629 = vst [vmem:[#allocation91_spill] sm:$0xff] %v3356_v50  ;;  %s3673_s23 = sld [smem:[#allocation2 + $0x86]] }
 0x43e   :  { %v3294_v17 = vsel %vm482_vm6, %v490_v25, %v492_v45  ;;  %v3298_v18 = vsel %vm482_vm6, %v492_v45, %v490_v25  ;;  %v1986_v38 = vpop.permute.xlu1 %1985  ;;  %v5620_v45 = vmov 0  }
 0x43f   :  { %v3308_v48 = vsel %vm5499_vm3, %v1984_v8, %v1986_v38  ;;  %v3312_v28 = vsel %vm5499_vm3, %v1986_v38, %v1984_v8  ;;  %v3317_v25 = vsel %vm1247_vm0, 1, %v5620_v45  ;;  %vm3326_vm3 = vmand %vm423_vm13, %vm424_vm1  ;;  %vm5520_vm13 = vcmp.lt.s32.totalorder %v2525_v53, 48 }
 0x440   :  { %5618 = vst [vmem:[#allocation88_spill] sm:$0xff] %v3308_v48  ;;  %vm3337_vm0 = vmand %vm419_vm15, %vm420_vm10  ;;  %v552_v8 = vstv %s3261_s17  ;;  %v486_v48 = vstv %s3267_s18  ;;  %vm5521_vm15 = vcmp.lt.s32.totalorder %v2525_v53, 47  ;;  %v549_v63 = vsel %vm5520_vm13, %v2752_v9, %v2732_v31  ;;  %s3597_s17 = sld [smem:[#allocation2 + $0xa]] }
 0x441   :  { %5619 = vst [vmem:[#allocation89_spill] sm:$0xff] %v3312_v28  ;;  %v453_v28 = vstv %s3259_s16  ;;  %vm501_vm10 = vmand %vm3319_vm12, %vm3326_vm3  ;;  %v3441_v19 = vmul.f32 %v552_v8, %v549_v63  ;;  %s3592_s16 = sld [smem:[#allocation2 + $0x85]] }
 0x442   :  { %5621 = vst [vmem:[#allocation90_spill] sm:$0xff] %v3317_v25  ;;  %vm468_vm1 = vmand %vm3319_vm12, %vm3337_vm0  ;;  %v550_v25 = vsel %vm5520_vm13, %v2732_v31, %v2752_v9  ;;  %v502_v50 = vsel %vm501_vm10, 1, %v5620_v45  ;;  %v454_v49 = vmul.f32 %v453_v28, %v451_v35  ;;  %v455_v26 = vmul.f32 %v453_v28, %v450_v46  ;;  %s3633_s18 = sld [smem:[#allocation2 + $0xf]] }
 0x443   :  { %1270 = vrot.lane.b32.xlu0 %v2943_v36, %s2328_s10  ;;  %1184 = vrot.lane.b32.xlu2 %v2943_v36, %s2354_s6  ;;  %v469_v29 = vsel %vm468_vm1, 1, %v5620_v45  ;;  %v497_v35 = vmul.f32 %v496_v4, %v3298_v18  ;;  %v487_v46 = vmul.f32 %v486_v48, %v484_v47  ;;  %v503_v16 = vperm.slane %v502_v50, 0  ;;  %vm3424_vm10 = vmand %vm427_vm8, %vm428_vm14  ;;  %s3490_s6 = sld [smem:[#allocation2 + $0x84]] }
 0x444   :  { %1118 = vrot.lane.b32.xlu1 %v2943_v36, %s2350_s4  ;;  %s5632_s4 = smov 1   ;;  %v498_v31 = vmul.f32 %v496_v4, %v3294_v17  ;;  %v504_v18 = vperm.slane %v502_v50, 1  ;;  %v470_v12 = vperm.slane %v469_v29, 0  ;;  %vm434_vm1 = vcmp.ge.s32.totalorder %v433_v60, 0  ;;  %vm534_vm8 = vmand %vm3319_vm12, %vm3424_vm10 }
 0x445   :  { %v3346_v2 = vpop.permute.xlu0 %557  ;;  %v3348_v13 = vpop.permute.xlu2 %621  ;;  %v499_v50 = vadd.f32 %v497_v35, %v487_v46  ;;  %vm3453_vm14 = vcmp.eq.s32.totalorder %v503_v16, 1  ;;  %v516_v60 = vsel %vm515_vm5, %v2768_v43, %v2740_v32 }
 0x446   :  { %v3366_v6 = vpop.permute.xlu1 %2016  ;;  %vm3460_vm11 = vcmp.eq.s32.totalorder %v504_v18, 1  ;;  %vm3470_vm13 = vcmp.eq.s32.totalorder %v470_v12, 1  ;;  %v517_v12 = vsel %vm515_vm5, %v2740_v32, %v2768_v43 }
 0x447   :  { %5630 = vst [vmem:[#allocation92_spill] sm:$0xff] %v3366_v6  ;;  %v483_v6 = vsel %vm482_vm6, %v2724_v30, %v2756_v0  ;;  %v3408_v30 = vmul.f32 %v552_v8, %v550_v25  ;;  %vm5524_vm6 = vcmp.lt.s32.totalorder %v2525_v53, 45 }
 0x448   :  { %v488_v28 = vmul.f32 %v486_v48, %v483_v6  ;;  %v471_v6 = vperm.slane %v469_v29, 1 }
 0x449   :  { %v595_v56 = vstv %s3490_s6  ;;  %s5710_s6 = smov 109  }
 0x44a   :  { %v500_v63 = vadd.f32 %v498_v31, %v488_v28 }
 0x44b   :  { %1301 = vrot.lane.b32.xlu0 %v2962_v33, %s5631_s0  ;;  %1215 = vrot.lane.b32.xlu2 %v2962_v33, %s5632_s4 }
 0x44c   :  { %1149 = vrot.lane.b32.xlu1 %v2962_v33, %s2351_s28  ;;  %s3458_s28 = sld [smem:[#allocation2 + $0xc]] }
 0x44d   :  { %v589_v25 = vpop.permute.xlu0 %588  ;;  %v3428_v0 = vpop.permute.xlu2 %689 }
 0x44e   :  { %v3434_v47 = vsel %vm5521_vm15, %v589_v25, %v3287_v20  ;;  %v3439_v48 = vsel %vm5521_vm15, %v3287_v20, %v589_v25  ;;  %v457_v17 = vpop.permute.xlu1 %456  ;;  %vm3474_vm15 = vcmp.eq.s32.totalorder %v471_v6, 1  ;;  %v507_v6 = vsel %vm3453_vm14, %v499_v50, 0.0 }
 0x44f   :  { %v460_v29 = vsel %vm449_vm2, %v457_v17, %v3234_v41  ;;  %v461_v4 = vsel %vm449_vm2, %v3234_v41, %v457_v17  ;;  %vm3466_vm2 = vmand %vm434_vm1, %vm435_vm9  ;;  %v535_v17 = vsel %vm534_vm8, 1, %v5620_v45  ;;  %v437_v50 = vadd.s32 2, %v3232_v11 }
 0x450   :  { %v464_v8 = vmul.f32 %v463_v24, %v461_v4  ;;  %v465_v35 = vmul.f32 %v463_v24, %v460_v29  ;;  %vm600_vm9 = vmand %vm3319_vm12, %vm3466_vm2  ;;  %vm5525_vm1 = vcmp.lt.s32.totalorder %v2525_v53, 35  ;;  %v5646_v25 = vstv %s3278_s19  ;;  %s3650_s19 = sld [smem:[#allocation2 + $0x87]] }
 0x451   :  { %v520_v16 = vmul.f32 %v5646_v25, %v517_v12  ;;  %v5647_v24 = vmov %v5646_v25  ;;  %vm438_vm14 = vcmp.ge.s32.totalorder %v437_v50, 0  ;;  %v596_v25 = vmul.f32 %v595_v56, %v3439_v48 }
 0x452   :  { %v466_v31 = vadd.f32 %v464_v8, %v454_v49  ;;  %v467_v18 = vadd.f32 %v465_v35, %v455_v26  ;;  %v529_v49 = vstv %s3417_s29  ;;  %v508_v26 = vsel %vm3460_vm11, %v500_v63, 0.0  ;;  %s3794_s29 = sld [smem:[#allocation2 + $0x12]] }
 0x453   :  { %1369 = vrot.lane.b32.xlu0 %v2943_v36, %s5645_s2  ;;  %1303 = vrot.lane.b32.xlu2 %v2943_v36, %s5631_s0  ;;  %vm5526_vm11 = vcmp.lt.s32.totalorder %v2525_v53, 46  ;;  %v536_v8 = vperm.slane %v535_v17, 0  ;;  %v537_v35 = vperm.slane %v535_v17, 1  ;;  %s3760_s0 = sld [smem:[#allocation2 + $0xd]] }
 0x454   :  { %v474_v32 = vsel %vm3470_vm13, %v466_v31, 0.0  ;;  %v475_v43 = vsel %vm3474_vm15, %v467_v18, 0.0  ;;  %1217 = vrot.lane.b32.xlu1 %v2943_v36, %s5632_s4  ;;  %v521_v31 = vmul.f32 %v5647_v24, %v516_v60  ;;  %v649_v18 = vsel %vm5524_vm6, %v2754_v10, %v2776_v7  ;;  %vm567_vm15 = vmand %vm3319_vm12, %vm3263_vm4  ;;  %s3788_s4 = sld [smem:[#allocation2 + $0xe]] }
 0x455   :  { %v509_v29 = vadd.f32 %v507_v6, %v474_v32  ;;  %v510_v4 = vadd.f32 %v508_v26, %v475_v43  ;;  %v3514_v20 = vpop.permute.xlu0 %656  ;;  %v3516_v63 = vpop.permute.xlu2 %720  ;;  %vm5648_vm13 = vcmp.lt.s32.totalorder %v2525_v53, 47  ;;  %v601_v60 = vsel %vm600_vm9, 1, %v5620_v45 }
 0x456   :  { %v582_v6 = vsel %vm5648_vm13, %v2742_v37, %v2780_v51  ;;  %v525_v26 = vpop.permute.xlu1 %524  ;;  %vm5649_vm8 = vmmov %vm5648_vm13  ;;  %vm439_vm13 = vcmp.lt.s32.totalorder %v437_v50, 16  ;;  %vm3555_vm9 = vcmp.eq.s32.totalorder %v537_v35, 1  ;;  %v568_v28 = vsel %vm567_vm15, 1, %v5620_v45 }
 0x457   :  { %v583_v17 = vsel %vm5649_vm8, %v2780_v51, %v2742_v37  ;;  %v526_v12 = vsel %vm515_vm5, %v3236_v40, %v525_v26  ;;  %v527_v32 = vsel %vm515_vm5, %v525_v26, %v3236_v40  ;;  %vm3551_vm8 = vcmp.eq.s32.totalorder %v536_v8, 1  ;;  %vm3581_vm5 = vmand %vm438_vm14, %vm439_vm13 }
 0x458   :  { %v530_v43 = vmul.f32 %v529_v49, %v527_v32  ;;  %v531_v37 = vmul.f32 %v529_v49, %v526_v12  ;;  %v3564_v40 = vsel %vm5524_vm6, %v2776_v7, %v2754_v10  ;;  %v5654_v49 = vstv %s3285_s20  ;;  %vm633_vm15 = vmand %vm3319_vm12, %vm3581_vm5 }
 0x459   :  { %v3568_v26 = vmul.f32 %v5654_v49, %v649_v18  ;;  %v5655_v32 = vstv %s3290_s21  ;;  %v602_v3 = vperm.slane %v601_v60, 0  ;;  %v569_v18 = vperm.slane %v568_v28, 0  ;;  %s5671_s21 = smov 112  }
 0x45a   :  { %v532_v8 = vadd.f32 %v530_v43, %v520_v16  ;;  %v533_v12 = vadd.f32 %v531_v37, %v521_v31  ;;  %v586_v51 = vmul.f32 %v5655_v32, %v583_v17  ;;  %v5656_v35 = vmov %v5655_v32 }
 0x45b   :  { %v587_v46 = vmul.f32 %v5656_v35, %v582_v6  ;;  %1400 = vrot.lane.b32.xlu0 %v2962_v33, %s5657_s12  ;;  %1334 = vrot.lane.b32.xlu2 %v2962_v33, %s5658_s13  ;;  %v562_v31 = vstv %s3509_s11  ;;  %v570_v37 = vperm.slane %v568_v28, 1  ;;  %v441_v49 = vadd.s32 3, %v3232_v11  ;;  %s3915_s11 = sld [smem:[#allocation2 + $0x8b]] }
 0x45c   :  { %v540_v7 = vsel %vm3551_vm8, %v532_v8, 0.0  ;;  %v541_v16 = vsel %vm3555_vm9, %v533_v12, 0.0  ;;  %1268 = vrot.lane.b32.xlu1 %v2962_v33, %s2328_s10  ;;  %v597_v24 = vmul.f32 %v595_v56, %v3434_v47  ;;  %v603_v11 = vperm.slane %v601_v60, 1  ;;  %s3627_s10 = sld [smem:[#allocation2 + $0xb]] }
 0x45d   :  { %v542_v6 = vadd.f32 %v540_v7, %v509_v29  ;;  %v543_v17 = vadd.f32 %v541_v16, %v510_v4  ;;  %v688_v50 = vpop.permute.xlu0 %687  ;;  %v3594_v43 = vpop.permute.xlu2 %788  ;;  %v395_v56 = vadd.s32 4294967294, %v3241_v34  ;;  %vm5661_vm13 = vcmp.lt.s32.totalorder %v2525_v53, 48 }
 0x45e   :  { %v3604_v8 = vsel %vm5525_vm1, %v688_v50, %v3428_v0  ;;  %v3609_v29 = vsel %vm5525_vm1, %v3428_v0, %v688_v50  ;;  %v556_v4 = vpop.permute.xlu1 %555  ;;  %vm5662_vm8 = vmmov %vm5661_vm13  ;;  %v615_v48 = vsel %vm5526_vm11, %v2792_v14, %v2764_v1  ;;  %vm3629_vm9 = vcmp.eq.s32.totalorder %v569_v18, 1 }
 0x45f   :  { %v559_v47 = vsel %vm5661_vm13, %v556_v4, %v3346_v2  ;;  %v560_v0 = vsel %vm5662_vm8, %v3346_v2, %v556_v4  ;;  %vm3635_vm13 = vcmp.eq.s32.totalorder %v570_v37, 1  ;;  %v634_v2 = vsel %vm633_vm15, 1, %v5620_v45 }
 0x460   :  { %v563_v60 = vmul.f32 %v562_v31, %v560_v0  ;;  %v564_v12 = vmul.f32 %v562_v31, %v559_v47  ;;  %vm442_vm8 = vcmp.ge.s32.totalorder %v441_v49, 0  ;;  %vm443_vm6 = vcmp.lt.s32.totalorder %v441_v49, 16 }
 0x461   :  { %v598_v35 = vadd.f32 %v596_v25, %v586_v51  ;;  %v599_v7 = vadd.f32 %v597_v24, %v587_v46  ;;  %vm3642_vm1 = vcmp.eq.s32.totalorder %v602_v3, 1  ;;  %vm3646_vm14 = vcmp.eq.s32.totalorder %v603_v11, 1  ;;  %vm3669_vm11 = vmand %vm442_vm8, %vm443_vm6 }
 0x462   :  { %v565_v16 = vadd.f32 %v563_v60, %v3408_v30  ;;  %v566_v18 = vadd.f32 %v564_v12, %v3441_v19  ;;  %vm397_vm7 = vcmp.lt.s32.totalorder %v395_v56, 16  ;;  %vm5672_vm15 = vcmp.lt.s32.totalorder %v2525_v53, 46 }
 0x463   :  { %1468 = vrot.lane.b32.xlu0 %v2943_v36, %s5671_s21  ;;  %1402 = vrot.lane.b32.xlu2 %v2943_v36, %s5657_s12  ;;  %v616_v3 = vsel %vm5672_vm15, %v2764_v1, %v2792_v14  ;;  %v628_v46 = vstv %s3592_s16  ;;  %v635_v24 = vperm.slane %v634_v2, 0  ;;  %v636_v4 = vperm.slane %v634_v2, 1  ;;  %s3917_s12 = sld [smem:[#allocation2 + $0x10]] }
 0x464   :  { %v573_v30 = vsel %vm3629_vm9, %v565_v16, 0.0  ;;  %v574_v19 = vsel %vm3635_vm13, %v566_v18, 0.0  ;;  %1336 = vrot.lane.b32.xlu1 %v2943_v36, %s5658_s13  ;;  %v5675_v49 = vstv %s3285_s20  ;;  %v783_v47 = vstv %s3597_s17  ;;  %vm5679_vm13 = vmmov %vm5672_vm15  ;;  %s5691_s20 = smov 111   ;;  %s3922_s13 = sld [smem:[#allocation2 + $0x11]] }
 0x465   :  { %v575_v1 = vadd.f32 %v573_v30, %v542_v6  ;;  %v576_v14 = vadd.f32 %v574_v19, %v543_v17  ;;  %v3676_v37 = vpop.permute.xlu0 %755  ;;  %v3678_v25 = vpop.permute.xlu2 %819  ;;  %v3683_v11 = vmul.f32 %v5675_v49, %v3564_v40  ;;  %v606_v0 = vsel %vm3642_vm1, %v598_v35, 0.0  ;;  %vm5680_vm8 = vmmov %vm5679_vm13  ;;  %s3994_s16 = sld [smem:[#allocation2 + $0x8c]]  ;;  %s5745_s17 = smov 96  }
 0x466   :  { %v607_v6 = vsel %vm3646_vm14, %v599_v7, 0.0  ;;  %vm5676_vm6 = vcmp.ge.s32.totalorder %v395_v56, 0  ;;  %v624_v28 = vpop.permute.xlu1 %623  ;;  %vm666_vm1 = vmand %vm3319_vm12, %vm3669_vm11  ;;  %v5681_v56 = vstv %s3304_s22  ;;  %v816_v50 = vstv %s3627_s10  ;;  %s5692_s22 = smov 113   ;;  %s5746_s10 = smov 98  }
 0x467   :  { %vm3692_vm9 = vmand %vm5676_vm6, %vm397_vm7  ;;  %v608_v60 = vadd.f32 %v606_v0, %v575_v1  ;;  %v609_v12 = vadd.f32 %v607_v6, %v576_v14  ;;  %v625_v40 = vsel %vm5679_vm13, %v3348_v13, %v624_v28  ;;  %v626_v32 = vsel %vm5680_vm8, %v624_v28, %v3348_v13 }
 0x468   :  { %v619_v2 = vmul.f32 %v5681_v56, %v616_v3  ;;  %v5682_v35 = vmov %v5681_v56  ;;  %v629_v16 = vmul.f32 %v628_v46, %v626_v32  ;;  %v630_v18 = vmul.f32 %v628_v46, %v625_v40  ;;  %vm699_vm14 = vmand %vm3692_vm9, %vm3337_vm0 }
 0x469   :  { %v620_v7 = vmul.f32 %v5682_v35, %v615_v48  ;;  %v948_v31 = vstv %s3633_s18  ;;  %vm3717_vm6 = vcmp.eq.s32.totalorder %v635_v24, 1  ;;  %vm3721_vm12 = vcmp.eq.s32.totalorder %v636_v4, 1  ;;  %s4220_s18 = sld [smem:[#allocation2 + $0x16]] }
 0x46a   :  { %vm5687_vm13 = vcmp.lt.s32.totalorder %v2525_v53, 33  ;;  %v631_v3 = vadd.f32 %v629_v16, %v619_v2  ;;  %v667_v19 = vsel %vm666_vm1, 1, %v5620_v45  ;;  %vm5689_vm7 = vcmp.lt.s32.totalorder %v2525_v53, 35 }
 0x46b   :  { %v747_v48 = vsel %vm5687_vm13, %v2800_v15, %v2778_v44  ;;  %v632_v30 = vadd.f32 %v630_v18, %v620_v7  ;;  %vm5688_vm8 = vmmov %vm5687_vm13  ;;  %v681_v1 = vsel %vm5689_vm7, %v2766_v42, %v2804_v22  ;;  %v694_v24 = vstv %s3650_s19  ;;  %1499 = vrot.lane.b32.xlu0 %v2962_v33, %s5691_s20  ;;  %1433 = vrot.lane.b32.xlu2 %v2962_v33, %s5692_s22  ;;  %s4068_s19 = sld [smem:[#allocation2 + $0x8e]] }
 0x46c   :  { %v748_v46 = vsel %vm5688_vm8, %v2778_v44, %v2800_v15  ;;  %vm5690_vm15 = vmmov %vm5689_vm7  ;;  %v700_v4 = vsel %vm699_vm14, 1, %v5620_v45  ;;  %v639_v44 = vsel %vm3717_vm6, %v631_v3, 0.0  ;;  %1367 = vrot.lane.b32.xlu1 %v2962_v33, %s5645_s2  ;;  %v661_v49 = vstv %s3673_s23  ;;  %s5724_s2 = smov 110   ;;  %s4137_s23 = sld [smem:[#allocation2 + $0x90]] }
 0x46d   :  { %v682_v14 = vsel %vm5690_vm15, %v2804_v22, %v2766_v42  ;;  %v640_v15 = vsel %vm3721_vm12, %v632_v30, 0.0  ;;  %vm5529_vm15 = vcmp.lt.s32.totalorder %v2525_v53, 30  ;;  %v641_v42 = vadd.f32 %v639_v44, %v608_v60  ;;  %v787_v0 = vpop.permute.xlu0 %786  ;;  %v3758_v6 = vpop.permute.xlu2 %887  ;;  %vm732_vm14 = vmand %vm3692_vm9, %vm3326_vm3 }
 0x46e   :  { %v642_v22 = vadd.f32 %v640_v15, %v609_v12  ;;  %v668_v28 = vperm.slane %v667_v19, 0  ;;  %v669_v40 = vperm.slane %v667_v19, 1  ;;  %v695_v32 = vmul.f32 %v694_v24, %v3609_v29  ;;  %v655_v12 = vpop.permute.xlu1 %654 }
 0x46f   :  { %v696_v56 = vmul.f32 %v694_v24, %v3604_v8  ;;  %vm5693_vm1 = vcmp.lt.s32.totalorder %v2525_v53, 32  ;;  %v701_v35 = vperm.slane %v700_v4, 0  ;;  %v702_v29 = vperm.slane %v700_v4, 1 }
 0x470   :  { %v3767_v2 = vsel %vm5693_vm1, %v787_v0, %v3594_v43  ;;  %vm5694_vm7 = vmmov %vm5693_vm1  ;;  %vm5695_vm6 = vcmp.lt.s32.totalorder %v2525_v53, 45  ;;  %v5697_v16 = vstv %s3397_s26  ;;  %v5699_v30 = vstv %s3324_s24  ;;  %s3823_s26 = sld [smem:[#allocation2 + $0x8a]] }
 0x471   :  { %v3772_v60 = vsel %vm5694_vm7, %v3594_v43, %v787_v0  ;;  %v658_v8 = vsel %vm5695_vm6, %v655_v12, %v3514_v20  ;;  %vm5696_vm12 = vmmov %vm5695_vm6  ;;  %v685_v43 = vmul.f32 %v5697_v16, %v682_v14  ;;  %v5698_v18 = vmov %v5697_v16  ;;  %s3840_s24 = sld [smem:[#allocation2 + $0x89]] }
 0x472   :  { %v659_v7 = vsel %vm5696_vm12, %v3514_v20, %v655_v12  ;;  %v686_v13 = vmul.f32 %v5698_v18, %v681_v1  ;;  %v663_v3 = vmul.f32 %v661_v49, %v658_v8  ;;  %v3792_v19 = vmul.f32 %v5699_v30, %v748_v46 }
 0x473   :  { %v662_v27 = vmul.f32 %v661_v49, %v659_v7  ;;  %vm3796_vm13 = vcmp.eq.s32.totalorder %v668_v28, 1  ;;  %vm3800_vm8 = vcmp.eq.s32.totalorder %v669_v40, 1  ;;  %v733_v20 = vsel %vm732_vm14, 1, %v5620_v45  ;;  %1567 = vrot.lane.b32.xlu0 %v2943_v36, %s5710_s6  ;;  %1501 = vrot.lane.b32.xlu2 %v2943_v36, %s5691_s20  ;;  %s5765_s20 = smov 94  }
 0x474   :  { %v697_v1 = vadd.f32 %v695_v32, %v685_v43  ;;  %v698_v14 = vadd.f32 %v696_v56, %v686_v13  ;;  %v665_v46 = vadd.f32 %v663_v3, %v3683_v11  ;;  %v5704_v15 = vmov %v5699_v30  ;;  %1435 = vrot.lane.b32.xlu1 %v2943_v36, %s5692_s22  ;;  %s4152_s22 = sld [smem:[#allocation2 + $0x8f]] }
 0x475   :  { %v664_v44 = vadd.f32 %v662_v27, %v3568_v26  ;;  %v3809_v49 = vmul.f32 %v5704_v15, %v747_v48  ;;  %vm5705_vm1 = vcmp.lt.s32.totalorder %v2525_v53, 34  ;;  %vm3815_vm7 = vcmp.eq.s32.totalorder %v701_v35, 1  ;;  %v3843_v35 = vpop.permute.xlu0 %854 }
 0x476   :  { %v715_v0 = vsel %vm5705_vm1, %v2788_v52, %v2816_v57  ;;  %vm3819_vm14 = vcmp.eq.s32.totalorder %v702_v29, 1  ;;  %vm5711_vm6 = vmmov %vm5705_vm1  ;;  %v673_v48 = vsel %vm3800_vm8, %v665_v46, 0.0  ;;  %v727_v32 = vstv %s3755_s25  ;;  %s5777_s25 = smov 93  }
 0x477   :  { %v714_v26 = vsel %vm5711_vm6, %v2816_v57, %v2788_v52  ;;  %v672_v11 = vsel %vm3796_vm13, %v664_v44, 0.0  ;;  %vm878_vm12 = vcmp.lt.s32.totalorder %v2525_v53, 29  ;;  %v675_v12 = vadd.f32 %v673_v48, %v642_v22  ;;  %v3845_v52 = vpop.permute.xlu2 %918  ;;  %vm5713_vm13 = vmmov %vm5705_vm1 }
 0x478   :  { %v674_v56 = vadd.f32 %v672_v11, %v641_v42  ;;  %v734_v57 = vperm.slane %v733_v20, 0  ;;  %v735_v29 = vperm.slane %v733_v20, 1  ;;  %v5712_v8 = vstv %s3400_s27  ;;  %v723_v42 = vpop.permute.xlu1 %722  ;;  %vm5714_vm8 = vmmov %vm5705_vm1  ;;  %s5723_s27 = smov 99  }
 0x479   :  { %v718_v7 = vmul.f32 %v5712_v8, %v715_v0  ;;  %v882_v16 = vstv %s3760_s0  ;;  %v705_v43 = vsel %vm3815_vm7, %v697_v1, 0.0  ;;  %v706_v18 = vsel %vm3819_vm14, %v698_v14, 0.0  ;;  %vm765_vm1 = vmand %vm3692_vm9, %vm3424_vm10  ;;  %s5778_s0 = smov 95  }
 0x47a   :  { %v707_v13 = vadd.f32 %v705_v43, %v674_v56  ;;  %v708_v22 = vadd.f32 %v706_v18, %v675_v12  ;;  %v724_v27 = vsel %vm5713_vm13, %v3516_v63, %v723_v42  ;;  %v725_v3 = vsel %vm5714_vm8, %v723_v42, %v3516_v63  ;;  %vm798_vm14 = vmand %vm3692_vm9, %vm3263_vm4 }
 0x47b   :  { %v5715_v30 = vmov %v5712_v8  ;;  %v847_v4 = vsel %vm5529_vm15, %v2802_v21, %v2824_v23  ;;  %v728_v20 = vmul.f32 %v727_v32, %v725_v3  ;;  %v729_v1 = vmul.f32 %v727_v32, %v724_v27  ;;  %1598 = vrot.lane.b32.xlu0 %v2962_v33, %s5723_s27  ;;  %1532 = vrot.lane.b32.xlu2 %v2962_v33, %s5724_s2 }
 0x47c   :  { %v719_v24 = vmul.f32 %v5715_v30, %v714_v26  ;;  %v915_v14 = vstv %s3788_s4  ;;  %v1047_v63 = vstv %s3794_s29  ;;  %vm3877_vm6 = vcmp.eq.s32.totalorder %v734_v57, 1  ;;  %1466 = vrot.lane.b32.xlu1 %v2962_v33, %s5671_s21  ;;  %s4108_s21 = sld [smem:[#allocation2 + $0x13]]  ;;  %s5791_s29 = smov 82  }
 0x47d   :  { %vm3881_vm13 = vcmp.eq.s32.totalorder %v735_v29, 1  ;;  %v846_v15 = vsel %vm5529_vm15, %v2824_v23, %v2802_v21  ;;  %v730_v0 = vadd.f32 %v728_v20, %v718_v7  ;;  %v766_v40 = vsel %vm765_vm1, 1, %v5620_v45  ;;  %v886_v29 = vpop.permute.xlu0 %885  ;;  %s4235_s4 = sld [smem:[#allocation2 + $0x91]] }
 0x47e   :  { %v731_v28 = vadd.f32 %v729_v1, %v719_v24  ;;  %v5720_v26 = vstv %s3458_s28  ;;  %vm5721_vm8 = vcmp.lt.s32.totalorder %v2525_v53, 32  ;;  %v793_v56 = vstv %s3823_s26  ;;  %s3981_s28 = sld [smem:[#allocation2 + $0x8d]] }
 0x47f   :  { %v3892_v11 = vmul.f32 %v5720_v26, %v847_v4  ;;  %v780_v48 = vsel %vm5721_vm8, %v2790_v54, %v2828_v59  ;;  %vm5722_vm7 = vmmov %vm5721_vm8  ;;  %v799_v21 = vsel %vm798_vm14, 1, %v5620_v45  ;;  %v738_v23 = vsel %vm3877_vm6, %v730_v0, 0.0  ;;  %v3919_v8 = vpop.permute.xlu2 %986  ;;  %v5743_v0 = vld [vmem:[#allocation27_spill] sm:$0xff]  ;;  %s4307_s26 = sld [smem:[#allocation2 + $0x96]] }
 0x480   :  { %v781_v32 = vsel %vm5722_vm7, %v2828_v59, %v2790_v54  ;;  %v739_v12 = vsel %vm3881_vm13, %v731_v28, 0.0  ;;  %v760_v57 = vstv %s3840_s24  ;;  %v740_v54 = vadd.f32 %v738_v23, %v707_v13  ;;  %v754_v27 = vpop.permute.xlu1 %753  ;;  %vm831_vm7 = vmand %vm3692_vm9, %vm3466_vm2  ;;  %s4367_s24 = sld [smem:[#allocation2 + $0x14]] }
 0x481   :  { %v741_v59 = vadd.f32 %v739_v12, %v708_v22  ;;  %v767_v7 = vperm.slane %v766_v40, 0  ;;  %v768_v43 = vperm.slane %v766_v40, 1  ;;  %vm944_vm1 = vcmp.lt.s32.totalorder %v2525_v53, 18 }
 0x482   :  { %v794_v18 = vmul.f32 %v793_v56, %v3772_v60  ;;  %v795_v42 = vmul.f32 %v793_v56, %v3767_v2  ;;  %v3929_v13 = vsel %vm878_vm12, %v886_v29, %v3758_v6  ;;  %v3934_v22 = vsel %vm878_vm12, %v3758_v6, %v886_v29 }
 0x483   :  { %v800_v3 = vperm.slane %v799_v21, 0  ;;  %v801_v60 = vperm.slane %v799_v21, 1  ;;  %vm5725_vm14 = vcmp.lt.s32.totalorder %v2525_v53, 33  ;;  %v784_v24 = vmul.f32 %v783_v47, %v781_v32  ;;  %1666 = vrot.lane.b32.xlu0 %v2943_v36, %s2365_s8  ;;  %1600 = vrot.lane.b32.xlu2 %v2943_v36, %s5723_s27  ;;  %s4381_s27 = sld [smem:[#allocation2 + $0x94]] }
 0x484   :  { %v757_v2 = vsel %vm5725_vm14, %v754_v27, %v3676_v37  ;;  %vm5726_vm6 = vmmov %vm5725_vm14  ;;  %v785_v6 = vmul.f32 %v783_v47, %v780_v48  ;;  %v5727_v1 = vmov %v5720_v26  ;;  %vm3954_vm13 = vcmp.eq.s32.totalorder %v767_v7, 1  ;;  %1534 = vrot.lane.b32.xlu1 %v2943_v36, %s5724_s2  ;;  %s4384_s2 = sld [smem:[#allocation2 + $0x1a]] }
 0x485   :  { %v758_v30 = vsel %vm5726_vm6, %v3676_v37, %v754_v27  ;;  %v762_v20 = vmul.f32 %v760_v57, %v757_v2  ;;  %v3952_v44 = vmul.f32 %v5727_v1, %v846_v15  ;;  %vm3958_vm8 = vcmp.eq.s32.totalorder %v768_v43, 1  ;;  %v3997_v12 = vpop.permute.xlu0 %953 }
 0x486   :  { %v761_v4 = vmul.f32 %v760_v57, %v758_v30  ;;  %v832_v37 = vsel %vm831_vm7, 1, %v5620_v45  ;;  %v796_v28 = vadd.f32 %v794_v18, %v784_v24  ;;  %v797_v40 = vadd.f32 %v795_v42, %v785_v6 }
 0x487   :  { %v764_v26 = vadd.f32 %v762_v20, %v3809_v49  ;;  %vm5732_vm14 = vcmp.lt.s32.totalorder %v2525_v53, 31  ;;  %vm3973_vm15 = vcmp.eq.s32.totalorder %v800_v3, 1  ;;  %vm3977_vm7 = vcmp.eq.s32.totalorder %v801_v60, 1  ;;  %v3999_v57 = vpop.permute.xlu2 %1017 }
 0x488   :  { %v763_v47 = vadd.f32 %v761_v4, %v3792_v19  ;;  %v813_v15 = vsel %vm5732_vm14, %v2840_v61, %v2812_v55  ;;  %vm5733_vm6 = vmmov %vm5732_vm14  ;;  %v826_v19 = vstv %s3915_s11  ;;  %v833_v49 = vperm.slane %v832_v37, 0  ;;  %s4412_s11 = sld [smem:[#allocation2 + $0x15]] }
 0x489   :  { %v814_v48 = vsel %vm5733_vm6, %v2812_v55, %v2840_v61  ;;  %v772_v61 = vsel %vm3958_vm8, %v764_v26, 0.0  ;;  %v834_v29 = vperm.slane %v832_v37, 1  ;;  %v399_v7 = vadd.s32 4294967295, %v3241_v34  ;;  %vm5738_vm8 = vmmov %vm5733_vm6  ;;  %v5744_v37 = vld [vmem:[#allocation23_spill] sm:$0xff] }
 0x48a   :  { %v771_v55 = vsel %vm3954_vm13, %v763_v47, 0.0  ;;  %v774_v23 = vadd.f32 %v772_v61, %v741_v59  ;;  %v981_v43 = vstv %s3917_s12  ;;  %v1014_v18 = vstv %s3922_s13  ;;  %v822_v59 = vpop.permute.xlu1 %821  ;;  %vm864_vm13 = vmand %vm3692_vm9, %vm3581_vm5  ;;  %s4442_s12 = sld [smem:[#allocation2 + $0x9a]] }
 0x48b   :  { %v773_v21 = vadd.f32 %v771_v55, %v740_v54  ;;  %v804_v42 = vsel %vm3973_vm15, %v796_v28, 0.0  ;;  %v805_v54 = vsel %vm3977_vm7, %v797_v40, 0.0  ;;  %v823_v60 = vsel %vm5738_vm8, %v3678_v25, %v822_v59  ;;  %vm897_vm15 = vmand %vm3692_vm9, %vm3669_vm11  ;;  %1697 = vrot.lane.b32.xlu0 %v2962_v33, %s5745_s17  ;;  %1631 = vrot.lane.b32.xlu2 %v2962_v33, %s5746_s10  ;;  %s4455_s13 = sld [smem:[#allocation2 + $0x95]] }
 0x48c   :  { %v807_v3 = vadd.f32 %v805_v54, %v774_v23  ;;  %v824_v34 = vsel %vm5733_vm6, %v822_v59, %v3678_v25  ;;  %v817_v2 = vmul.f32 %v816_v50, %v814_v48  ;;  %v818_v30 = vmul.f32 %v816_v50, %v813_v15  ;;  %1565 = vrot.lane.b32.xlu1 %v2962_v33, %s5710_s6  ;;  %s4317_s6 = sld [smem:[#allocation2 + $0x92]] }
 0x48d   :  { %v806_v27 = vadd.f32 %v804_v42, %v773_v21  ;;  %v827_v24 = vmul.f32 %v826_v19, %v824_v34  ;;  %v828_v6 = vmul.f32 %v826_v19, %v823_v60  ;;  %v4027_v4 = vsel %vm944_vm1, %v2848_v62, %v2826_v58  ;;  %v985_v55 = vpop.permute.xlu0 %984  ;;  %v5753_v34 = vld [vmem:[#allocation30_spill] sm:$0xff] }
 0x48e   :  { %vm4033_vm7 = vcmp.eq.s32.totalorder %v833_v49, 1  ;;  %vm4037_vm8 = vcmp.eq.s32.totalorder %v834_v29, 1  ;;  %vm400_vm6 = vcmp.ge.s32.totalorder %v399_v7, 0  ;;  %vm401_vm14 = vcmp.lt.s32.totalorder %v399_v7, 16 }
 0x48f   :  { %v829_v20 = vadd.f32 %v827_v24, %v817_v2  ;;  %v830_v1 = vadd.f32 %v828_v6, %v818_v30  ;;  %v865_v46 = vsel %vm864_vm13, 1, %v5620_v45  ;;  %v946_v17 = vsel %vm944_vm1, %v2826_v58, %v2848_v62  ;;  %v4076_v61 = vpop.permute.xlu2 %1085  ;;  %v5754_v2 = vld [vmem:[#allocation24_spill] sm:$0xff] }
 0x490   :  { %v879_v28 = vsel %vm878_vm12, %v5744_v37, %v5743_v0  ;;  %v880_v40 = vsel %vm878_vm12, %v5743_v0, %v5744_v37  ;;  %vm5530_vm9 = vcmp.lt.s32.totalorder %v2525_v53, 15  ;;  %v892_v47 = vstv %s3981_s28  ;;  %vm4072_vm12 = vmand %vm400_vm6, %vm401_vm14  ;;  %s5826_s28 = smov 80  }
 0x491   :  { %v898_v58 = vsel %vm897_vm15, 1, %v5620_v45  ;;  %v837_v62 = vsel %vm4033_vm7, %v829_v20, 0.0  ;;  %v838_v26 = vsel %vm4037_vm8, %v830_v1, 0.0  ;;  %v859_v15 = vstv %s3994_s16  ;;  %vm930_vm15 = vmand %vm4072_vm12, %vm3337_vm0  ;;  %s4524_s16 = sld [smem:[#allocation2 + $0x97]] }
 0x492   :  { %v839_v48 = vadd.f32 %v837_v62, %v806_v27  ;;  %v840_v32 = vadd.f32 %v838_v26, %v807_v3  ;;  %v866_v19 = vperm.slane %v865_v46, 0  ;;  %v867_v49 = vperm.slane %v865_v46, 1  ;;  %v853_v42 = vpop.permute.xlu1 %852 }
 0x493   :  { %v893_v21 = vmul.f32 %v892_v47, %v3934_v22  ;;  %v894_v23 = vmul.f32 %v892_v47, %v3929_v13  ;;  %vm5749_vm13 = vcmp.lt.s32.totalorder %v2525_v53, 17  ;;  %v899_v54 = vperm.slane %v898_v58, 0  ;;  %1765 = vrot.lane.b32.xlu0 %v2943_v36, %s5765_s20  ;;  %1699 = vrot.lane.b32.xlu2 %v2943_v36, %s5745_s17  ;;  %s4526_s17 = sld [smem:[#allocation2 + $0x19]] }
 0x494   :  { %v4083_v29 = vsel %vm5749_vm13, %v985_v55, %v3919_v8  ;;  %vm5750_vm14 = vmmov %vm5749_vm13  ;;  %v900_v22 = vperm.slane %v898_v58, 1  ;;  %vm5751_vm7 = vcmp.lt.s32.totalorder %v2525_v53, 30  ;;  %v884_v27 = vmul.f32 %v882_v16, %v879_v28  ;;  %1633 = vrot.lane.b32.xlu1 %v2943_v36, %s5746_s10  ;;  %s4556_s10 = sld [smem:[#allocation2 + $0x1d]] }
 0x495   :  { %v4088_v7 = vsel %vm5750_vm14, %v3919_v8, %v985_v55  ;;  %v856_v13 = vsel %vm5751_vm7, %v853_v42, %v3843_v35  ;;  %vm5752_vm8 = vmmov %vm5751_vm7  ;;  %v883_v8 = vmul.f32 %v882_v16, %v880_v40  ;;  %vm5755_vm6 = vcmp.lt.s32.totalorder %v2525_v53, 19  ;;  %v4156_v58 = vpop.permute.xlu0 %1052 }
 0x496   :  { %v857_v59 = vsel %vm5752_vm8, %v3843_v35, %v853_v42  ;;  %v861_v60 = vmul.f32 %v859_v15, %v856_v13  ;;  %v913_v30 = vsel %vm5755_vm6, %v5754_v2, %v5753_v34  ;;  %vm4110_vm13 = vcmp.eq.s32.totalorder %v866_v19, 1  ;;  %vm5760_vm7 = vmmov %vm5755_vm6  ;;  %v5766_v19 = vld [vmem:[#allocation31_spill] sm:$0xff] }
 0x497   :  { %v860_v3 = vmul.f32 %v859_v15, %v857_v59  ;;  %vm4114_vm14 = vcmp.eq.s32.totalorder %v867_v49, 1  ;;  %v931_v16 = vsel %vm930_vm15, 1, %v5620_v45  ;;  %v895_v6 = vadd.f32 %v893_v21, %v883_v8  ;;  %v4158_v62 = vpop.permute.xlu2 %1116  ;;  %v5767_v49 = vld [vmem:[#allocation26_spill] sm:$0xff]  ;;  %v5770_v59 = vld [vmem:[#allocation25_spill] sm:$0xff] }
 0x498   :  { %v896_v25 = vadd.f32 %v894_v23, %v884_v27  ;;  %v863_v20 = vadd.f32 %v861_v60, %v3952_v44  ;;  %v4123_v1 = vmul.f32 %v948_v31, %v946_v17  ;;  %v912_v46 = vsel %vm5760_vm7, %v5753_v34, %v5754_v2  ;;  %v5771_v8 = vld [vmem:[#allocation33_spill] sm:$0xff] }
 0x499   :  { %v862_v50 = vadd.f32 %v860_v3, %v3892_v11  ;;  %vm4129_vm8 = vcmp.eq.s32.totalorder %v899_v54, 1  ;;  %vm4133_vm15 = vcmp.eq.s32.totalorder %v900_v22, 1  ;;  %v916_v11 = vmul.f32 %v915_v14, %v913_v30 }
 0x49a   :  { %v871_v17 = vsel %vm4114_vm14, %v863_v20, 0.0  ;;  %v925_v28 = vstv %s4068_s19  ;;  %vm1076_vm7 = vcmp.lt.s32.totalorder %v2525_v53, 14  ;;  %v932_v26 = vperm.slane %v931_v16, 0  ;;  %vm5769_vm14 = vmmov %vm5755_vm6  ;;  %s4576_s19 = sld [smem:[#allocation2 + $0x1b]] }
 0x49b   :  { %v870_v44 = vsel %vm4110_vm13, %v862_v50, 0.0  ;;  %v873_v47 = vadd.f32 %v871_v17, %v840_v32  ;;  %v933_v15 = vperm.slane %v931_v16, 1  ;;  %v917_v55 = vmul.f32 %v915_v14, %v912_v46  ;;  %v921_v32 = vpop.permute.xlu1 %920  ;;  %vm5768_vm13 = vmmov %vm5755_vm6  ;;  %1796 = vrot.lane.b32.xlu0 %v2962_v33, %s5777_s25  ;;  %1730 = vrot.lane.b32.xlu2 %v2962_v33, %s5778_s0 }
 0x49c   :  { %v872_v40 = vadd.f32 %v870_v44, %v839_v48  ;;  %v1045_v21 = vsel %vm5530_vm9, %v5767_v49, %v5766_v19  ;;  %v903_v23 = vsel %vm4129_vm8, %v895_v6, 0.0  ;;  %v904_v48 = vsel %vm4133_vm15, %v896_v25, 0.0  ;;  %vm963_vm8 = vmand %vm4072_vm12, %vm3326_vm3  ;;  %1664 = vrot.lane.b32.xlu1 %v2962_v33, %s2365_s8  ;;  %s4292_s8 = sld [smem:[#allocation2 + $0x93]] }
 0x49d   :  { %v906_v54 = vadd.f32 %v904_v48, %v873_v47  ;;  %v922_v22 = vsel %vm5768_vm13, %v3845_v52, %v921_v32  ;;  %v923_v14 = vsel %vm5769_vm14, %v921_v32, %v3845_v52  ;;  %v1044_v13 = vsel %vm5530_vm9, %v5766_v19, %v5767_v49  ;;  %vm996_vm13 = vmand %vm4072_vm12, %vm3424_vm10  ;;  %v1084_v44 = vpop.permute.xlu0 %1083  ;;  %v5780_v48 = vld [vmem:[#allocation28_spill] sm:$0xff] }
 0x49e   :  { %v905_v42 = vadd.f32 %v903_v23, %v872_v40  ;;  %vm5772_vm15 = vcmp.lt.s32.totalorder %v2525_v53, 17  ;;  %v926_v3 = vmul.f32 %v925_v28, %v923_v14  ;;  %v927_v60 = vmul.f32 %v925_v28, %v922_v22  ;;  %v5779_v23 = vld [vmem:[#allocation36_spill] sm:$0xff] }
 0x49f   :  { %v979_v27 = vsel %vm5772_vm15, %v5771_v8, %v5770_v59  ;;  %v950_v52 = vmul.f32 %v948_v31, %v4027_v4  ;;  %v1080_v34 = vstv %s4108_s21  ;;  %vm4196_vm14 = vcmp.eq.s32.totalorder %v932_v26, 1  ;;  %v4237_v17 = vpop.permute.xlu2 %1184  ;;  %s4666_s21 = sld [smem:[#allocation2 + $0x9b]] }
 0x4a0   :  { %vm4200_vm9 = vcmp.eq.s32.totalorder %v933_v15, 1  ;;  %v4206_v24 = vmul.f32 %v1047_v63, %v1045_v21  ;;  %v928_v35 = vadd.f32 %v926_v3, %v916_v11  ;;  %v929_v31 = vadd.f32 %v927_v60, %v917_v55 }
 0x4a1   :  { %v964_v4 = vsel %vm963_vm8, 1, %v5620_v45  ;;  %v4211_v16 = vmul.f32 %v1047_v63, %v1044_v13  ;;  %v978_v6 = vsel %vm5772_vm15, %v5770_v59, %v5771_v8  ;;  %v982_v25 = vmul.f32 %v981_v43, %v979_v27 }
 0x4a2   :  { %vm1175_vm6 = vcmp.lt.s32.totalorder %v2525_v53, 2  ;;  %v991_v50 = vstv %s4137_s23  ;;  %v997_v63 = vsel %vm996_vm13, 1, %v5620_v45  ;;  %v936_v20 = vsel %vm4196_vm14, %v928_v35, 0.0  ;;  %s5166_s23 = sld [smem:[#allocation2 + $0x2c]] }
 0x4a3   :  { %v937_v46 = vsel %vm4200_vm9, %v929_v31, 0.0  ;;  %v958_v0 = vstv %s4152_s22  ;;  %v938_v37 = vadd.f32 %v936_v20, %v905_v42  ;;  %v965_v28 = vperm.slane %v964_v4, 0  ;;  %v952_v19 = vpop.permute.xlu1 %951  ;;  %vm1029_vm9 = vmand %vm4072_vm12, %vm3263_vm4  ;;  %1864 = vrot.lane.b32.xlu0 %v2943_v36, %s5791_s29  ;;  %1798 = vrot.lane.b32.xlu2 %v2943_v36, %s5777_s25  ;;  %v5792_v20 = vld [vmem:[#allocation29_spill] sm:$0xff]  ;;  %s4763_s22 = sld [smem:[#allocation2 + $0x9e]] }
 0x4a4   :  { %v939_v11 = vadd.f32 %v937_v46, %v906_v54  ;;  %v966_v40 = vperm.slane %v964_v4, 1  ;;  %v992_v47 = vmul.f32 %v991_v50, %v4088_v7  ;;  %v993_v26 = vmul.f32 %v991_v50, %v4083_v29  ;;  %1732 = vrot.lane.b32.xlu1 %v2943_v36, %s5778_s0  ;;  %v5793_v46 = vld [vmem:[#allocation38_spill] sm:$0xff]  ;;  %s4781_s25 = sld [smem:[#allocation2 + $0x20]] }
 0x4a5   :  { %v4244_v15 = vsel %vm1076_vm7, %v1084_v44, %v4076_v61  ;;  %v4249_v55 = vsel %vm1076_vm7, %v4076_v61, %v1084_v44  ;;  %v998_v49 = vperm.slane %v997_v63, 0  ;;  %v999_v7 = vperm.slane %v997_v63, 1  ;;  %v5794_v44 = vld [vmem:[#allocation35_spill] sm:$0xff]  ;;  %s4788_s0 = sld [smem:[#allocation2 + $0xa0]] }
 0x4a6   :  { %v955_v29 = vsel %vm944_vm1, %v952_v19, %v3997_v12  ;;  %v956_v21 = vsel %vm944_vm1, %v3997_v12, %v952_v19  ;;  %v983_v61 = vmul.f32 %v981_v43, %v978_v6  ;;  %vm5781_vm8 = vcmp.lt.s32.totalorder %v2525_v53, 16 }
 0x4a7   :  { %v1012_v32 = vsel %vm5781_vm8, %v5780_v48, %v5779_v23  ;;  %v959_v42 = vmul.f32 %v958_v0, %v956_v21  ;;  %v960_v54 = vmul.f32 %v958_v0, %v955_v29  ;;  %vm5782_vm13 = vmmov %vm5781_vm8  ;;  %vm4271_vm14 = vcmp.eq.s32.totalorder %v965_v28, 1  ;;  %v5795_v28 = vld [vmem:[#allocation42_spill] sm:$0xff] }
 0x4a8   :  { %v1011_v22 = vsel %vm5782_vm13, %v5779_v23, %v5780_v48  ;;  %vm4275_vm1 = vcmp.eq.s32.totalorder %v966_v40, 1  ;;  %v1030_v43 = vsel %vm1029_vm9, 1, %v5620_v45  ;;  %v994_v13 = vadd.f32 %v992_v47, %v982_v25  ;;  %vm1095_vm9 = vmand %vm4072_vm12, %vm3581_vm5  ;;  %v4315_v25 = vpop.permute.xlu2 %1215 }
 0x4a9   :  { %v995_v59 = vadd.f32 %v993_v26, %v983_v61  ;;  %v961_v8 = vadd.f32 %v959_v42, %v4123_v1  ;;  %v962_v27 = vadd.f32 %v960_v54, %v950_v52  ;;  %v1015_v3 = vmul.f32 %v1014_v18, %v1012_v32  ;;  %vm1062_vm13 = vmand %vm4072_vm12, %vm3466_vm2 }
 0x4aa   :  { %v1179_v60 = vstv %s4220_s18  ;;  %vm4284_vm15 = vcmp.eq.s32.totalorder %v998_v49, 1  ;;  %vm4288_vm8 = vcmp.eq.s32.totalorder %v999_v7, 1  ;;  %v1016_v1 = vmul.f32 %v1014_v18, %v1011_v22  ;;  %v4313_v18 = vpop.permute.xlu0 %1151  ;;  %s4779_s18 = sld [smem:[#allocation2 + $0x1f]] }
 0x4ab   :  { %v969_v52 = vsel %vm4271_vm14, %v961_v8, 0.0  ;;  %v970_v35 = vsel %vm4275_vm1, %v962_v27, 0.0  ;;  %v1024_v31 = vstv %s4235_s4  ;;  %v1031_v50 = vperm.slane %v1030_v43, 0  ;;  %v1020_v47 = vpop.permute.xlu1 %1019  ;;  %1895 = vrot.lane.b32.xlu0 %v2962_v33, %s2376_s7  ;;  %1829 = vrot.lane.b32.xlu2 %v2962_v33, %s2370_s9  ;;  %s4792_s4 = sld [smem:[#allocation2 + $0x9f]] }
 0x4ac   :  { %v971_v4 = vadd.f32 %v969_v52, %v938_v37  ;;  %v972_v6 = vadd.f32 %v970_v35, %v939_v11  ;;  %v1032_v63 = vperm.slane %v1030_v43, 1  ;;  %v1078_v0 = vsel %vm1076_vm7, %v5793_v46, %v5792_v20  ;;  %1763 = vrot.lane.b32.xlu1 %v2962_v33, %s5765_s20  ;;  %s4719_s20 = sld [smem:[#allocation2 + $0x9c]] }
 0x4ad   :  { %v1177_v40 = vsel %vm1175_vm6, %v5795_v28, %v5794_v44  ;;  %v1002_v37 = vsel %vm4284_vm15, %v994_v13, 0.0  ;;  %v1003_v11 = vsel %vm4288_vm8, %v995_v59, 0.0  ;;  %vm5796_vm14 = vcmp.lt.s32.totalorder %v2525_v53, 16 }
 0x4ae   :  { %v1004_v26 = vadd.f32 %v1002_v37, %v971_v4  ;;  %v1005_v19 = vadd.f32 %v1003_v11, %v972_v6  ;;  %v1021_v49 = vsel %vm5796_vm14, %v3999_v57, %v1020_v47  ;;  %vm5797_vm1 = vmmov %vm5796_vm14  ;;  %vm1109_vm15 = vcmp.lt.s32.totalorder %v2525_v53, 13 }
 0x4af   :  { %v1022_v7 = vsel %vm5797_vm1, %v1020_v47, %v3999_v57  ;;  %v1176_v29 = vsel %vm1175_vm6, %v5794_v44, %v5795_v28  ;;  %v1096_v21 = vsel %vm1095_vm9, 1, %v5620_v45  ;;  %v1026_v23 = vmul.f32 %v1024_v31, %v1021_v49 }
 0x4b0   :  { %v1025_v61 = vmul.f32 %v1024_v31, %v1022_v7  ;;  %v1077_v57 = vsel %vm1076_vm7, %v5792_v20, %v5793_v46  ;;  %vm4356_vm8 = vcmp.eq.s32.totalorder %v1031_v50, 1  ;;  %vm4360_vm14 = vcmp.eq.s32.totalorder %v1032_v63, 1  ;;  %v4394_v20 = vpop.permute.xlu2 %1303  ;;  %vm1128_vm7 = vmand %vm4072_vm12, %vm3669_vm11 }
 0x4b1   :  { %v1063_v42 = vsel %vm1062_vm13, 1, %v5620_v45  ;;  %v1081_v54 = vmul.f32 %v1080_v34, %v1078_v0  ;;  %v1180_v22 = vmul.f32 %v1179_v60, %v1177_v40  ;;  %v1028_v12 = vadd.f32 %v1026_v23, %v1016_v1 }
 0x4b2   :  { %v1027_v14 = vadd.f32 %v1025_v61, %v1015_v3  ;;  %v1181_v43 = vmul.f32 %v1179_v60, %v1176_v29  ;;  %v1090_v13 = vstv %s4292_s8  ;;  %v1097_v59 = vperm.slane %v1096_v21, 0  ;;  %v1183_v52 = vpop.permute.xlu0 %1182  ;;  %v5808_v29 = vld [vmem:[#allocation34_spill] sm:$0xff]  ;;  %s4829_s8 = sld [smem:[#allocation2 + $0x21]] }
 0x4b3   :  { %v1098_v8 = vperm.slane %v1096_v21, 1  ;;  %v1036_v3 = vsel %vm4360_vm14, %v1028_v12, 0.0  ;;  %v1189_v2 = vstv %s4307_s26  ;;  %v1064_v60 = vperm.slane %v1063_v42, 0  ;;  %v1051_v46 = vpop.permute.xlu1 %1050  ;;  %v5809_v21 = vld [vmem:[#allocation39_spill] sm:$0xff]  ;;  %1963 = vrot.lane.b32.xlu0 %v2943_v36, %s2375_s30  ;;  %1897 = vrot.lane.b32.xlu2 %v2943_v36, %s2376_s7  ;;  %s4502_s7 = sld [smem:[#allocation2 + $0x17]] }
 0x4b4   :  { %v1035_v27 = vsel %vm4356_vm8, %v1027_v14, 0.0  ;;  %v1038_v1 = vadd.f32 %v1036_v3, %v1005_v19  ;;  %v1057_v35 = vstv %s4317_s6  ;;  %v1065_v31 = vperm.slane %v1063_v42, 1  ;;  %1831 = vrot.lane.b32.xlu1 %v2943_v36, %s2370_s9  ;;  %s5825_s9 = smov 78   ;;  %s4863_s26 = sld [smem:[#allocation2 + $0x22]] }
 0x4b5   :  { %v1037_v30 = vadd.f32 %v1035_v27, %v1004_v26  ;;  %v1091_v4 = vmul.f32 %v1090_v13, %v4249_v55  ;;  %v1092_v6 = vmul.f32 %v1090_v13, %v4244_v15  ;;  %v1186_v50 = vsel %vm1175_vm6, %v1183_v52, %v4237_v17  ;;  %s4874_s6 = sld [smem:[#allocation2 + $0x23]] }
 0x4b6   :  { %v1187_v63 = vsel %vm1175_vm6, %v4237_v17, %v1183_v52  ;;  %v1191_v55 = vmul.f32 %v1189_v2, %v1186_v50  ;;  %vm5802_vm9 = vcmp.lt.s32.totalorder %v2525_v53, 15  ;;  %v1082_v17 = vmul.f32 %v1080_v34, %v1077_v57 }
 0x4b7   :  { %v1190_v0 = vmul.f32 %v1189_v2, %v1187_v63  ;;  %v1054_v15 = vsel %vm5802_vm9, %v1051_v46, %v4156_v58  ;;  %vm5803_vm13 = vmmov %vm5802_vm9  ;;  %vm4408_vm6 = vcmp.eq.s32.totalorder %v1064_v60, 1  ;;  %vm4418_vm12 = vcmp.eq.s32.totalorder %v1065_v31, 1 }
 0x4b8   :  { %v1055_v44 = vsel %vm5803_vm13, %v4156_v58, %v1051_v46  ;;  %v1059_v56 = vmul.f32 %v1057_v35, %v1054_v15  ;;  %v4416_v11 = vadd.f32 %v1191_v55, %v1181_v43  ;;  %v1129_v58 = vsel %vm1128_vm7, 1, %v5620_v45  ;;  %v5822_v55 = vld [vmem:[#allocation37_spill] sm:$0xff] }
 0x4b9   :  { %v1058_v40 = vmul.f32 %v1057_v35, %v1055_v44  ;;  %v4414_v37 = vadd.f32 %v1190_v0, %v1180_v22  ;;  %v1093_v34 = vadd.f32 %v1091_v4, %v1081_v54  ;;  %v1094_v26 = vadd.f32 %v1092_v6, %v1082_v17  ;;  %v4479_v35 = vpop.permute.xlu2 %1334  ;;  %v5821_v0 = vld [vmem:[#allocation32_spill] sm:$0xff] }
 0x4ba   :  { %v1061_v49 = vadd.f32 %v1059_v56, %v4211_v16  ;;  %v1113_v7 = vstv %s4367_s24  ;;  %v1110_v61 = vsel %vm1109_vm15, %v5809_v21, %v5808_v29  ;;  %vm4430_vm1 = vcmp.eq.s32.totalorder %v1097_v59, 1  ;;  %v4457_v22 = vpop.permute.xlu0 %1270  ;;  %v5823_v56 = vld [vmem:[#allocation47_spill] sm:$0xff]  ;;  %s4884_s24 = sld [smem:[#allocation2 + $0xa3]] }
 0x4bb   :  { %v1060_v19 = vadd.f32 %v1058_v40, %v4206_v24  ;;  %vm4434_vm8 = vcmp.eq.s32.totalorder %v1098_v8, 1  ;;  %v1111_v24 = vsel %vm1109_vm15, %v5808_v29, %v5809_v21  ;;  %v1123_v32 = vstv %s4381_s27  ;;  %v1119_v8 = vpop.permute.xlu1 %1118  ;;  %1994 = vrot.lane.b32.xlu0 %v2962_v33, %s5825_s9  ;;  %1928 = vrot.lane.b32.xlu2 %v2962_v33, %s5826_s28  ;;  %s4894_s27 = sld [smem:[#allocation2 + $0xa2]] }
 0x4bc   :  { %v1069_v48 = vsel %vm4418_vm12, %v1061_v49, 0.0  ;;  %v1130_v14 = vperm.slane %v1129_v58, 0  ;;  %v1131_v12 = vperm.slane %v1129_v58, 1  ;;  %vm1142_vm14 = vcmp.lt.s32.totalorder %v2525_v53, 3  ;;  %v5824_v58 = vld [vmem:[#allocation48_spill] sm:$0xff]  ;;  %1862 = vrot.lane.b32.xlu1 %v2962_v33, %s5791_s29  ;;  %s4845_s29 = sld [smem:[#allocation2 + $0xa1]] }
 0x4bd   :  { %v1068_v16 = vsel %vm4408_vm6, %v1060_v19, 0.0  ;;  %v1071_v54 = vadd.f32 %v1069_v48, %v1038_v1  ;;  %v1298_v43 = vstv %s4384_s2  ;;  %v1101_v13 = vsel %vm4430_vm1, %v1093_v34, 0.0  ;;  %s4935_s2 = sld [smem:[#allocation2 + $0x24]] }
 0x4be   :  { %v1070_v42 = vadd.f32 %v1068_v16, %v1037_v30  ;;  %v1102_v59 = vsel %vm4434_vm8, %v1094_v26, 0.0  ;;  %v1120_v2 = vsel %vm1109_vm15, %v4158_v62, %v1119_v8  ;;  %v1121_v60 = vsel %vm1109_vm15, %v1119_v8, %v4158_v62  ;;  %v5814_v30 = vld [vmem:[#allocation87_spill] sm:$0xff] }
 0x4bf   :  { %v1104_v3 = vadd.f32 %v1102_v59, %v1071_v54  ;;  %vm5815_vm7 = vnez %v5814_v30  ;;  %v1114_v1 = vmul.f32 %v1113_v7, %v1111_v24  ;;  %v1115_v52 = vmul.f32 %v1113_v7, %v1110_v61  ;;  %v5829_v59 = vld [vmem:[#allocation90_spill] sm:$0xff]  ;;  %v5881_v30 = vld [vmem:[#allocation45_spill] sm:$0xff] }
 0x4c0   :  { %v1103_v27 = vadd.f32 %v1101_v13, %v1070_v42  ;;  %vm1161_vm9 = vmand %vm5815_vm7, %vm3337_vm0  ;;  %v1124_v31 = vmul.f32 %v1123_v32, %v1121_v60  ;;  %v1125_v4 = vmul.f32 %v1123_v32, %v1120_v2  ;;  %v1146_v6 = vstv %s4412_s11  ;;  %s4952_s11 = sld [smem:[#allocation2 + $0xa4]] }
 0x4c1   :  { %vm1194_vm13 = vmand %vm5815_vm7, %vm3326_vm3  ;;  %vm4482_vm6 = vcmp.eq.s32.totalorder %v1130_v14, 1  ;;  %vm4486_vm15 = vcmp.eq.s32.totalorder %v1131_v12, 1  ;;  %v5820_v63 = vstv %s3257_s15  ;;  %v1143_v15 = vsel %vm1142_vm14, %v5822_v55, %v5821_v0  ;;  %v4570_v50 = vpop.permute.xlu2 %1402 }
 0x4c2   :  { %v1244_v46 = vmul.f32 %v5820_v63, %v2943_v36  ;;  %v1126_v44 = vadd.f32 %v1124_v31, %v1114_v1  ;;  %v1127_v17 = vadd.f32 %v1125_v4, %v1115_v52  ;;  %v1162_v28 = vsel %vm1161_vm9, 1, %v5620_v45  ;;  %v1302_v23 = vpop.permute.xlu0 %1301  ;;  %vm1227_vm8 = vmand %vm5815_vm7, %vm3424_vm10 }
 0x4c3   :  { %v1144_v40 = vsel %vm1142_vm14, %v5821_v0, %v5822_v55  ;;  %v1299_v47 = vmul.f32 %v1298_v43, %v5823_v56  ;;  %v1300_v34 = vmul.f32 %v1298_v43, %v5824_v58  ;;  %v1195_v26 = vsel %vm1194_vm13, 1, %v5620_v45  ;;  %v1150_v54 = vpop.permute.xlu1 %1149  ;;  %1996 = vrot.lane.b32.xlu2 %v2943_v36, %s5825_s9  ;;  %s4995_s9 = sld [smem:[#allocation2 + $0xa5]] }
 0x4c4   :  { %v1134_v19 = vsel %vm4482_vm6, %v1126_v44, 0.0  ;;  %v1135_v49 = vsel %vm4486_vm15, %v1127_v17, 0.0  ;;  %v1308_v7 = vstv %s4442_s12  ;;  %v1156_v29 = vstv %s4455_s13  ;;  %1930 = vrot.lane.b32.xlu1 %v2943_v36, %s5826_s28  ;;  %s4970_s12 = sld [smem:[#allocation2 + $0x25]] }
 0x4c5   :  { %v1136_v21 = vadd.f32 %v1134_v19, %v1103_v27  ;;  %v1137_v61 = vadd.f32 %v1135_v49, %v1104_v3  ;;  %v1163_v57 = vperm.slane %v1162_v28, 0  ;;  %v1164_v24 = vperm.slane %v1162_v28, 1  ;;  %v5845_v28 = vld [vmem:[#allocation22_spill] sm:$0xff]  ;;  %s4981_s13 = sld [smem:[#allocation2 + $0x26]] }
 0x4c6   :  { %v1196_v16 = vperm.slane %v1195_v26, 0  ;;  %v1197_v48 = vperm.slane %v1195_v26, 1  ;;  %vm5827_vm12 = vcmp.lt.s32.totalorder %v2525_v53, 126  ;;  %v1153_v43 = vsel %vm1142_vm14, %v1150_v54, %v4313_v18  ;;  %2018 = vrot.lane.b32.xlu0 %v5845_v28, %s2378_s1  ;;  %s5030_s28 = sld [smem:[#allocation2 + $0x27]] }
 0x4c7   :  { %v1305_v32 = vsel %vm5827_vm12, %v1302_v23, %v4394_v20  ;;  %vm5828_vm1 = vmmov %vm5827_vm12  ;;  %v1154_v13 = vsel %vm1142_vm14, %v4313_v18, %v1150_v54  ;;  %v5830_v8 = vperm.slane %v5829_v59, 1  ;;  %v1147_v27 = vmul.f32 %v1146_v6, %v1144_v40  ;;  %v5846_v40 = vld [vmem:[#allocation91_spill] sm:$0xff] }
 0x4c8   :  { %v1306_v42 = vsel %vm5828_vm1, %v4394_v20, %v1302_v23  ;;  %v1309_v14 = vmul.f32 %v1308_v7, %v1305_v32  ;;  %v1148_v3 = vmul.f32 %v1146_v6, %v1143_v15  ;;  %v1157_v2 = vmul.f32 %v1156_v29, %v1154_v13  ;;  %vm1313_vm1 = vmand %vm5815_vm7, %vm3581_vm5  ;;  %v5857_v6 = vld [vmem:[#allocation40_spill] sm:$0xff] }
 0x4c9   :  { %v1310_v12 = vmul.f32 %v1308_v7, %v1306_v42  ;;  %vm4546_vm9 = vcmp.eq.s32.totalorder %v5830_v8, 1  ;;  %v1158_v60 = vmul.f32 %v1156_v29, %v1153_v43  ;;  %v5833_v1 = vperm.slane %v5829_v59, 0  ;;  %v5852_v43 = vld [vmem:[#allocation43_spill] sm:$0xff]  ;;  %v4657_v17 = vpop.permute.xlu2 %1433 }
 0x4ca   :  { %v4558_v52 = vadd.f32 %v1309_v14, %v1299_v47  ;;  %vm4562_vm14 = vcmp.eq.s32.totalorder %v1163_v57, 1  ;;  %vm4566_vm6 = vcmp.eq.s32.totalorder %v1164_v24, 1  ;;  %v1159_v62 = vadd.f32 %v1157_v2, %v1147_v27  ;;  %v5847_v47 = vld [vmem:[#allocation21_spill] sm:$0xff] }
 0x4cb   :  { %vm4552_vm13 = vcmp.eq.s32.totalorder %v5833_v1, 1  ;;  %v4560_v31 = vadd.f32 %v1310_v12, %v1300_v34  ;;  %v1160_v63 = vadd.f32 %v1158_v60, %v1148_v3  ;;  %v1228_v0 = vsel %vm1227_vm8, 1, %v5620_v45  ;;  %v1218_v42 = vpop.permute.xlu1 %1217  ;;  %2027 = vrot.lane.b32.xlu2 %v2962_v33, %s2378_s1 }
 0x4cc   :  { %v5840_v55 = vstv %s3257_s15  ;;  %vm4578_vm15 = vcmp.eq.s32.totalorder %v1196_v16, 1  ;;  %vm4582_vm12 = vcmp.eq.s32.totalorder %v1197_v48, 1  ;;  %v4591_v56 = vadd.f32 %v1244_v46, %v5846_v40  ;;  %s4604_s15 = sld [smem:[#allocation2 + $0x9d]]  ;;  %v4606_v46 = vpop.permute.xlu0 %1369  ;;  %1961 = vrot.lane.b32.xlu1 %v2962_v33, %s2375_s30 }
 0x4cd   :  { %v1243_v15 = vmul.f32 %v5840_v55, %v2962_v33  ;;  %v5848_v58 = vstv %s3253_s14  ;;  %v1212_v26 = vstv %s4502_s7  ;;  %v1167_v19 = vsel %vm4562_vm14, %v1159_v62, 0.0  ;;  %s4608_s14 = sld [smem:[#allocation2 + $0x99]]  ;;  %v5861_v33 = vld [vmem:[#allocation54_spill] sm:$0xff] }
 0x4ce   :  { %v1239_v34 = vmul.f32 %v5848_v58, %v5847_v47  ;;  %v1168_v49 = vsel %vm4566_vm6, %v1160_v63, 0.0  ;;  %v1222_v7 = vstv %s4524_s16  ;;  %v1169_v29 = vadd.f32 %v1167_v19, %v1136_v21  ;;  %vm1280_vm6 = vmand %vm5815_vm7, %vm3466_vm2  ;;  %s4987_s7 = sld [smem:[#allocation2 + $0xa6]] }
 0x4cf   :  { %v1170_v23 = vadd.f32 %v1168_v49, %v1137_v61  ;;  %v1229_v57 = vperm.slane %v1228_v0, 0  ;;  %v1230_v24 = vperm.slane %v1228_v0, 1  ;;  %v1265_v16 = vstv %s4526_s17  ;;  %s5045_s16 = sld [smem:[#allocation2 + $0xa7]] }
 0x4d0   :  { %v1200_v48 = vsel %vm4578_vm15, %v4414_v37, 0.0  ;;  %v1201_v32 = vsel %vm4582_vm12, %v4416_v11, 0.0  ;;  %v4617_v54 = vadd.f32 %v1243_v15, %v1239_v34  ;;  %vm5849_vm8 = vcmp.lt.s32.totalorder %v2525_v53, 1  ;;  %v5851_v11 = vld [vmem:[#allocation44_spill] sm:$0xff]  ;;  %v5858_v15 = vld [vmem:[#allocation53_spill] sm:$0xff]  ;;  %s5061_s17 = sld [smem:[#allocation2 + $0x28]] }
 0x4d1   :  { %v1202_v21 = vadd.f32 %v1200_v48, %v1169_v29  ;;  %v1203_v61 = vadd.f32 %v1201_v32, %v1170_v23  ;;  %v1219_v14 = vsel %vm5849_vm8, %v4315_v25, %v1218_v42  ;;  %vm5850_vm14 = vmmov %vm5849_vm8  ;;  %v1213_v12 = vmul.f32 %v1212_v26, %v5851_v11  ;;  %s5155_s30 = sld [smem:[#allocation2 + $0x2b]] }
 0x4d2   :  { %v1220_v37 = vsel %vm5850_vm14, %v1218_v42, %v4315_v25  ;;  %v1214_v13 = vmul.f32 %v1212_v26, %v5852_v43  ;;  %v1224_v8 = vmul.f32 %v1222_v7, %v1219_v14  ;;  %v1397_v27 = vstv %s4556_s10  ;;  %v5882_v43 = vld [vmem:[#allocation46_spill] sm:$0xff]  ;;  %s5072_s10 = sld [smem:[#allocation2 + $0x29]] }
 0x4d3   :  { %v1223_v59 = vmul.f32 %v1222_v7, %v1220_v37  ;;  %vm4636_vm15 = vcmp.eq.s32.totalorder %v1229_v57, 1  ;;  %vm4640_vm12 = vcmp.eq.s32.totalorder %v1230_v24, 1  ;;  %v1314_v25 = vsel %vm1313_vm1, 1, %v5620_v45  ;;  %v1269_v29 = vpop.permute.xlu1 %1268  ;;  %v4679_v57 = vld [vmem:[%s5414_s3] ss:$2 sm:$0x3]  ;;  %vm1346_vm1 = vmand %vm5815_vm7, %vm3669_vm11 }
 0x4d4   :  { %v1226_v1 = vadd.f32 %v1224_v8, %v1214_v13  ;;  %v1254_v4 = vsel %vm4546_vm9, %v4591_v56, 0.0  ;;  %v1266_v62 = vmul.f32 %v1265_v16, %v5857_v6  ;;  %v1331_v63 = vstv %s4576_s19  ;;  %v1401_v58 = vpop.permute.xlu0 %1400  ;;  %s4710_s3 = sld [smem:[#allocation2 + $0x1c]]  ;;  %2029 = vrot.lane.b32.xlu1 %v2943_v36, %s2378_s1 }
 0x4d5   :  { %v1225_v60 = vadd.f32 %v1223_v59, %v1213_v12  ;;  %v1281_v0 = vsel %vm1280_vm6, 1, %v5620_v45  ;;  %v1253_v55 = vsel %vm4552_vm13, %v4617_v54, 0.0  ;;  %v1398_v44 = vmul.f32 %v1397_v27, %v5858_v15  ;;  %s4759_s1 = sld [smem:[#allocation2 + $0x1e]] }
 0x4d6   :  { %v1234_v28 = vsel %vm4640_vm12, %v1226_v1, 0.0  ;;  %v1407_v40 = vstv %s4604_s15  ;;  %v1315_v56 = vperm.slane %v1314_v25, 0  ;;  %v1275_v34 = vstv %s4608_s14  ;;  %s5079_s19 = sld [smem:[#allocation2 + $0xa9]] }
 0x4d7   :  { %v1233_v20 = vsel %vm4636_vm15, %v1225_v60, 0.0  ;;  %v1236_v18 = vadd.f32 %v1234_v28, %v1203_v61  ;;  %vm5859_vm9 = vcmp.lt.s32.totalorder %v2525_v53, 114  ;;  %v1282_v49 = vperm.slane %v1281_v0, 0  ;;  %s5086_s15 = sld [smem:[#allocation2 + $0xa8]] }
 0x4d8   :  { %v1235_v47 = vadd.f32 %v1233_v20, %v1202_v21  ;;  %v1404_v26 = vsel %vm5859_vm9, %v1401_v58, %v4570_v50  ;;  %vm5860_vm13 = vmmov %vm5859_vm9  ;;  %v1283_v7 = vperm.slane %v1281_v0, 1  ;;  %v1399_v23 = vmul.f32 %v1397_v27, %v5861_v33  ;;  %v5873_v0 = vld [vmem:[#allocation49_spill] sm:$0xff]  ;;  %s5120_s14 = sld [smem:[#allocation2 + $0x2a]] }
 0x4d9   :  { %v1405_v19 = vsel %vm5860_vm13, %v4570_v50, %v1401_v58  ;;  %v406_v24 = vadd.s32 1, %v4679_v57  ;;  %v1408_v48 = vmul.f32 %v1407_v40, %v1404_v26  ;;  %v5862_v50 = vld [vmem:[#allocation41_spill] sm:$0xff]  ;;  %v1316_v54 = vperm.slane %v1314_v25, 1 }
 0x4da   :  { %v1409_v32 = vmul.f32 %v1407_v40, %v1405_v19  ;;  %v1267_v42 = vmul.f32 %v1265_v16, %v5862_v50  ;;  %vm5863_vm8 = vcmp.lt.s32.totalorder %v2525_v53, 127  ;;  %vm4697_vm6 = vcmp.eq.s32.totalorder %v1315_v56, 1 }
 0x4db   :  { %v1272_v21 = vsel %vm5863_vm8, %v1269_v29, %v4457_v22  ;;  %vm5864_vm14 = vmmov %vm5863_vm8  ;;  %v4693_v14 = vadd.f32 %v1408_v48, %v1398_v44  ;;  %vm4701_vm7 = vcmp.eq.s32.totalorder %v1282_v49, 1  ;;  %vm4705_vm15 = vcmp.eq.s32.totalorder %v1283_v7, 1  ;;  %v4735_v44 = vpop.permute.xlu2 %1501  ;;  %v1337_v40 = vpop.permute.xlu1 %1336 }
 0x4dc   :  { %v1273_v61 = vsel %vm5864_vm14, %v4457_v22, %v1269_v29  ;;  %v4695_v37 = vadd.f32 %v1409_v32, %v1399_v23  ;;  %v1276_v11 = vmul.f32 %v1275_v34, %v1272_v21  ;;  %v1347_v22 = vsel %vm1346_vm1, 1, %v5620_v45  ;;  %v4725_v1 = vpop.permute.xlu0 %1468 }
 0x4dd   :  { %v1277_v12 = vmul.f32 %v1275_v34, %v1273_v61  ;;  %vm407_vm12 = vcmp.ge.s32.totalorder %v406_v24, 0  ;;  %vm408_vm9 = vcmp.lt.s32.totalorder %v406_v24, 16  ;;  %vm4712_vm13 = vcmp.eq.s32.totalorder %v1316_v54, 1 }
 0x4de   :  { %v1278_v13 = vadd.f32 %v1276_v11, %v1266_v62  ;;  %v1256_v27 = vadd.f32 %v1254_v4, %v1236_v18  ;;  %v1255_v3 = vadd.f32 %v1253_v55, %v1235_v47  ;;  %v1341_v2 = vstv %s4666_s21  ;;  %v5874_v4 = vld [vmem:[#allocation50_spill] sm:$0xff]  ;;  %vm4731_vm1 = vmand %vm407_vm12, %vm408_vm9  ;;  %s5133_s21 = sld [smem:[#allocation2 + $0xaa]] }
 0x4df   :  { %v1279_v59 = vadd.f32 %v1277_v12, %v1267_v42  ;;  %v1348_v6 = vperm.slane %v1347_v22, 0  ;;  %v1349_v62 = vperm.slane %v1347_v22, 1  ;;  %v1332_v15 = vmul.f32 %v1331_v63, %v5873_v0 }
 0x4e0   :  { %v1286_v25 = vsel %vm4701_vm7, %v1278_v13, 0.0  ;;  %v1333_v55 = vmul.f32 %v1331_v63, %v5874_v4  ;;  %v1319_v56 = vsel %vm4697_vm6, %v4558_v52, 0.0  ;;  %v1320_v63 = vsel %vm4712_vm13, %v4560_v31, 0.0  ;;  %vm1379_vm7 = vmand %vm4731_vm1, %vm3337_vm0 }
 0x4e1   :  { %v1287_v60 = vsel %vm4705_vm15, %v1279_v59, 0.0  ;;  %v1288_v20 = vadd.f32 %v1286_v25, %v1255_v3  ;;  %vm5877_vm8 = vcmp.lt.s32.totalorder %v2525_v53, 125  ;;  %vm1412_vm6 = vmand %vm4731_vm1, %vm3326_vm3  ;;  %vm1350_vm15 = vcmp.eq.s32.totalorder %v1348_v6, 1 }
 0x4e2   :  { %v1289_v28 = vadd.f32 %v1287_v60, %v1256_v27  ;;  %v1338_v47 = vsel %vm5877_vm8, %v4479_v35, %v1337_v40  ;;  %vm5878_vm14 = vmmov %vm5877_vm8  ;;  %vm1351_vm12 = vcmp.eq.s32.totalorder %v1349_v62, 1  ;;  %v1364_v49 = vstv %s4710_s3  ;;  %s5176_s3 = sld [smem:[#allocation2 + $0xac]] }
 0x4e3   :  { %v1339_v18 = vsel %vm5878_vm14, %v1337_v40, %v4479_v35  ;;  %v1321_v52 = vadd.f32 %v1319_v56, %v1288_v20  ;;  %v1342_v34 = vmul.f32 %v1341_v2, %v1338_v47  ;;  %v1380_v35 = vsel %vm1379_vm7, 1, %v5620_v45  ;;  %v1368_v54 = vpop.permute.xlu1 %1367  ;;  %vm1445_vm8 = vmand %vm4731_vm1, %vm3424_vm10  ;;  %v4777_v13 = vpop.permute.xlu2 %1532 }
 0x4e4   :  { %v1322_v58 = vadd.f32 %v1320_v63, %v1289_v28  ;;  %v1343_v26 = vmul.f32 %v1341_v2, %v1339_v18  ;;  %v1413_v7 = vsel %vm1412_vm6, 1, %v5620_v45  ;;  %v1374_v23 = vstv %s4719_s20  ;;  %v1500_v32 = vpop.permute.xlu0 %1499  ;;  %s5184_s20 = sld [smem:[#allocation2 + $0xab]] }
 0x4e5   :  { %v1344_v31 = vadd.f32 %v1342_v34, %v1332_v15  ;;  %v1381_v50 = vperm.slane %v1380_v35, 0  ;;  %v1382_v42 = vperm.slane %v1380_v35, 1  ;;  %v1414_v21 = vperm.slane %v1413_v7, 0 }
 0x4e6   :  { %v1345_v19 = vadd.f32 %v1343_v26, %v1333_v55  ;;  %v1415_v61 = vperm.slane %v1413_v7, 1  ;;  %vm5879_vm9 = vcmp.lt.s32.totalorder %v2525_v53, 115  ;;  %v1365_v16 = vmul.f32 %v1364_v49, %v5881_v30 }
 0x4e7   :  { %v1352_v29 = vsel %vm1350_vm15, %v1344_v31, 0.0  ;;  %v1371_v11 = vsel %vm5879_vm9, %v1368_v54, %v4606_v46  ;;  %vm5880_vm13 = vmmov %vm5879_vm9  ;;  %v1366_v22 = vmul.f32 %v1364_v49, %v5882_v43  ;;  %vm1383_vm14 = vcmp.eq.s32.totalorder %v1381_v50, 1 }
 0x4e8   :  { %v1353_v33 = vsel %vm1351_vm12, %v1345_v19, 0.0  ;;  %v1354_v24 = vadd.f32 %v1352_v29, %v1321_v52  ;;  %v1372_v12 = vsel %vm5880_vm13, %v4606_v46, %v1368_v54  ;;  %v1375_v59 = vmul.f32 %v1374_v23, %v1371_v11  ;;  %vm1478_vm13 = vmand %vm4731_vm1, %vm3263_vm4  ;;  %v5895_v54 = vld [vmem:[#allocation51_spill] sm:$0xff] }
 0x4e9   :  { %v1355_v48 = vadd.f32 %v1353_v33, %v1322_v58  ;;  %v1376_v8 = vmul.f32 %v1374_v23, %v1372_v12  ;;  %vm1384_vm7 = vcmp.eq.s32.totalorder %v1382_v42, 1  ;;  %v1446_v3 = vsel %vm1445_vm8, 1, %v5620_v45  ;;  %vm1511_vm8 = vmand %vm4731_vm1, %vm3466_vm2 }
 0x4ea   :  { %v1377_v46 = vadd.f32 %v1375_v59, %v1365_v16  ;;  %vm4784_vm6 = vcmp.eq.s32.totalorder %v1414_v21, 1  ;;  %vm1417_vm15 = vcmp.eq.s32.totalorder %v1415_v61, 1  ;;  %v1430_v25 = vstv %s4759_s1  ;;  %s5212_s1 = sld [smem:[#allocation2 + $0x2d]] }
 0x4eb   :  { %v1378_v27 = vadd.f32 %v1376_v8, %v1366_v22  ;;  %v1440_v62 = vstv %s4763_s22  ;;  %v1447_v55 = vperm.slane %v1446_v3, 0  ;;  %v1448_v20 = vperm.slane %v1446_v3, 1  ;;  %v1436_v56 = vpop.permute.xlu1 %1435  ;;  %v4826_v7 = vpop.permute.xlu2 %1600  ;;  %v5896_v8 = vld [vmem:[#allocation52_spill] sm:$0xff]  ;;  %s5216_s22 = sld [smem:[#allocation2 + $0xad]] }
 0x4ec   :  { %v1385_v60 = vsel %vm1383_vm14, %v1377_v46, 0.0  ;;  %v4794_v4 = vpop.permute.xlu0 %1567  ;;  %v1418_v28 = vsel %vm4784_vm6, %v4693_v14, 0.0  ;;  %v1419_v40 = vsel %vm1417_vm15, %v4695_v37, 0.0  ;;  %vm5885_vm12 = vcmp.lt.s32.totalorder %v2525_v53, 113  ;;  %v5887_v14 = vld [vmem:[#allocation55_spill] sm:$0xff]  ;;  %v5888_v37 = vld [vmem:[#allocation56_spill] sm:$0xff] }
 0x4ed   :  { %v1386_v6 = vsel %vm1384_vm7, %v1378_v27, 0.0  ;;  %v1387_v0 = vadd.f32 %v1385_v60, %v1354_v24  ;;  %v1437_v18 = vsel %vm5885_vm12, %v4657_v17, %v1436_v56  ;;  %vm5886_vm9 = vmmov %vm5885_vm12  ;;  %v1431_v52 = vmul.f32 %v1430_v25, %v5887_v14 }
 0x4ee   :  { %v1388_v15 = vadd.f32 %v1386_v6, %v1355_v48  ;;  %v1438_v58 = vsel %vm5886_vm9, %v1436_v56, %v4657_v17  ;;  %v1432_v34 = vmul.f32 %v1430_v25, %v5888_v37  ;;  %v1441_v26 = vmul.f32 %v1440_v62, %v1437_v18  ;;  %vm1544_vm12 = vmand %vm4731_vm1, %vm3581_vm5  ;;  %v5921_v56 = vld [vmem:[#allocation57_spill] sm:$0xff] }
 0x4ef   :  { %v1420_v47 = vadd.f32 %v1418_v28, %v1387_v0  ;;  %v1442_v31 = vmul.f32 %v1440_v62, %v1438_v58  ;;  %v1463_v19 = vstv %s4779_s18  ;;  %vm4817_vm14 = vcmp.eq.s32.totalorder %v1447_v55, 1  ;;  %v5899_v62 = vld [vmem:[#allocation59_spill] sm:$0xff]  ;;  %s5222_s18 = sld [smem:[#allocation2 + $0x2e]] }
 0x4f0   :  { %v1421_v63 = vadd.f32 %v1419_v40, %v1388_v15  ;;  %vm4821_vm7 = vcmp.eq.s32.totalorder %v1448_v20, 1  ;;  %v1496_v49 = vstv %s4781_s25  ;;  %v1443_v29 = vadd.f32 %v1441_v26, %v1431_v52  ;;  %v5900_v15 = vld [vmem:[#allocation60_spill] sm:$0xff]  ;;  %s5232_s25 = sld [smem:[#allocation2 + $0x2f]] }
 0x4f1   :  { %v1444_v33 = vadd.f32 %v1442_v31, %v1432_v34  ;;  %v1479_v23 = vsel %vm1478_vm13, 1, %v5620_v45  ;;  %v1506_v24 = vstv %s4788_s0  ;;  %v1512_v48 = vsel %vm1511_vm8, 1, %v5620_v45  ;;  %s5238_s0 = sld [smem:[#allocation2 + $0xaf]] }
 0x4f2   :  { %vm5893_vm6 = vcmp.lt.s32.totalorder %v2525_v53, 111  ;;  %v1464_v21 = vmul.f32 %v1463_v19, %v5895_v54  ;;  %v1451_v61 = vsel %vm4817_vm14, %v1443_v29, 0.0  ;;  %v1473_v12 = vstv %s4792_s4  ;;  %s5245_s4 = sld [smem:[#allocation2 + $0xae]] }
 0x4f3   :  { %v1503_v50 = vsel %vm5893_vm6, %v1500_v32, %v4735_v44  ;;  %vm5894_vm15 = vmmov %vm5893_vm6  ;;  %v1452_v11 = vsel %vm4821_vm7, %v1444_v33, 0.0  ;;  %v1453_v30 = vadd.f32 %v1451_v61, %v1420_v47  ;;  %v1480_v22 = vperm.slane %v1479_v23, 0  ;;  %v1467_v3 = vpop.permute.xlu1 %1466  ;;  %v4887_v34 = vpop.permute.xlu2 %1631 }
 0x4f4   :  { %v1504_v42 = vsel %vm5894_vm15, %v4735_v44, %v1500_v32  ;;  %v1454_v16 = vadd.f32 %v1452_v11, %v1421_v63  ;;  %v4847_v43 = vpop.permute.xlu0 %1598  ;;  %v1481_v59 = vperm.slane %v1479_v23, 1  ;;  %v1465_v46 = vmul.f32 %v1463_v19, %v5896_v8  ;;  %v5913_v11 = vld [vmem:[#allocation61_spill] sm:$0xff] }
 0x4f5   :  { %v1513_v44 = vperm.slane %v1512_v48, 0  ;;  %v1507_v32 = vmul.f32 %v1506_v24, %v1503_v50  ;;  %v1508_v27 = vmul.f32 %v1506_v24, %v1504_v42  ;;  %v1514_v2 = vperm.slane %v1512_v48, 1 }
 0x4f6   :  { %v410_v25 = vadd.s32 2, %v4679_v57  ;;  %vm5897_vm9 = vcmp.lt.s32.totalorder %v2525_v53, 112  ;;  %v1497_v0 = vmul.f32 %v1496_v49, %v5899_v62  ;;  %v1498_v55 = vmul.f32 %v1496_v49, %v5900_v15 }
 0x4f7   :  { %v1470_v60 = vsel %vm5897_vm9, %v1467_v3, %v4725_v1  ;;  %vm5898_vm13 = vmmov %vm5897_vm9  ;;  %vm4865_vm8 = vcmp.eq.s32.totalorder %v1480_v22, 1  ;;  %vm4869_vm14 = vcmp.eq.s32.totalorder %v1481_v59, 1  ;;  %vm4876_vm7 = vcmp.eq.s32.totalorder %v1513_v44, 1 }
 0x4f8   :  { %v1471_v6 = vsel %vm5898_vm13, %v4725_v1, %v1467_v3  ;;  %v1474_v20 = vmul.f32 %v1473_v12, %v1470_v60  ;;  %v1545_v1 = vsel %vm1544_vm12, 1, %v5620_v45  ;;  %v1509_v63 = vadd.f32 %v1507_v32, %v1497_v0 }
 0x4f9   :  { %v1475_v28 = vmul.f32 %v1473_v12, %v1471_v6  ;;  %v1510_v47 = vadd.f32 %v1508_v27, %v1498_v55  ;;  %vm4880_vm6 = vcmp.eq.s32.totalorder %v1514_v2, 1  ;;  %vm411_vm15 = vcmp.ge.s32.totalorder %v410_v25, 0 }
 0x4fa   :  { %v1476_v18 = vadd.f32 %v1474_v20, %v1464_v21  ;;  %vm412_vm9 = vcmp.lt.s32.totalorder %v410_v25, 16  ;;  %v1529_v37 = vstv %s4829_s8  ;;  %v1539_v19 = vstv %s4845_s29  ;;  %s5268_s8 = sld [smem:[#allocation2 + $0x30]] }
 0x4fb   :  { %v1477_v58 = vadd.f32 %v1475_v28, %v1465_v46  ;;  %v1546_v29 = vperm.slane %v1545_v1, 0  ;;  %v1547_v33 = vperm.slane %v1545_v1, 1  ;;  %v1517_v23 = vsel %vm4876_vm7, %v1509_v63, 0.0  ;;  %vm4904_vm12 = vmand %vm411_vm15, %vm412_vm9  ;;  %v1535_v50 = vpop.permute.xlu1 %1534  ;;  %s5288_s29 = sld [smem:[#allocation2 + $0xb0]] }
 0x4fc   :  { %v1484_v26 = vsel %vm4865_vm8, %v1476_v18, 0.0  ;;  %v4896_v49 = vpop.permute.xlu0 %1666  ;;  %v1518_v24 = vsel %vm4880_vm6, %v1510_v47, 0.0  ;;  %vm5911_vm13 = vcmp.lt.s32.totalorder %v2525_v53, 110  ;;  %v1530_v12 = vmul.f32 %v1529_v37, %v5913_v11  ;;  %vm1610_vm7 = vmand %vm4904_vm12, %vm3337_vm0  ;;  %v1700_v18 = vpop.permute.xlu2 %1699 }
 0x4fd   :  { %v1485_v31 = vsel %vm4869_vm14, %v1477_v58, 0.0  ;;  %v1486_v17 = vadd.f32 %v1484_v26, %v1453_v30  ;;  %v1536_v21 = vsel %vm5911_vm13, %v4777_v13, %v1535_v50  ;;  %vm5912_vm8 = vmmov %vm5911_vm13  ;;  %v5914_v30 = vld [vmem:[#allocation62_spill] sm:$0xff]  ;;  %vm4924_vm6 = vcmp.eq.s32.totalorder %v1546_v29, 1 }
 0x4fe   :  { %v1487_v35 = vadd.f32 %v1485_v31, %v1454_v16  ;;  %v1537_v61 = vsel %vm5912_vm8, %v1535_v50, %v4777_v13  ;;  %vm1577_vm14 = vmand %vm4731_vm1, %vm3669_vm11  ;;  %v1531_v16 = vmul.f32 %v1529_v37, %v5914_v30  ;;  %v1540_v22 = vmul.f32 %v1539_v19, %v1536_v21  ;;  %v5925_v31 = vld [vmem:[#allocation65_spill] sm:$0xff] }
 0x4ff   :  { %v1519_v54 = vadd.f32 %v1517_v23, %v1486_v17  ;;  %v1541_v59 = vmul.f32 %v1539_v19, %v1537_v61  ;;  %vm4928_vm15 = vcmp.eq.s32.totalorder %v1547_v33, 1  ;;  %v1562_v36 = vstv %s4863_s26  ;;  %vm1643_vm13 = vmand %vm4904_vm12, %vm3326_vm3  ;;  %v5926_v17 = vld [vmem:[#allocation66_spill] sm:$0xff] }
 0x500   :  { %v1520_v42 = vadd.f32 %v1518_v24, %v1487_v35  ;;  %v1542_v46 = vadd.f32 %v1540_v22, %v1530_v12  ;;  %v1578_v32 = vsel %vm1577_vm14, 1, %v5620_v45  ;;  %v1595_v27 = vstv %s4874_s6  ;;  %v5944_v24 = vld [vmem:[#allocation64_spill] sm:$0xff] }
 0x501   :  { %v1543_v44 = vadd.f32 %v1541_v59, %v1531_v16  ;;  %v1605_v3 = vstv %s4884_s24  ;;  %vm5919_vm1 = vcmp.lt.s32.totalorder %v2525_v53, 99  ;;  %v1611_v60 = vsel %vm1610_vm7, 1, %v5620_v45 }
 0x502   :  { %v1602_v2 = vsel %vm5919_vm1, %v4847_v43, %v4826_v7  ;;  %vm5920_vm9 = vmmov %vm5919_vm1  ;;  %v1550_v6 = vsel %vm4924_vm6, %v1542_v46, 0.0  ;;  %v1572_v0 = vstv %s4894_s27  ;;  %v1579_v28 = vperm.slane %v1578_v32, 0 }
 0x503   :  { %v1603_v25 = vsel %vm5920_vm9, %v4826_v7, %v4847_v43  ;;  %v1551_v62 = vsel %vm4928_vm15, %v1543_v44, 0.0  ;;  %v1552_v15 = vadd.f32 %v1550_v6, %v1519_v54  ;;  %v1580_v40 = vperm.slane %v1578_v32, 1  ;;  %v5922_v7 = vld [vmem:[#allocation58_spill] sm:$0xff]  ;;  %v1566_v58 = vpop.permute.xlu1 %1565 }
 0x504   :  { %v1553_v55 = vadd.f32 %v1551_v62, %v1520_v42  ;;  %v4954_v20 = vpop.permute.xlu0 %1697  ;;  %v1563_v1 = vmul.f32 %v1562_v36, %v5921_v56  ;;  %v1564_v43 = vmul.f32 %v1562_v36, %v5922_v7  ;;  %v1606_v63 = vmul.f32 %v1605_v3, %v1602_v2  ;;  %v5936_v62 = vld [vmem:[#allocation68_spill] sm:$0xff] }
 0x505   :  { %v1607_v47 = vmul.f32 %v1605_v3, %v1603_v25  ;;  %v1612_v14 = vperm.slane %v1611_v60, 0  ;;  %v1613_v52 = vperm.slane %v1611_v60, 1  ;;  %vm5923_vm8 = vcmp.lt.s32.totalorder %v2525_v53, 109  ;;  %v5935_v60 = vld [vmem:[#allocation67_spill] sm:$0xff] }
 0x506   :  { %v1569_v37 = vsel %vm5923_vm8, %v1566_v58, %v4794_v4  ;;  %vm5924_vm14 = vmmov %vm5923_vm8  ;;  %v1596_v19 = vmul.f32 %v1595_v27, %v5925_v31  ;;  %v1597_v35 = vmul.f32 %v1595_v27, %v5926_v17  ;;  %vm4972_vm7 = vcmp.eq.s32.totalorder %v1579_v28, 1 }
 0x507   :  { %v1570_v26 = vsel %vm5924_vm14, %v4794_v4, %v1566_v58  ;;  %v1573_v29 = vmul.f32 %v1572_v0, %v1569_v37  ;;  %vm4976_vm6 = vcmp.eq.s32.totalorder %v1580_v40, 1  ;;  %v1644_v4 = vsel %vm1643_vm13, 1, %v5620_v45  ;;  %vm1676_vm8 = vmand %vm4904_vm12, %vm3424_vm10 }
 0x508   :  { %v1574_v33 = vmul.f32 %v1572_v0, %v1570_v26  ;;  %v1608_v50 = vadd.f32 %v1606_v63, %v1596_v19  ;;  %v1609_v42 = vadd.f32 %v1607_v47, %v1597_v35  ;;  %vm4983_vm15 = vcmp.eq.s32.totalorder %v1612_v14, 1  ;;  %vm1709_vm14 = vmand %vm4904_vm12, %vm3263_vm4 }
 0x509   :  { %v1575_v54 = vadd.f32 %v1573_v29, %v1563_v1  ;;  %vm1615_vm1 = vcmp.eq.s32.totalorder %v1613_v52, 1  ;;  %v1628_v11 = vstv %s4935_s2  ;;  %v1638_v16 = vstv %s4952_s11 }
 0x50a   :  { %v1576_v21 = vadd.f32 %v1574_v33, %v1564_v43  ;;  %v1645_v8 = vperm.slane %v1644_v4, 0  ;;  %v1646_v13 = vperm.slane %v1644_v4, 1  ;;  %v1616_v36 = vsel %vm4983_vm15, %v1608_v50, 0.0  ;;  %v5943_v33 = vld [vmem:[#allocation63_spill] sm:$0xff] }
 0x50b   :  { %v1583_v12 = vsel %vm4972_vm7, %v1575_v54, 0.0  ;;  %v1617_v46 = vsel %vm1615_vm1, %v1609_v42, 0.0  ;;  %v1634_v32 = vpop.permute.xlu1 %1633  ;;  %vm5933_vm9 = vcmp.lt.s32.totalorder %v2525_v53, 98  ;;  %v1629_v6 = vmul.f32 %v1628_v11, %v5935_v60  ;;  %v5971_v60 = vld [vmem:[#allocation77_spill] sm:$0xff] }
 0x50c   :  { %v1584_v30 = vsel %vm4976_vm6, %v1576_v21, 0.0  ;;  %v1585_v22 = vadd.f32 %v1583_v12, %v1552_v15  ;;  %v4999_v44 = vpop.permute.xlu0 %1765  ;;  %v1635_v2 = vsel %vm5933_vm9, %v4887_v34, %v1634_v32  ;;  %vm5934_vm13 = vmmov %vm5933_vm9  ;;  %v1630_v0 = vmul.f32 %v1628_v11, %v5936_v62  ;;  %v5013_v15 = vpop.permute.xlu2 %1730  ;;  %v5947_v11 = vld [vmem:[#allocation71_spill] sm:$0xff] }
 0x50d   :  { %v1586_v59 = vadd.f32 %v1584_v30, %v1553_v55  ;;  %v1636_v25 = vsel %vm5934_vm13, %v1634_v32, %v4887_v34  ;;  %v1639_v55 = vmul.f32 %v1638_v16, %v1635_v2  ;;  %vm5019_vm7 = vcmp.eq.s32.totalorder %v1645_v8, 1  ;;  %vm1742_vm9 = vmand %vm4904_vm12, %vm3466_vm2  ;;  %v5948_v30 = vld [vmem:[#allocation72_spill] sm:$0xff] }
 0x50e   :  { %v1618_v3 = vadd.f32 %v1616_v36, %v1585_v22  ;;  %v1640_v28 = vmul.f32 %v1638_v16, %v1636_v25  ;;  %vm5023_vm6 = vcmp.eq.s32.totalorder %v1646_v13, 1  ;;  %v1661_v56 = vstv %s4970_s12  ;;  %v5968_v13 = vld [vmem:[#allocation70_spill] sm:$0xff] }
 0x50f   :  { %v1619_v27 = vadd.f32 %v1617_v46, %v1586_v59  ;;  %v1641_v1 = vadd.f32 %v1639_v55, %v1629_v6  ;;  %v1677_v43 = vsel %vm1676_vm8, 1, %v5620_v45  ;;  %v1694_v63 = vstv %s4981_s13 }
 0x510   :  { %v1642_v7 = vadd.f32 %v1640_v28, %v1630_v0  ;;  %v1704_v47 = vstv %s4987_s7  ;;  %vm5941_vm15 = vcmp.lt.s32.totalorder %v2525_v53, 96  ;;  %v1710_v52 = vsel %vm1709_vm14, 1, %v5620_v45 }
 0x511   :  { %v1701_v58 = vsel %vm5941_vm15, %v4954_v20, %v1700_v18  ;;  %vm5942_vm1 = vmmov %vm5941_vm15  ;;  %v1649_v37 = vsel %vm5019_vm7, %v1641_v1, 0.0  ;;  %v1671_v31 = vstv %s4995_s9  ;;  %v1678_v35 = vperm.slane %v1677_v43, 0 }
 0x512   :  { %v1702_v14 = vsel %vm5942_vm1, %v1700_v18, %v4954_v20  ;;  %v1650_v26 = vsel %vm5023_vm6, %v1642_v7, 0.0  ;;  %v1651_v19 = vadd.f32 %v1649_v37, %v1618_v3  ;;  %v1679_v29 = vperm.slane %v1677_v43, 1  ;;  %v5958_v37 = vld [vmem:[#allocation74_spill] sm:$0xff] }
 0x513   :  { %v1652_v17 = vadd.f32 %v1650_v26, %v1619_v27  ;;  %v1662_v23 = vmul.f32 %v1661_v56, %v5943_v33  ;;  %v1663_v4 = vmul.f32 %v1661_v56, %v5944_v24  ;;  %v1705_v20 = vmul.f32 %v1704_v47, %v1701_v58  ;;  %v1665_v50 = vpop.permute.xlu1 %1664 }
 0x514   :  { %v1706_v18 = vmul.f32 %v1704_v47, %v1702_v14  ;;  %v1711_v42 = vperm.slane %v1710_v52, 0  ;;  %v1712_v54 = vperm.slane %v1710_v52, 1  ;;  %vm5945_vm13 = vcmp.lt.s32.totalorder %v2525_v53, 97  ;;  %v1797_v22 = vpop.permute.xlu0 %1796  ;;  %v1799_v27 = vpop.permute.xlu2 %1798 }
 0x515   :  { %v1668_v21 = vsel %vm5945_vm13, %v1665_v50, %v4896_v49  ;;  %vm5946_vm8 = vmmov %vm5945_vm13  ;;  %v1695_v12 = vmul.f32 %v1694_v63, %v5947_v11  ;;  %v1696_v16 = vmul.f32 %v1694_v63, %v5948_v30  ;;  %vm5063_vm14 = vcmp.eq.s32.totalorder %v1678_v35, 1 }
 0x516   :  { %v1669_v61 = vsel %vm5946_vm8, %v4896_v49, %v1665_v50  ;;  %v1672_v59 = vmul.f32 %v1671_v31, %v1668_v21  ;;  %vm5067_vm7 = vcmp.eq.s32.totalorder %v1679_v29, 1  ;;  %v1743_v49 = vsel %vm1742_vm9, 1, %v5620_v45  ;;  %vm1775_vm13 = vmand %vm4904_vm12, %vm3581_vm5 }
 0x517   :  { %v1673_v8 = vmul.f32 %v1671_v31, %v1669_v61  ;;  %v1707_v46 = vadd.f32 %v1705_v20, %v1695_v12  ;;  %v1708_v32 = vadd.f32 %v1706_v18, %v1696_v16  ;;  %v1727_v25 = vstv %s5030_s28  ;;  %vm1808_vm8 = vmand %vm4904_vm12, %vm3669_vm11 }
 0x518   :  { %v1674_v3 = vadd.f32 %v1672_v59, %v1662_v23  ;;  %vm5075_vm6 = vcmp.eq.s32.totalorder %v1711_v42, 1  ;;  %vm1714_vm15 = vcmp.eq.s32.totalorder %v1712_v54, 1  ;;  %v1737_v0 = vstv %s5045_s16  ;;  %v5967_v59 = vld [vmem:[#allocation69_spill] sm:$0xff] }
 0x519   :  { %v1675_v2 = vadd.f32 %v1673_v8, %v1663_v4  ;;  %v1744_v55 = vperm.slane %v1743_v49, 0  ;;  %v1745_v40 = vperm.slane %v1743_v49, 1  ;;  %v414_v56 = vadd.s32 3, %v4679_v57  ;;  %v5957_v57 = vld [vmem:[#allocation73_spill] sm:$0xff] }
 0x51a   :  { %v1682_v6 = vsel %vm5063_vm14, %v1674_v3, 0.0  ;;  %v1715_v1 = vsel %vm5075_vm6, %v1707_v46, 0.0  ;;  %v1716_v7 = vsel %vm1714_vm15, %v1708_v32, 0.0  ;;  %vm5955_vm1 = vcmp.lt.s32.totalorder %v2525_v53, 95 }
 0x51b   :  { %v1683_v62 = vsel %vm5067_vm7, %v1675_v2, 0.0  ;;  %v1684_v28 = vadd.f32 %v1682_v6, %v1651_v19  ;;  %v1733_v43 = vpop.permute.xlu1 %1732  ;;  %vm5956_vm9 = vmmov %vm5955_vm1  ;;  %v1728_v52 = vmul.f32 %v1727_v25, %v5957_v57  ;;  %v1729_v26 = vmul.f32 %v1727_v25, %v5958_v37 }
 0x51c   :  { %v1685_v34 = vadd.f32 %v1683_v62, %v1652_v17  ;;  %v1734_v58 = vsel %vm5955_vm1, %v5013_v15, %v1733_v43  ;;  %v1735_v14 = vsel %vm5956_vm9, %v1733_v43, %v5013_v15  ;;  %v1760_v17 = vstv %s5061_s17  ;;  %v5116_v29 = vpop.permute.xlu0 %1864  ;;  %v1830_v50 = vpop.permute.xlu2 %1829  ;;  %v5972_v62 = vld [vmem:[#allocation78_spill] sm:$0xff] }
 0x51d   :  { %v1717_v47 = vadd.f32 %v1715_v1, %v1684_v28  ;;  %v1738_v31 = vmul.f32 %v1737_v0, %v1734_v58  ;;  %v1739_v19 = vmul.f32 %v1737_v0, %v1735_v14  ;;  %vm5108_vm14 = vcmp.eq.s32.totalorder %v1744_v55, 1 }
 0x51e   :  { %v1718_v63 = vadd.f32 %v1716_v7, %v1685_v34  ;;  %vm5112_vm7 = vcmp.eq.s32.totalorder %v1745_v40, 1  ;;  %vm415_vm6 = vcmp.ge.s32.totalorder %v414_v56, 0  ;;  %vm416_vm15 = vcmp.lt.s32.totalorder %v414_v56, 16 }
 0x51f   :  { %v1740_v33 = vadd.f32 %v1738_v31, %v1728_v52  ;;  %v1741_v23 = vadd.f32 %v1739_v19, %v1729_v26  ;;  %v1776_v24 = vsel %vm1775_vm13, 1, %v5620_v45  ;;  %v1793_v4 = vstv %s5072_s10  ;;  %vm5137_vm9 = vmand %vm415_vm6, %vm416_vm15 }
 0x520   :  { %v1803_v48 = vstv %s5079_s19  ;;  %vm5963_vm12 = vcmp.lt.s32.totalorder %v2525_v53, 93  ;;  %v1809_v42 = vsel %vm1808_vm8, 1, %v5620_v45  ;;  %v1770_v61 = vstv %s5086_s15  ;;  %vm1841_vm13 = vmand %vm5137_vm9, %vm3337_vm0 }
 0x521   :  { %v1800_v20 = vsel %vm5963_vm12, %v1797_v22, %v1799_v27  ;;  %vm5964_vm1 = vmmov %vm5963_vm12  ;;  %v1748_v54 = vsel %vm5108_vm14, %v1740_v33, 0.0  ;;  %v1749_v21 = vsel %vm5112_vm7, %v1741_v23, 0.0  ;;  %v1777_v16 = vperm.slane %v1776_v24, 0 }
 0x522   :  { %v1801_v18 = vsel %vm5964_vm1, %v1799_v27, %v1797_v22  ;;  %v1750_v11 = vadd.f32 %v1748_v54, %v1717_v47  ;;  %v1751_v12 = vadd.f32 %v1749_v21, %v1718_v63  ;;  %v1778_v22 = vperm.slane %v1776_v24, 1 }
 0x523   :  { %v1761_v8 = vmul.f32 %v1760_v17, %v5967_v59  ;;  %v1762_v36 = vmul.f32 %v1760_v17, %v5968_v13  ;;  %v1804_v49 = vmul.f32 %v1803_v48, %v1800_v20  ;;  %v1805_v46 = vmul.f32 %v1803_v48, %v1801_v18  ;;  %v1764_v32 = vpop.permute.xlu1 %1763  ;;  %v5983_v20 = vld [vmem:[#allocation79_spill] sm:$0xff] }
 0x524   :  { %v1810_v27 = vperm.slane %v1809_v42, 0  ;;  %v1811_v3 = vperm.slane %v1809_v42, 1  ;;  %vm5969_vm8 = vcmp.lt.s32.totalorder %v2525_v53, 94  ;;  %v1794_v6 = vmul.f32 %v1793_v4, %v5971_v60  ;;  %v1896_v58 = vpop.permute.xlu0 %1895  ;;  %v1898_v35 = vpop.permute.xlu2 %1897  ;;  %v5984_v42 = vld [vmem:[#allocation80_spill] sm:$0xff] }
 0x525   :  { %v1767_v2 = vsel %vm5969_vm8, %v1764_v32, %v4999_v44  ;;  %vm5970_vm14 = vmmov %vm5969_vm8  ;;  %v1795_v0 = vmul.f32 %v1793_v4, %v5972_v62  ;;  %vm5157_vm0 = vcmp.eq.s32.totalorder %v1777_v16, 1  ;;  %vm5161_vm7 = vcmp.eq.s32.totalorder %v1778_v22, 1  ;;  %v5988_v60 = vld [vmem:[#allocation76_spill] sm:$0xff] }
 0x526   :  { %v1768_v25 = vsel %vm5970_vm14, %v4999_v44, %v1764_v32  ;;  %v1771_v55 = vmul.f32 %v1770_v61, %v1767_v2  ;;  %v1842_v44 = vsel %vm1841_vm13, 1, %v5620_v45  ;;  %v1806_v40 = vadd.f32 %v1804_v49, %v1794_v6  ;;  %vm1874_vm13 = vmand %vm5137_vm9, %vm3326_vm3  ;;  %v5987_v2 = vld [vmem:[#allocation75_spill] sm:$0xff] }
 0x527   :  { %v1772_v5 = vmul.f32 %v1770_v61, %v1768_v25  ;;  %v1807_v56 = vadd.f32 %v1805_v46, %v1795_v0  ;;  %vm5168_vm6 = vcmp.eq.s32.totalorder %v1810_v27, 1  ;;  %vm5172_vm15 = vcmp.eq.s32.totalorder %v1811_v3, 1  ;;  %vm1907_vm8 = vmand %vm5137_vm9, %vm3424_vm10 }
 0x528   :  { %v1773_v1 = vadd.f32 %v1771_v55, %v1761_v8  ;;  %v1826_v47 = vstv %s5120_s14  ;;  %v1836_v52 = vstv %s5133_s21  ;;  %v1843_v31 = vperm.slane %v1842_v44, 0 }
 0x529   :  { %v1774_v7 = vadd.f32 %v1772_v5, %v1762_v36  ;;  %v1844_v19 = vperm.slane %v1842_v44, 1  ;;  %v1814_v17 = vsel %vm5168_vm6, %v1806_v40, 0.0  ;;  %v1815_v15 = vsel %vm5172_vm15, %v1807_v56, 0.0  ;;  %v5991_v56 = vld [vmem:[#allocation83_spill] sm:$0xff]  ;;  %vm1940_vm15 = vmand %vm5137_vm9, %vm3263_vm4 }
 0x52a   :  { %v1781_v14 = vsel %vm5157_vm0, %v1773_v1, 0.0  ;;  %vm5981_vm12 = vcmp.lt.s32.totalorder %v2525_v53, 83  ;;  %v1827_v18 = vmul.f32 %v1826_v47, %v5983_v20  ;;  %v1828_v54 = vmul.f32 %v1826_v47, %v5984_v42  ;;  %vm1973_vm4 = vmand %vm5137_vm9, %vm3466_vm2 }
 0x52b   :  { %v1782_v57 = vsel %vm5161_vm7, %v1774_v7, 0.0  ;;  %v1783_v37 = vadd.f32 %v1781_v14, %v1750_v11  ;;  %v1832_v33 = vpop.permute.xlu1 %1831  ;;  %vm5982_vm1 = vmmov %vm5981_vm12  ;;  %vm1845_vm14 = vcmp.eq.s32.totalorder %v1843_v31, 1  ;;  %vm1846_vm0 = vcmp.eq.s32.totalorder %v1844_v19, 1  ;;  %v5992_v7 = vld [vmem:[#allocation84_spill] sm:$0xff] }
 0x52c   :  { %v1784_v26 = vadd.f32 %v1782_v57, %v1751_v12  ;;  %v1833_v4 = vsel %vm5981_vm12, %v1830_v50, %v1832_v33  ;;  %v1834_v48 = vsel %vm5982_vm1, %v1832_v33, %v1830_v50  ;;  %v1859_v50 = vstv %s5155_s30  ;;  %v5220_v55 = vpop.permute.xlu0 %1963  ;;  %v1929_v63 = vpop.permute.xlu2 %1928  ;;  %vm2039_vm2 = vmand %vm5137_vm9, %vm3669_vm11 }
 0x52d   :  { %v1816_v24 = vadd.f32 %v1814_v17, %v1783_v37  ;;  %v1837_v21 = vmul.f32 %v1836_v52, %v1833_v4  ;;  %v1838_v61 = vmul.f32 %v1836_v52, %v1834_v48  ;;  %v1875_v12 = vsel %vm1874_vm13, 1, %v5620_v45 }
 0x52e   :  { %v1817_v23 = vadd.f32 %v1815_v15, %v1784_v26  ;;  %v1892_v16 = vstv %s5166_s23  ;;  %v1902_v22 = vstv %s5176_s3  ;;  %vm5985_vm3 = vcmp.lt.s32.totalorder %v2525_v53, 81 }
 0x52f   :  { %v1839_v11 = vadd.f32 %v1837_v21, %v1827_v18  ;;  %v1840_v38 = vadd.f32 %v1838_v61, %v1828_v54  ;;  %v1899_v59 = vsel %vm5985_vm3, %v1896_v58, %v1898_v35  ;;  %vm5986_vm7 = vmmov %vm5985_vm3  ;;  %v1908_v9 = vsel %vm1907_vm8, 1, %v5620_v45 }
 0x530   :  { %v1900_v8 = vsel %vm5986_vm7, %v1898_v35, %v1896_v58  ;;  %v1869_v49 = vstv %s5184_s20  ;;  %v1876_v27 = vperm.slane %v1875_v12, 0  ;;  %v1877_v3 = vperm.slane %v1875_v12, 1  ;;  %v5998_v12 = vld [vmem:[#allocation86_spill] sm:$0xff]  ;;  %vm2006_vm3 = vmand %vm5137_vm9, %vm3581_vm5 }
 0x531   :  { %v1847_v13 = vsel %vm1845_vm14, %v1839_v11, 0.0  ;;  %v1848_v36 = vsel %vm1846_vm0, %v1840_v38, 0.0  ;;  %v1860_v25 = vmul.f32 %v1859_v50, %v5987_v2  ;;  %v1861_v6 = vmul.f32 %v1859_v50, %v5988_v60  ;;  %v5997_v11 = vld [vmem:[#allocation85_spill] sm:$0xff]  ;;  %v6006_v60 = vld [vmem:[#allocation82_spill] sm:$0xff] }
 0x532   :  { %v1849_v46 = vadd.f32 %v1847_v13, %v1816_v24  ;;  %v1850_v32 = vadd.f32 %v1848_v36, %v1817_v23  ;;  %v1903_v62 = vmul.f32 %v1902_v22, %v1899_v59  ;;  %v1904_v0 = vmul.f32 %v1902_v22, %v1900_v8  ;;  %v6005_v2 = vld [vmem:[#allocation81_spill] sm:$0xff] }
 0x533   :  { %v1863_v5 = vpop.permute.xlu1 %1862  ;;  %v1909_v28 = vperm.slane %v1908_v9, 0  ;;  %v1910_v34 = vperm.slane %v1908_v9, 1  ;;  %vm5989_vm10 = vcmp.lt.s32.totalorder %v2525_v53, 82  ;;  %v1893_v1 = vmul.f32 %v1892_v16, %v5991_v56 }
 0x534   :  { %v1866_v44 = vsel %vm5989_vm10, %v1863_v5, %v5116_v29  ;;  %vm5990_vm6 = vmmov %vm5989_vm10  ;;  %v1894_v43 = vmul.f32 %v1892_v16, %v5992_v7  ;;  %vm1878_vm12 = vcmp.eq.s32.totalorder %v1876_v27, 1  ;;  %vm1879_vm1 = vcmp.eq.s32.totalorder %v1877_v3, 1  ;;  %v1995_v21 = vpop.permute.xlu0 %1994  ;;  %v1997_v8 = vpop.permute.xlu2 %1996 }
 0x535   :  { %v1867_v40 = vsel %vm5990_vm6, %v5116_v29, %v1863_v5  ;;  %v1870_v47 = vmul.f32 %v1869_v49, %v1866_v44  ;;  %v1905_v14 = vadd.f32 %v1903_v62, %v1893_v1  ;;  %vm5240_vm13 = vcmp.eq.s32.totalorder %v1909_v28, 1 }
 0x536   :  { %v1871_v58 = vmul.f32 %v1869_v49, %v1867_v40  ;;  %v1906_v29 = vadd.f32 %v1904_v0, %v1894_v43  ;;  %vm1912_vm8 = vcmp.eq.s32.totalorder %v1910_v34, 1  ;;  %v1941_v26 = vsel %vm1940_vm15, 1, %v5620_v45 }
 0x537   :  { %v1872_v57 = vadd.f32 %v1870_v47, %v1860_v25  ;;  %v1925_v19 = vstv %s5212_s1  ;;  %v1935_v35 = vstv %s5216_s22  ;;  %v1913_v33 = vsel %vm5240_vm13, %v1905_v14, 0.0 }
 0x538   :  { %v1873_v52 = vadd.f32 %v1871_v58, %v1861_v6  ;;  %v1914_v23 = vsel %vm1912_vm8, %v1906_v29, 0.0  ;;  %v1942_v24 = vperm.slane %v1941_v26, 0  ;;  %v1943_v4 = vperm.slane %v1941_v26, 1  ;;  %v6009_v58 = vld [vmem:[#allocation88_spill] sm:$0xff]  ;;  %v6010_v29 = vld [vmem:[#allocation89_spill] sm:$0xff] }
 0x539   :  { %v1880_v39 = vsel %vm1878_vm12, %v1872_v57, 0.0  ;;  %v1958_v42 = vstv %s5222_s18  ;;  %v1991_v54 = vstv %s5232_s25  ;;  %vm5995_vm14 = vcmp.lt.s32.totalorder %v2525_v53, 80 }
 0x53a   :  { %v1881_v31 = vsel %vm1879_vm1, %v1873_v52, 0.0  ;;  %v1882_v17 = vadd.f32 %v1880_v39, %v1849_v46  ;;  %vm5996_vm0 = vmmov %vm5995_vm14  ;;  %v1926_v38 = vmul.f32 %v1925_v19, %v5997_v11  ;;  %v1927_v16 = vmul.f32 %v1925_v19, %v5998_v12 }
 0x53b   :  { %v1883_v15 = vadd.f32 %v1881_v31, %v1850_v32  ;;  %v1931_v48 = vpop.permute.xlu1 %1930  ;;  %v2001_v9 = vstv %s5238_s0  ;;  %vm5270_vm7 = vcmp.eq.s32.totalorder %v1942_v24, 1  ;;  %vm5274_vm10 = vcmp.eq.s32.totalorder %v1943_v4, 1 }
 0x53c   :  { %v1915_v18 = vadd.f32 %v1913_v33, %v1882_v17  ;;  %v1932_v61 = vsel %vm5995_vm14, %v1929_v63, %v1931_v48  ;;  %v1933_v50 = vsel %vm5996_vm0, %v1931_v48, %v1929_v63  ;;  %v1974_v49 = vsel %vm1973_vm4, 1, %v5620_v45  ;;  %v2019_v31 = vpop.permute.xlu0 %2018  ;;  %v6017_v48 = vld [vmem:[#allocation92_spill] sm:$0xff] }
 0x53d   :  { %v1916_v20 = vadd.f32 %v1914_v23, %v1883_v15  ;;  %v1936_v22 = vmul.f32 %v1935_v35, %v1932_v61  ;;  %v1937_v59 = vmul.f32 %v1935_v35, %v1933_v50  ;;  %vm6003_vm6 = vcmp.lt.s32.totalorder %v2525_v53, 78  ;;  %v6027_v15 = vld [vmem:[#allocation16_spill] sm:$0xff] }
 0x53e   :  { %v1998_v46 = vsel %vm6003_vm6, %v1995_v21, %v1997_v8  ;;  %vm6004_vm15 = vmmov %vm6003_vm6  ;;  %v1959_v25 = vmul.f32 %v1958_v42, %v6005_v2  ;;  %v1960_v6 = vmul.f32 %v1958_v42, %v6006_v60  ;;  %v2007_v41 = vsel %vm2006_vm3, 1, %v5620_v45 }
 0x53f   :  { %v1999_v32 = vsel %vm6004_vm15, %v1997_v8, %v1995_v21  ;;  %v1938_v27 = vadd.f32 %v1936_v22, %v1926_v38  ;;  %v1939_v3 = vadd.f32 %v1937_v59, %v1927_v16  ;;  %v1968_v62 = vstv %s5245_s4  ;;  %v2028_v21 = vpop.permute.xlu2 %2027 }
 0x540   :  { %v1975_v28 = vperm.slane %v1974_v49, 0  ;;  %v1976_v34 = vperm.slane %v1974_v49, 1  ;;  %v2002_v44 = vmul.f32 %v2001_v9, %v1998_v46  ;;  %v2003_v40 = vmul.f32 %v2001_v9, %v1999_v32 }
 0x541   :  { %v1946_v0 = vsel %vm5270_vm7, %v1938_v27, 0.0  ;;  %v1947_v5 = vsel %vm5274_vm10, %v1939_v3, 0.0  ;;  %v2008_v10 = vperm.slane %v2007_v41, 0  ;;  %v2009_v43 = vperm.slane %v2007_v41, 1 }
 0x542   :  { %v1948_v56 = vadd.f32 %v1946_v0, %v1915_v18  ;;  %v1949_v1 = vadd.f32 %v1947_v5, %v1916_v20  ;;  %vm6007_vm5 = vcmp.lt.s32.totalorder %v2525_v53, 79  ;;  %v1992_v14 = vmul.f32 %v1991_v54, %v6009_v58  ;;  %v6021_v58 = vld [vmem:[#allocation8_spill] sm:$0xff] }
 0x543   :  { %v1962_v7 = vpop.permute.xlu1 %1961  ;;  %vm6008_vm12 = vmmov %vm6007_vm5  ;;  %v1993_v57 = vmul.f32 %v1991_v54, %v6010_v29  ;;  %vm2020_vm11 = vcmp.lt.s32.totalorder %v2525_v53, 77  ;;  %vm5316_vm9 = vcmp.eq.s32.totalorder %v1975_v28, 1  ;;  %vm5320_vm1 = vcmp.eq.s32.totalorder %v1976_v34, 1  ;;  %v6022_v29 = vld [vmem:[#allocation9_spill] sm:$0xff] }
 0x544   :  { %v1965_v63 = vsel %vm6007_vm5, %v1962_v7, %v5220_v55  ;;  %v1966_v47 = vsel %vm6008_vm12, %v5220_v55, %v1962_v7  ;;  %v2040_v55 = vsel %vm2039_vm2, 1, %v5620_v45  ;;  %v2004_v26 = vadd.f32 %v2002_v44, %v1992_v14 }
 0x545   :  { %v1969_v51 = vmul.f32 %v1968_v62, %v1965_v63  ;;  %v1970_v52 = vmul.f32 %v1968_v62, %v1966_v47  ;;  %v2005_v39 = vadd.f32 %v2003_v40, %v1993_v57  ;;  %vm5325_vm13 = vcmp.eq.s32.totalorder %v2008_v10, 1  ;;  %v6019_v10 = vld [vmem:[#allocation7_spill] sm:$0xff]  ;;  %v6020_v63 = vld [vmem:[#allocation6_spill] sm:$0xff] }
 0x546   :  { %vm2011_vm8 = vcmp.eq.s32.totalorder %v2009_v43, 1  ;;  %v2024_v35 = vstv %s5268_s8  ;;  %v2034_v33 = vstv %s5288_s29  ;;  %v2041_v4 = vperm.slane %v2040_v55, 0 }
 0x547   :  { %v1971_v19 = vadd.f32 %v1969_v51, %v1959_v25  ;;  %v1972_v17 = vadd.f32 %v1970_v52, %v1960_v6  ;;  %v2042_v45 = vperm.slane %v2040_v55, 1  ;;  %v2021_v20 = vsel %vm2020_vm11, %v6017_v48, %v2019_v31  ;;  %v6023_v52 = vld [vmem:[#allocation10_spill] sm:$0xff]  ;;  %v6024_v55 = vld [vmem:[#allocation11_spill] sm:$0xff] }
 0x548   :  { %v2022_v18 = vsel %vm2020_vm11, %v2019_v31, %v6017_v48  ;;  %v2012_v61 = vsel %vm5325_vm13, %v2004_v26, 0.0  ;;  %v2013_v50 = vsel %vm2011_vm8, %v2005_v39, 0.0  ;;  %v2025_v59 = vmul.f32 %v2024_v35, %v2021_v20  ;;  %v6025_v39 = vld [vmem:[#allocation12_spill] sm:$0xff]  ;;  %v6031_v20 = vld [vmem:[#allocation14_spill] sm:$0xff] }
 0x549   :  { %v1979_v23 = vsel %vm5316_vm9, %v1971_v19, 0.0  ;;  %v1980_v24 = vsel %vm5320_vm1, %v1972_v17, 0.0  ;;  %v2026_v8 = vmul.f32 %v2024_v35, %v2022_v18  ;;  %vm2043_vm4 = vcmp.eq.s32.totalorder %v2041_v4, 1  ;;  %v6026_v19 = vld [vmem:[#allocation15_spill] sm:$0xff] }
 0x54a   :  { %v1981_v42 = vadd.f32 %v1979_v23, %v1948_v56  ;;  %v1982_v54 = vadd.f32 %v1980_v24, %v1949_v1  ;;  %vm2044_vm14 = vcmp.eq.s32.totalorder %v2042_v45, 1  ;;  %v6018_v1 = vld [vmem:[#allocation5_spill] sm:$0xff]  ;;  %v6029_v24 = vld [vmem:[#allocation20_spill] sm:$0xff] }
 0x54b   :  { %v2030_v11 = vpop.permute.xlu1 %2029  ;;  %v6030_v45 = vld [vmem:[#allocation13_spill] sm:$0xff] }
 0x54c   :  { %v2015_v38 = vadd.f32 %v2013_v50, %v1982_v54  ;;  %v2014_v12 = vadd.f32 %v2012_v61, %v1981_v42  ;;  %v2031_v16 = vsel %vm2020_vm11, %v2028_v21, %v2030_v11  ;;  %v2032_v22 = vsel %vm2020_vm11, %v2030_v11, %v2028_v21  ;;  %v6032_v42 = vld [vmem:[#allocation17_spill] sm:$0xff]  ;;  %v6033_v21 = vld [vmem:[#allocation18_spill] sm:$0xff] }
 0x54d   :  { %v2035_v9 = vmul.f32 %v2034_v33, %v2031_v16  ;;  %v2036_v13 = vmul.f32 %v2034_v33, %v2032_v22  ;;  %v6028_v33 = vld [vmem:[#allocation19_spill] sm:$0xff] }
 0x54f   :  { %v2037_v36 = vadd.f32 %v2035_v9, %v2025_v59  ;;  %v2038_v49 = vadd.f32 %v2036_v13, %v2026_v8 }
 0x551   :  { %v2045_v46 = vsel %vm2043_vm4, %v2037_v36, 0.0  ;;  %v2046_v32 = vsel %vm2044_vm14, %v2038_v49, 0.0 }
 0x552   :  { %v2047_v27 = vadd.f32 %v2045_v46, %v2014_v12  ;;  %v2048_v3 = vadd.f32 %v2046_v32, %v2015_v38 }
 0x554   :  { %v2049_v2 = vmax.f32 %v2047_v27, -80.0  ;;  %v2050_v25 = vmax.f32 %v2048_v3, -80.0 }
 0x556   :  { %v2051_v60 = vsub.f32 0.0, %v2049_v2  ;;  %v2052_v6 = vsub.f32 0.0, %v2050_v25 }
 0x558   :  { %v2053_v41 = vmul.f32 1.442695, %v2051_v60  ;;  %v2055_v62 = vmul.f32 1.442695, %v2052_v6 }
 0x55a   :  { %2303 = vpow2.f32 %v2053_v41 }
 0x55b   :  { %2305 = vpow2.f32 %v2055_v62 }
 0x560   :  { %v2304_v53 = vpop.eup %2303 }
 0x561   :  { %v2306_v0 = vpop.eup %2305  ;;  %v2057_v5 = vadd.f32 1.0, %v2304_v53 }
 0x562   :  { %v2058_v28 = vadd.f32 1.0, %v2306_v0 }
 0x563   :  { %2307 = vrcp.f32 %v2057_v5 }
 0x564   :  { %2309 = vrcp.f32 %v2058_v28 }
 0x569   :  { %v2308_v34 = vpop.eup %2307 }
 0x56a   :  { %v2310_v44 = vpop.eup %2309  ;;  %v2061_v40 = vperm.slane %v2308_v34, 0  ;;  %v2079_v51 = vperm.slane %v2308_v34, 1 }
 0x56b   :  { %v2062_v56 = vperm.slane %v2310_v44, 0  ;;  %v2080_v37 = vperm.slane %v2310_v44, 1 }
 0x56c   :  { %v2063_v7 = vmul.f32 %v2061_v40, %v6018_v1  ;;  %v2065_v43 = vmul.f32 %v2061_v40, %v6019_v10  ;;  %v2067_v57 = vmul.f32 %v2061_v40, %v6022_v29  ;;  %v2069_v26 = vmul.f32 %v2061_v40, %v6024_v55 }
 0x56d   :  { %v2064_v47 = vmul.f32 %v2062_v56, %v6020_v63  ;;  %v2066_v14 = vmul.f32 %v2062_v56, %v6021_v58  ;;  %v2068_v30 = vmul.f32 %v2062_v56, %v6023_v52  ;;  %v2070_v31 = vmul.f32 %v2062_v56, %v6025_v39 }
 0x56e   :  { %2071 = vst [vmem:[%s5416_s5] sm:$0xff] %v2063_v7  ;;  %v2081_v17 = vmul.f32 %v2079_v51, %v6026_v19  ;;  %v2082_v35 = vmul.f32 %v2080_v37, %v6027_v15  ;;  %v2083_v23 = vmul.f32 %v2079_v51, %v6028_v33  ;;  %v2084_v4 = vmul.f32 %v2080_v37, %v6029_v24 }
 0x56f   :  { %2072 = vst [vmem:[%s5416_s5 + $0x8] sm:$0xff] %v2064_v47  ;;  %v2085_v48 = vmul.f32 %v2079_v51, %v6030_v45  ;;  %v2086_v18 = vmul.f32 %v2080_v37, %v6031_v20  ;;  %v2087_v54 = vmul.f32 %v2079_v51, %v6032_v42  ;;  %v2088_v61 = vmul.f32 %v2080_v37, %v6033_v21 }
 0x570   :  { %2073 = vst [vmem:[%s5416_s5 + $0x10] sm:$0xff] %v2065_v43 }
 0x571   :  { %2074 = vst [vmem:[%s5416_s5 + $0x18] sm:$0xff] %v2066_v14 }
 0x572   :  { %2075 = vst [vmem:[%s5416_s5 + $0x20] sm:$0xff] %v2067_v57 }
 0x573   :  { %2076 = vst [vmem:[%s5416_s5 + $0x28] sm:$0xff] %v2068_v30 }
 0x574   :  { %2077 = vst [vmem:[%s5416_s5 + $0x30] sm:$0xff] %v2069_v26 }
 0x575   :  { %2078 = vst [vmem:[%s5416_s5 + $0x38] sm:$0xff] %v2070_v31 }
 0x576   :  { %2214 = vst [vmem:[%s5416_s5 + $0x40] sm:$0xff] %v2081_v17 }
 0x577   :  { %2215 = vst [vmem:[%s5416_s5 + $0x48] sm:$0xff] %v2082_v35 }
 0x578   :  { %2216 = vst [vmem:[%s5416_s5 + $0x50] sm:$0xff] %v2083_v23 }
 0x579   :  { %2217 = vst [vmem:[%s5416_s5 + $0x58] sm:$0xff] %v2084_v4 }
 0x57a   :  { %2218 = vst [vmem:[%s5416_s5 + $0x60] sm:$0xff] %v2085_v48 }
 0x57b   :  { %2219 = vst [vmem:[%s5416_s5 + $0x68] sm:$0xff] %v2086_v18 }
 0x57c   :  { %2220 = vst [vmem:[%s5416_s5 + $0x70] sm:$0xff] %v2087_v54 }
 0x57d   :  { %2221 = vst [vmem:[%s5416_s5 + $0x78] sm:$0xff] %v2088_v61 }
 0x57e   :  { %2102 = vsyncpa [#allocation3], 1 }

</bundles_post_ra>
